<compile_context>
chip_gen: v7x
topology: tpu7x:2x2x1
jax: 0.10.0
libtpu: 0.0.40
codegen_flags: <defaults>
</compile_context>

<pallas_src>
import functools

import jax
import jax.numpy as jnp
from jax.experimental import pallas as pl
from jax.experimental.pallas import tpu as pltpu

CP = 128          # padded channel / hidden / class lane width
K1, S1 = 40, 20   # conv1 kernel / stride
K2 = 5            # conv2 kernel (stride 1)
L1 = 24           # conv1 output length for input length 500
L2 = 20           # conv2 output length (fc1 expects 100 * 20 features)


def _round_up(v, m):
    return ((v + m - 1) // m) * m


# ----------------------------------------------------------------------------- kernel
def _fused_kernel(p1_ref, w1_ref, b1_ref, w2_ref, b2_ref,
                  wf1_ref, bf1_ref, wf2_ref, bf2_ref,
                  out_ref, y1_s, mag_s, *, bb):
    f32 = jnp.float32

    # ---- conv1 (imag input == 0): [real | imag] = P @ [Wr | Wi] + [br-bi | br+bi]
    # p1_ref is time-major: row = t*bb + b, shape (L1*bb, CP), bf16.
    y1 = jnp.dot(p1_ref[...], w1_ref[...], preferred_element_type=f32)
    y1 = jnp.maximum(y1 + b1_ref[...], 0.0)                  # complex_relu
    y1_s[...] = y1.astype(y1_s.dtype)                        # (L1*bb, 2*CP) bf16, VMEM

    # ---- conv2: 5 shifted-window taps against stacked complex weights
    #      [[Wr, Wi], [-Wi, Wr]].  Time-major rows -> each tap is a contiguous,
    #      sublane-aligned slice of y1_s (no copy).
    acc = jnp.dot(y1_s[pl.ds(0, L2 * bb), :], w2_ref[0],
                  preferred_element_type=f32)
    for k in range(1, K2):
        acc = acc + jnp.dot(y1_s[pl.ds(k * bb, L2 * bb), :], w2_ref[k],
                            preferred_element_type=f32)
    y2 = jnp.maximum(acc + b2_ref[...], 0.0)                  # (L2*bb, 2*CP) f32

    # ---- magnitude
    yr = y2[:, :CP]
    yi = y2[:, CP:]
    mag_s[...] = jnp.sqrt(yr * yr + yi * yi).astype(mag_s.dtype)   # (L2*bb, CP) bf16

    # ---- fc1: channel-major flatten folded into per-time-step weight slabs;
    #      each time step is a batched (bb, CP) @ (CP, CP) accumulating matmul
    #      (time-major -> contiguous slices; MRB accumulate on v7x).
    h = jnp.dot(mag_s[pl.ds(0, bb), :], wf1_ref[0], preferred_element_type=f32)
    for t in range(1, L2):
        h = h + jnp.dot(mag_s[pl.ds(t * bb, bb), :], wf1_ref[t],
                        preferred_element_type=f32)
    h = jnp.maximum(h + bf1_ref[...], 0.0)                    # (bb, CP) f32

    # ---- fc2 (classes zero-padded to 128 lanes; sliced back in the wrapper)
    out_ref[...] = (jnp.dot(h.astype(wf2_ref.dtype), wf2_ref[...],
                            preferred_element_type=f32) + bf2_ref[...])


# ----------------------------------------------------------------------------- glue
def _conv1_patches(x):
    """x: (N, 2, 500) -> conv1 im2col patches (N, L1, CP), zero-padded to 128 lanes.

    k=40, s=20 => each window is two consecutive length-20 blocks, so im2col is a
    reshape + slice + concat (gather-free, tiny)."""
    n, c, l = x.shape
    nblk = l // S1                                                 # 25
    xb = x.reshape(n, c, nblk, S1)
    p = jnp.concatenate([xb[:, :, :L1, :], xb[:, :, 1:L1 + 1, :]], axis=-1)  # (N,C,L1,K1)
    p = jnp.transpose(p, (0, 2, 1, 3)).reshape(n, L1, c * K1)                # (N,L1,80)
    return jnp.pad(p, ((0, 0), (0, 0), (0, CP - c * K1)))


def pack_params(params, n_classes):
    """Pack/pad weights ONCE at init (hoisted out of the per-call forward)."""
    f32, bf16 = jnp.float32, jnp.bfloat16
    cin_k = 2 * K1                                                 # 80
    # conv1: stacked [Wr | Wi]; rows = PyTorch (Cin, K) flattening, zero-padded
    wr1 = params["w1r"].reshape(100, cin_k).T                      # (80, 100)
    wi1 = params["w1i"].reshape(100, cin_k).T
    w1s = jnp.zeros((CP, 2 * CP), f32)
    w1s = w1s.at[:cin_k, :100].set(wr1).at[:cin_k, CP:CP + 100].set(wi1)
    b1s = jnp.zeros((1, 2 * CP), f32)
    b1s = b1s.at[0, :100].set(params["b1r"] - params["b1i"])
    b1s = b1s.at[0, CP:CP + 100].set(params["b1r"] + params["b1i"])
    # conv2: per-tap stacked complex weight [[Wr, Wi], [-Wi, Wr]]
    w2s = jnp.zeros((K2, 2 * CP, 2 * CP), f32)
    for k in range(K2):
        wr = params["w2r"][:, :, k].T                              # (Cin, Cout)
        wi = params["w2i"][:, :, k].T
        w2s = (w2s.at[k, :100, :100].set(wr)
                   .at[k, :100, CP:CP + 100].set(wi)
                   .at[k, CP:CP + 100, :100].set(-wi)
                   .at[k, CP:CP + 100, CP:CP + 100].set(wr))
    b2s = jnp.zeros((1, 2 * CP), f32)
    b2s = b2s.at[0, :100].set(params["b2r"] - params["b2i"])
    b2s = b2s.at[0, CP:CP + 100].set(params["b2r"] + params["b2i"])
    # fc1: PyTorch flat feature index is c*L2 + t; regroup into per-time slabs
    wf1 = params["fc1_w"].reshape(100, 100, L2)                    # (j, c, t)
    wf1 = jnp.transpose(wf1, (2, 1, 0))                            # (t, c, j)
    wfc1 = jnp.zeros((L2, CP, CP), f32).at[:, :100, :100].set(wf1)
    bfc1 = jnp.zeros((1, CP), f32).at[0, :100].set(params["fc1_b"])
    # fc2
    wfc2 = jnp.zeros((CP, CP), f32).at[:100, :n_classes].set(params["fc2_w"].T)
    bfc2 = jnp.zeros((1, CP), f32).at[0, :n_classes].set(params["fc2_b"])
    # matmul operands in bf16 (f32 accumulation in-kernel); biases stay f32
    return (w1s.astype(bf16), b1s, w2s.astype(bf16), b2s,
            wfc1.astype(bf16), bfc1, wfc2.astype(bf16), bfc2)


@functools.partial(jax.jit, static_argnames=("n_classes",))
def cvcnn_forward(x, packed, n_classes):
    """x: (N, 2, 500) real float32 (PyTorch casts to complex64 -> imag part is 0)."""
    w1s, b1s, w2s, b2s, wfc1, bfc1, wfc2, bfc2 = packed
    n = x.shape[0]

    # Batch-block size: multiple of 16 (bf16 sublane packing), capped at 128,
    # chosen so that there are >=2 grid steps when the batch allows it.
    bb = max(16, min(128, _round_up((n + 1) // 2, 16)))
    g = -(-n // bb)
    n_pad = g * bb

    # conv1 im2col, pad batch, reorder to time-major rows (row = t*bb + b), bf16.
    p1 = _conv1_patches(x.astype(jnp.float32))                     # (N, L1, CP)
    if n_pad != n:
        p1 = jnp.pad(p1, ((0, n_pad - n), (0, 0), (0, 0)))
    p1 = (p1.reshape(g, bb, L1, CP)
             .transpose(0, 2, 1, 3)
             .reshape(g, L1 * bb, CP)
             .astype(jnp.bfloat16))

    def full(shape):
        nd = len(shape)
        return pl.BlockSpec(shape, lambda i, _nd=nd: (0,) * _nd)

    kernel = functools.partial(_fused_kernel, bb=bb)
    out = pl.pallas_call(
        kernel,
        grid=(g,),
        in_specs=[
            pl.BlockSpec((None, L1 * bb, CP), lambda i: (i, 0, 0)),  # conv1 patches
            full((CP, 2 * CP)), full((1, 2 * CP)),                   # conv1 W, b
            full((K2, 2 * CP, 2 * CP)), full((1, 2 * CP)),           # conv2 W, b
            full((L2, CP, CP)), full((1, CP)),                       # fc1 W, b
            full((CP, CP)), full((1, CP)),                           # fc2 W, b
        ],
        out_specs=pl.BlockSpec((bb, CP), lambda i: (i, 0)),
        out_shape=jax.ShapeDtypeStruct((n_pad, CP), jnp.float32),
        scratch_shapes=[pltpu.VMEM((L1 * bb, 2 * CP), jnp.bfloat16),  # conv1 output
                        pltpu.VMEM((L2 * bb, CP), jnp.bfloat16)],     # |conv2 output|
        compiler_params=pltpu.CompilerParams(
            dimension_semantics=("parallel",),            # megacore / 2nd TC on v7x
            vmem_limit_bytes=32 * 1024 * 1024),           # fits v5e scoped & v7x 64MiB
    )(p1, w1s, b1s, w2s, b2s, wfc1, bfc1, wfc2, bfc2)
    return out[:n, :n_classes]


# ----------------------------------------------------------------------------- params
def _init_params(key, n_classes):
    ks = jax.random.split(key, 12)
    s = lambda fan_in: 1.0 / jnp.sqrt(jnp.float32(fan_in))
    return {
        # ComplexConv1d(2, 100, k=40): two real convs (Cout, Cin, K) + biases
        "w1r": jax.random.normal(ks[0], (100, 2, 40), jnp.float32) * s(2 * 40),
        "w1i": jax.random.normal(ks[1], (100, 2, 40), jnp.float32) * s(2 * 40),
        "b1r": jax.random.normal(ks[2], (100,), jnp.float32) * s(2 * 40),
        "b1i": jax.random.normal(ks[3], (100,), jnp.float32) * s(2 * 40),
        # ComplexConv1d(100, 100, k=5)
        "w2r": jax.random.normal(ks[4], (100, 100, 5), jnp.float32) * s(100 * 5),
        "w2i": jax.random.normal(ks[5], (100, 100, 5), jnp.float32) * s(100 * 5),
        "b2r": jax.random.normal(ks[6], (100,), jnp.float32) * s(100 * 5),
        "b2i": jax.random.normal(ks[7], (100,), jnp.float32) * s(100 * 5),
        # fc1: Linear(2000, 100); fc2: Linear(100, n_classes)
        "fc1_w": jax.random.normal(ks[8], (100, 2000), jnp.float32) * s(2000),
        "fc1_b": jax.random.normal(ks[9], (100,), jnp.float32) * s(2000),
        "fc2_w": jax.random.normal(ks[10], (n_classes, 100), jnp.float32) * s(100),
        "fc2_b": jax.random.normal(ks[11], (n_classes,), jnp.float32) * s(100),
    }


# ----------------------------------------------------------------------------- main
if __name__ == "__main__":
    key = jax.random.PRNGKey(0)
    k_x, k_p = jax.random.split(key)
    n_classes = 10
    batch = 2
    # fc1 expects 100*20 features => conv2 length 20 => conv1 length 24 => input 500
    x = jax.random.normal(k_x, (batch, 2, 500), jnp.float32)
    params = _init_params(k_p, n_classes)
    packed = pack_params(params, n_classes)          # packed/padded ONCE at init

    out = cvcnn_forward(x, packed, n_classes=n_classes)
    out = jax.block_until_ready(out)
    assert out.shape == (batch, n_classes), out.shape
    assert bool(jnp.all(jnp.isfinite(out)))
    print("KERNEL_OK")
</pallas_src>

<mosaic_0001>
module attributes {stable_mosaic.version = 11 : i64} {
  func.func @_fused_kernel(%arg0: i32, %arg1: memref<1x384x128xbf16, #tpu.memory_space<vmem>>, %arg2: memref<128x256xbf16, #tpu.memory_space<vmem>>, %arg3: memref<1x256xf32, #tpu.memory_space<vmem>>, %arg4: memref<5x256x256xbf16, #tpu.memory_space<vmem>>, %arg5: memref<1x256xf32, #tpu.memory_space<vmem>>, %arg6: memref<20x128x128xbf16, #tpu.memory_space<vmem>>, %arg7: memref<1x128xf32, #tpu.memory_space<vmem>>, %arg8: memref<128x128xbf16, #tpu.memory_space<vmem>>, %arg9: memref<1x128xf32, #tpu.memory_space<vmem>>, %arg10: memref<16x128xf32, #tpu.memory_space<vmem>>, %arg11: memref<384x256xbf16, #tpu.memory_space<vmem>>, %arg12: memref<320x128xbf16, #tpu.memory_space<vmem>>) attributes {dimension_semantics = [#tpu.dimension_semantics<parallel>], iteration_bounds = array<i64: 1>, scalar_prefetch = 0 : i64, scratch_operands = 2 : i64, tpu.core_type = #tpu.core_type<tc>, window_params = [{transform_indices = @transform_0, window_bounds = array<i64: 1, 384, 128>}, {pipeline_mode = #tpu.pipeline_mode<synchronous>, transform_indices = @transform_1, window_bounds = array<i64: 128, 256>}, {pipeline_mode = #tpu.pipeline_mode<synchronous>, transform_indices = @transform_2, window_bounds = array<i64: 1, 256>}, {pipeline_mode = #tpu.pipeline_mode<synchronous>, transform_indices = @transform_3, window_bounds = array<i64: 5, 256, 256>}, {pipeline_mode = #tpu.pipeline_mode<synchronous>, transform_indices = @transform_4, window_bounds = array<i64: 1, 256>}, {pipeline_mode = #tpu.pipeline_mode<synchronous>, transform_indices = @transform_5, window_bounds = array<i64: 20, 128, 128>}, {pipeline_mode = #tpu.pipeline_mode<synchronous>, transform_indices = @transform_6, window_bounds = array<i64: 1, 128>}, {pipeline_mode = #tpu.pipeline_mode<synchronous>, transform_indices = @transform_7, window_bounds = array<i64: 128, 128>}, {pipeline_mode = #tpu.pipeline_mode<synchronous>, transform_indices = @transform_8, window_bounds = array<i64: 1, 128>}, {transform_indices = @transform_9, window_bounds = array<i64: 16, 128>}]} {
    %c0 = arith.constant 0 : index
    %c0_0 = arith.constant 0 : index
    %c0_1 = arith.constant 0 : index
    %0 = vector.load %arg1[%c0, %c0_0, %c0_1] : memref<1x384x128xbf16, #tpu.memory_space<vmem>>, vector<1x384x128xbf16>
    %1 = vector.shape_cast %0 : vector<1x384x128xbf16> to vector<384x128xbf16>
    %c0_2 = arith.constant 0 : index
    %c0_3 = arith.constant 0 : index
    %2 = vector.load %arg2[%c0_2, %c0_3] : memref<128x256xbf16, #tpu.memory_space<vmem>>, vector<128x256xbf16>
    %cst = arith.constant dense<0.000000e+00> : vector<384x256xf32>
    %3 = tpu.matmul %1, %2, %cst {dimension_numbers = #tpu.dot_dimension_numbers<[1], [0], [0], [1], [0, 0, 1, 1], [], []>} : vector<384x128xbf16>, vector<128x256xbf16>, vector<384x256xf32> -> vector<384x256xf32>
    %c0_4 = arith.constant 0 : index
    %c0_5 = arith.constant 0 : index
    %4 = vector.load %arg3[%c0_4, %c0_5] : memref<1x256xf32, #tpu.memory_space<vmem>>, vector<1x256xf32>
    %5 = vector.broadcast %4 : vector<1x256xf32> to vector<384x256xf32>
    %6 = arith.addf %3, %5 : vector<384x256xf32>
    %cst_6 = arith.constant 0.000000e+00 : f32
    %7 = vector.broadcast %cst_6 : f32 to vector<384x256xf32>
    %8 = arith.maximumf %6, %7 : vector<384x256xf32>
    %9 = arith.truncf %8 : vector<384x256xf32> to vector<384x256xbf16>
    %c0_7 = arith.constant 0 : index
    %c0_8 = arith.constant 0 : index
    %10 = vector.load %arg11[%c0_7, %c0_8] : memref<384x256xbf16, #tpu.memory_space<vmem>>, vector<384x256xbf16>
    tpu.vector_store %arg11[%c0_7, %c0_8], %9 {strides = array<i32>} : memref<384x256xbf16, #tpu.memory_space<vmem>>, vector<384x256xbf16>,
    %c0_9 = arith.constant 0 : index
    %c0_10 = arith.constant 0 : index
    %11 = vector.load %arg11[%c0_9, %c0_10] : memref<384x256xbf16, #tpu.memory_space<vmem>>, vector<320x256xbf16>
    %c0_11 = arith.constant 0 : index
    %c0_12 = arith.constant 0 : index
    %c0_13 = arith.constant 0 : index
    %12 = vector.load %arg4[%c0_11, %c0_12, %c0_13] : memref<5x256x256xbf16, #tpu.memory_space<vmem>>, vector<1x256x256xbf16>
    %13 = vector.shape_cast %12 : vector<1x256x256xbf16> to vector<256x256xbf16>
    %cst_14 = arith.constant dense<0.000000e+00> : vector<320x256xf32>
    %14 = tpu.matmul %11, %13, %cst_14 {dimension_numbers = #tpu.dot_dimension_numbers<[1], [0], [0], [1], [0, 0, 1, 1], [], []>} : vector<320x256xbf16>, vector<256x256xbf16>, vector<320x256xf32> -> vector<320x256xf32>
    %c16 = arith.constant 16 : index
    %c0_15 = arith.constant 0 : index
    %15 = vector.load %arg11[%c16, %c0_15] : memref<384x256xbf16, #tpu.memory_space<vmem>>, vector<320x256xbf16>
    %c1 = arith.constant 1 : index
    %c0_16 = arith.constant 0 : index
    %c0_17 = arith.constant 0 : index
    %16 = vector.load %arg4[%c1, %c0_16, %c0_17] : memref<5x256x256xbf16, #tpu.memory_space<vmem>>, vector<1x256x256xbf16>
    %17 = vector.shape_cast %16 : vector<1x256x256xbf16> to vector<256x256xbf16>
    %cst_18 = arith.constant dense<0.000000e+00> : vector<320x256xf32>
    %18 = tpu.matmul %15, %17, %cst_18 {dimension_numbers = #tpu.dot_dimension_numbers<[1], [0], [0], [1], [0, 0, 1, 1], [], []>} : vector<320x256xbf16>, vector<256x256xbf16>, vector<320x256xf32> -> vector<320x256xf32>
    %19 = arith.addf %14, %18 : vector<320x256xf32>
    %c32 = arith.constant 32 : index
    %c0_19 = arith.constant 0 : index
    %20 = vector.load %arg11[%c32, %c0_19] : memref<384x256xbf16, #tpu.memory_space<vmem>>, vector<320x256xbf16>
    %c2 = arith.constant 2 : index
    %c0_20 = arith.constant 0 : index
    %c0_21 = arith.constant 0 : index
    %21 = vector.load %arg4[%c2, %c0_20, %c0_21] : memref<5x256x256xbf16, #tpu.memory_space<vmem>>, vector<1x256x256xbf16>
    %22 = vector.shape_cast %21 : vector<1x256x256xbf16> to vector<256x256xbf16>
    %cst_22 = arith.constant dense<0.000000e+00> : vector<320x256xf32>
    %23 = tpu.matmul %20, %22, %cst_22 {dimension_numbers = #tpu.dot_dimension_numbers<[1], [0], [0], [1], [0, 0, 1, 1], [], []>} : vector<320x256xbf16>, vector<256x256xbf16>, vector<320x256xf32> -> vector<320x256xf32>
    %24 = arith.addf %19, %23 : vector<320x256xf32>
    %c48 = arith.constant 48 : index
    %c0_23 = arith.constant 0 : index
    %25 = vector.load %arg11[%c48, %c0_23] : memref<384x256xbf16, #tpu.memory_space<vmem>>, vector<320x256xbf16>
    %c3 = arith.constant 3 : index
    %c0_24 = arith.constant 0 : index
    %c0_25 = arith.constant 0 : index
    %26 = vector.load %arg4[%c3, %c0_24, %c0_25] : memref<5x256x256xbf16, #tpu.memory_space<vmem>>, vector<1x256x256xbf16>
    %27 = vector.shape_cast %26 : vector<1x256x256xbf16> to vector<256x256xbf16>
    %cst_26 = arith.constant dense<0.000000e+00> : vector<320x256xf32>
    %28 = tpu.matmul %25, %27, %cst_26 {dimension_numbers = #tpu.dot_dimension_numbers<[1], [0], [0], [1], [0, 0, 1, 1], [], []>} : vector<320x256xbf16>, vector<256x256xbf16>, vector<320x256xf32> -> vector<320x256xf32>
    %29 = arith.addf %24, %28 : vector<320x256xf32>
    %c64 = arith.constant 64 : index
    %c0_27 = arith.constant 0 : index
    %30 = vector.load %arg11[%c64, %c0_27] : memref<384x256xbf16, #tpu.memory_space<vmem>>, vector<320x256xbf16>
    %c4 = arith.constant 4 : index
    %c0_28 = arith.constant 0 : index
    %c0_29 = arith.constant 0 : index
    %31 = vector.load %arg4[%c4, %c0_28, %c0_29] : memref<5x256x256xbf16, #tpu.memory_space<vmem>>, vector<1x256x256xbf16>
    %32 = vector.shape_cast %31 : vector<1x256x256xbf16> to vector<256x256xbf16>
    %cst_30 = arith.constant dense<0.000000e+00> : vector<320x256xf32>
    %33 = tpu.matmul %30, %32, %cst_30 {dimension_numbers = #tpu.dot_dimension_numbers<[1], [0], [0], [1], [0, 0, 1, 1], [], []>} : vector<320x256xbf16>, vector<256x256xbf16>, vector<320x256xf32> -> vector<320x256xf32>
    %34 = arith.addf %29, %33 : vector<320x256xf32>
    %c0_31 = arith.constant 0 : index
    %c0_32 = arith.constant 0 : index
    %35 = vector.load %arg5[%c0_31, %c0_32] : memref<1x256xf32, #tpu.memory_space<vmem>>, vector<1x256xf32>
    %36 = vector.broadcast %35 : vector<1x256xf32> to vector<320x256xf32>
    %37 = arith.addf %34, %36 : vector<320x256xf32>
    %cst_33 = arith.constant 0.000000e+00 : f32
    %38 = vector.broadcast %cst_33 : f32 to vector<320x256xf32>
    %39 = arith.maximumf %37, %38 : vector<320x256xf32>
    %40 = vector.extract_strided_slice %39 {offsets = [0, 0], sizes = [320, 128], strides = [1, 1]} : vector<320x256xf32> to vector<320x128xf32>
    %41 = vector.extract_strided_slice %39 {offsets = [0, 128], sizes = [320, 128], strides = [1, 1]} : vector<320x256xf32> to vector<320x128xf32>
    %42 = arith.mulf %40, %40 : vector<320x128xf32>
    %43 = arith.mulf %41, %41 : vector<320x128xf32>
    %44 = arith.addf %42, %43 : vector<320x128xf32>
    %45 = math.sqrt %44 : vector<320x128xf32>
    %46 = arith.truncf %45 : vector<320x128xf32> to vector<320x128xbf16>
    %c0_34 = arith.constant 0 : index
    %c0_35 = arith.constant 0 : index
    %47 = vector.load %arg12[%c0_34, %c0_35] : memref<320x128xbf16, #tpu.memory_space<vmem>>, vector<320x128xbf16>
    tpu.vector_store %arg12[%c0_34, %c0_35], %46 {strides = array<i32>} : memref<320x128xbf16, #tpu.memory_space<vmem>>, vector<320x128xbf16>,
    %c0_36 = arith.constant 0 : index
    %c0_37 = arith.constant 0 : index
    %48 = vector.load %arg12[%c0_36, %c0_37] : memref<320x128xbf16, #tpu.memory_space<vmem>>, vector<16x128xbf16>
    %c0_38 = arith.constant 0 : index
    %c0_39 = arith.constant 0 : index
    %c0_40 = arith.constant 0 : index
    %49 = vector.load %arg6[%c0_38, %c0_39, %c0_40] : memref<20x128x128xbf16, #tpu.memory_space<vmem>>, vector<1x128x128xbf16>
    %50 = vector.shape_cast %49 : vector<1x128x128xbf16> to vector<128x128xbf16>
    %cst_41 = arith.constant dense<0.000000e+00> : vector<16x128xf32>
    %51 = tpu.matmul %48, %50, %cst_41 {dimension_numbers = #tpu.dot_dimension_numbers<[1], [0], [0], [1], [0, 0, 1, 1], [], []>} : vector<16x128xbf16>, vector<128x128xbf16>, vector<16x128xf32> -> vector<16x128xf32>
    %c16_42 = arith.constant 16 : index
    %c0_43 = arith.constant 0 : index
    %52 = vector.load %arg12[%c16_42, %c0_43] : memref<320x128xbf16, #tpu.memory_space<vmem>>, vector<16x128xbf16>
    %c1_44 = arith.constant 1 : index
    %c0_45 = arith.constant 0 : index
    %c0_46 = arith.constant 0 : index
    %53 = vector.load %arg6[%c1_44, %c0_45, %c0_46] : memref<20x128x128xbf16, #tpu.memory_space<vmem>>, vector<1x128x128xbf16>
    %54 = vector.shape_cast %53 : vector<1x128x128xbf16> to vector<128x128xbf16>
    %cst_47 = arith.constant dense<0.000000e+00> : vector<16x128xf32>
    %55 = tpu.matmul %52, %54, %cst_47 {dimension_numbers = #tpu.dot_dimension_numbers<[1], [0], [0], [1], [0, 0, 1, 1], [], []>} : vector<16x128xbf16>, vector<128x128xbf16>, vector<16x128xf32> -> vector<16x128xf32>
    %56 = arith.addf %51, %55 : vector<16x128xf32>
    %c32_48 = arith.constant 32 : index
    %c0_49 = arith.constant 0 : index
    %57 = vector.load %arg12[%c32_48, %c0_49] : memref<320x128xbf16, #tpu.memory_space<vmem>>, vector<16x128xbf16>
    %c2_50 = arith.constant 2 : index
    %c0_51 = arith.constant 0 : index
    %c0_52 = arith.constant 0 : index
    %58 = vector.load %arg6[%c2_50, %c0_51, %c0_52] : memref<20x128x128xbf16, #tpu.memory_space<vmem>>, vector<1x128x128xbf16>
    %59 = vector.shape_cast %58 : vector<1x128x128xbf16> to vector<128x128xbf16>
    %cst_53 = arith.constant dense<0.000000e+00> : vector<16x128xf32>
    %60 = tpu.matmul %57, %59, %cst_53 {dimension_numbers = #tpu.dot_dimension_numbers<[1], [0], [0], [1], [0, 0, 1, 1], [], []>} : vector<16x128xbf16>, vector<128x128xbf16>, vector<16x128xf32> -> vector<16x128xf32>
    %61 = arith.addf %56, %60 : vector<16x128xf32>
    %c48_54 = arith.constant 48 : index
    %c0_55 = arith.constant 0 : index
    %62 = vector.load %arg12[%c48_54, %c0_55] : memref<320x128xbf16, #tpu.memory_space<vmem>>, vector<16x128xbf16>
    %c3_56 = arith.constant 3 : index
    %c0_57 = arith.constant 0 : index
    %c0_58 = arith.constant 0 : index
    %63 = vector.load %arg6[%c3_56, %c0_57, %c0_58] : memref<20x128x128xbf16, #tpu.memory_space<vmem>>, vector<1x128x128xbf16>
    %64 = vector.shape_cast %63 : vector<1x128x128xbf16> to vector<128x128xbf16>
    %cst_59 = arith.constant dense<0.000000e+00> : vector<16x128xf32>
    %65 = tpu.matmul %62, %64, %cst_59 {dimension_numbers = #tpu.dot_dimension_numbers<[1], [0], [0], [1], [0, 0, 1, 1], [], []>} : vector<16x128xbf16>, vector<128x128xbf16>, vector<16x128xf32> -> vector<16x128xf32>
    %66 = arith.addf %61, %65 : vector<16x128xf32>
    %c64_60 = arith.constant 64 : index
    %c0_61 = arith.constant 0 : index
    %67 = vector.load %arg12[%c64_60, %c0_61] : memref<320x128xbf16, #tpu.memory_space<vmem>>, vector<16x128xbf16>
    %c4_62 = arith.constant 4 : index
    %c0_63 = arith.constant 0 : index
    %c0_64 = arith.constant 0 : index
    %68 = vector.load %arg6[%c4_62, %c0_63, %c0_64] : memref<20x128x128xbf16, #tpu.memory_space<vmem>>, vector<1x128x128xbf16>
    %69 = vector.shape_cast %68 : vector<1x128x128xbf16> to vector<128x128xbf16>
    %cst_65 = arith.constant dense<0.000000e+00> : vector<16x128xf32>
    %70 = tpu.matmul %67, %69, %cst_65 {dimension_numbers = #tpu.dot_dimension_numbers<[1], [0], [0], [1], [0, 0, 1, 1], [], []>} : vector<16x128xbf16>, vector<128x128xbf16>, vector<16x128xf32> -> vector<16x128xf32>
    %71 = arith.addf %66, %70 : vector<16x128xf32>
    %c80 = arith.constant 80 : index
    %c0_66 = arith.constant 0 : index
    %72 = vector.load %arg12[%c80, %c0_66] : memref<320x128xbf16, #tpu.memory_space<vmem>>, vector<16x128xbf16>
    %c5 = arith.constant 5 : index
    %c0_67 = arith.constant 0 : index
    %c0_68 = arith.constant 0 : index
    %73 = vector.load %arg6[%c5, %c0_67, %c0_68] : memref<20x128x128xbf16, #tpu.memory_space<vmem>>, vector<1x128x128xbf16>
    %74 = vector.shape_cast %73 : vector<1x128x128xbf16> to vector<128x128xbf16>
    %cst_69 = arith.constant dense<0.000000e+00> : vector<16x128xf32>
    %75 = tpu.matmul %72, %74, %cst_69 {dimension_numbers = #tpu.dot_dimension_numbers<[1], [0], [0], [1], [0, 0, 1, 1], [], []>} : vector<16x128xbf16>, vector<128x128xbf16>, vector<16x128xf32> -> vector<16x128xf32>
    %76 = arith.addf %71, %75 : vector<16x128xf32>
    %c96 = arith.constant 96 : index
    %c0_70 = arith.constant 0 : index
    %77 = vector.load %arg12[%c96, %c0_70] : memref<320x128xbf16, #tpu.memory_space<vmem>>, vector<16x128xbf16>
    %c6 = arith.constant 6 : index
    %c0_71 = arith.constant 0 : index
    %c0_72 = arith.constant 0 : index
    %78 = vector.load %arg6[%c6, %c0_71, %c0_72] : memref<20x128x128xbf16, #tpu.memory_space<vmem>>, vector<1x128x128xbf16>
    %79 = vector.shape_cast %78 : vector<1x128x128xbf16> to vector<128x128xbf16>
    %cst_73 = arith.constant dense<0.000000e+00> : vector<16x128xf32>
    %80 = tpu.matmul %77, %79, %cst_73 {dimension_numbers = #tpu.dot_dimension_numbers<[1], [0], [0], [1], [0, 0, 1, 1], [], []>} : vector<16x128xbf16>, vector<128x128xbf16>, vector<16x128xf32> -> vector<16x128xf32>
    %81 = arith.addf %76, %80 : vector<16x128xf32>
    %c112 = arith.constant 112 : index
    %c0_74 = arith.constant 0 : index
    %82 = vector.load %arg12[%c112, %c0_74] : memref<320x128xbf16, #tpu.memory_space<vmem>>, vector<16x128xbf16>
    %c7 = arith.constant 7 : index
    %c0_75 = arith.constant 0 : index
    %c0_76 = arith.constant 0 : index
    %83 = vector.load %arg6[%c7, %c0_75, %c0_76] : memref<20x128x128xbf16, #tpu.memory_space<vmem>>, vector<1x128x128xbf16>
    %84 = vector.shape_cast %83 : vector<1x128x128xbf16> to vector<128x128xbf16>
    %cst_77 = arith.constant dense<0.000000e+00> : vector<16x128xf32>
    %85 = tpu.matmul %82, %84, %cst_77 {dimension_numbers = #tpu.dot_dimension_numbers<[1], [0], [0], [1], [0, 0, 1, 1], [], []>} : vector<16x128xbf16>, vector<128x128xbf16>, vector<16x128xf32> -> vector<16x128xf32>
    %86 = arith.addf %81, %85 : vector<16x128xf32>
    %c128 = arith.constant 128 : index
    %c0_78 = arith.constant 0 : index
    %87 = vector.load %arg12[%c128, %c0_78] : memref<320x128xbf16, #tpu.memory_space<vmem>>, vector<16x128xbf16>
    %c8 = arith.constant 8 : index
    %c0_79 = arith.constant 0 : index
    %c0_80 = arith.constant 0 : index
    %88 = vector.load %arg6[%c8, %c0_79, %c0_80] : memref<20x128x128xbf16, #tpu.memory_space<vmem>>, vector<1x128x128xbf16>
    %89 = vector.shape_cast %88 : vector<1x128x128xbf16> to vector<128x128xbf16>
    %cst_81 = arith.constant dense<0.000000e+00> : vector<16x128xf32>
    %90 = tpu.matmul %87, %89, %cst_81 {dimension_numbers = #tpu.dot_dimension_numbers<[1], [0], [0], [1], [0, 0, 1, 1], [], []>} : vector<16x128xbf16>, vector<128x128xbf16>, vector<16x128xf32> -> vector<16x128xf32>
    %91 = arith.addf %86, %90 : vector<16x128xf32>
    %c144 = arith.constant 144 : index
    %c0_82 = arith.constant 0 : index
    %92 = vector.load %arg12[%c144, %c0_82] : memref<320x128xbf16, #tpu.memory_space<vmem>>, vector<16x128xbf16>
    %c9 = arith.constant 9 : index
    %c0_83 = arith.constant 0 : index
    %c0_84 = arith.constant 0 : index
    %93 = vector.load %arg6[%c9, %c0_83, %c0_84] : memref<20x128x128xbf16, #tpu.memory_space<vmem>>, vector<1x128x128xbf16>
    %94 = vector.shape_cast %93 : vector<1x128x128xbf16> to vector<128x128xbf16>
    %cst_85 = arith.constant dense<0.000000e+00> : vector<16x128xf32>
    %95 = tpu.matmul %92, %94, %cst_85 {dimension_numbers = #tpu.dot_dimension_numbers<[1], [0], [0], [1], [0, 0, 1, 1], [], []>} : vector<16x128xbf16>, vector<128x128xbf16>, vector<16x128xf32> -> vector<16x128xf32>
    %96 = arith.addf %91, %95 : vector<16x128xf32>
    %c160 = arith.constant 160 : index
    %c0_86 = arith.constant 0 : index
    %97 = vector.load %arg12[%c160, %c0_86] : memref<320x128xbf16, #tpu.memory_space<vmem>>, vector<16x128xbf16>
    %c10 = arith.constant 10 : index
    %c0_87 = arith.constant 0 : index
    %c0_88 = arith.constant 0 : index
    %98 = vector.load %arg6[%c10, %c0_87, %c0_88] : memref<20x128x128xbf16, #tpu.memory_space<vmem>>, vector<1x128x128xbf16>
    %99 = vector.shape_cast %98 : vector<1x128x128xbf16> to vector<128x128xbf16>
    %cst_89 = arith.constant dense<0.000000e+00> : vector<16x128xf32>
    %100 = tpu.matmul %97, %99, %cst_89 {dimension_numbers = #tpu.dot_dimension_numbers<[1], [0], [0], [1], [0, 0, 1, 1], [], []>} : vector<16x128xbf16>, vector<128x128xbf16>, vector<16x128xf32> -> vector<16x128xf32>
    %101 = arith.addf %96, %100 : vector<16x128xf32>
    %c176 = arith.constant 176 : index
    %c0_90 = arith.constant 0 : index
    %102 = vector.load %arg12[%c176, %c0_90] : memref<320x128xbf16, #tpu.memory_space<vmem>>, vector<16x128xbf16>
    %c11 = arith.constant 11 : index
    %c0_91 = arith.constant 0 : index
    %c0_92 = arith.constant 0 : index
    %103 = vector.load %arg6[%c11, %c0_91, %c0_92] : memref<20x128x128xbf16, #tpu.memory_space<vmem>>, vector<1x128x128xbf16>
    %104 = vector.shape_cast %103 : vector<1x128x128xbf16> to vector<128x128xbf16>
    %cst_93 = arith.constant dense<0.000000e+00> : vector<16x128xf32>
    %105 = tpu.matmul %102, %104, %cst_93 {dimension_numbers = #tpu.dot_dimension_numbers<[1], [0], [0], [1], [0, 0, 1, 1], [], []>} : vector<16x128xbf16>, vector<128x128xbf16>, vector<16x128xf32> -> vector<16x128xf32>
    %106 = arith.addf %101, %105 : vector<16x128xf32>
    %c192 = arith.constant 192 : index
    %c0_94 = arith.constant 0 : index
    %107 = vector.load %arg12[%c192, %c0_94] : memref<320x128xbf16, #tpu.memory_space<vmem>>, vector<16x128xbf16>
    %c12 = arith.constant 12 : index
    %c0_95 = arith.constant 0 : index
    %c0_96 = arith.constant 0 : index
    %108 = vector.load %arg6[%c12, %c0_95, %c0_96] : memref<20x128x128xbf16, #tpu.memory_space<vmem>>, vector<1x128x128xbf16>
    %109 = vector.shape_cast %108 : vector<1x128x128xbf16> to vector<128x128xbf16>
    %cst_97 = arith.constant dense<0.000000e+00> : vector<16x128xf32>
    %110 = tpu.matmul %107, %109, %cst_97 {dimension_numbers = #tpu.dot_dimension_numbers<[1], [0], [0], [1], [0, 0, 1, 1], [], []>} : vector<16x128xbf16>, vector<128x128xbf16>, vector<16x128xf32> -> vector<16x128xf32>
    %111 = arith.addf %106, %110 : vector<16x128xf32>
    %c208 = arith.constant 208 : index
    %c0_98 = arith.constant 0 : index
    %112 = vector.load %arg12[%c208, %c0_98] : memref<320x128xbf16, #tpu.memory_space<vmem>>, vector<16x128xbf16>
    %c13 = arith.constant 13 : index
    %c0_99 = arith.constant 0 : index
    %c0_100 = arith.constant 0 : index
    %113 = vector.load %arg6[%c13, %c0_99, %c0_100] : memref<20x128x128xbf16, #tpu.memory_space<vmem>>, vector<1x128x128xbf16>
    %114 = vector.shape_cast %113 : vector<1x128x128xbf16> to vector<128x128xbf16>
    %cst_101 = arith.constant dense<0.000000e+00> : vector<16x128xf32>
    %115 = tpu.matmul %112, %114, %cst_101 {dimension_numbers = #tpu.dot_dimension_numbers<[1], [0], [0], [1], [0, 0, 1, 1], [], []>} : vector<16x128xbf16>, vector<128x128xbf16>, vector<16x128xf32> -> vector<16x128xf32>
    %116 = arith.addf %111, %115 : vector<16x128xf32>
    %c224 = arith.constant 224 : index
    %c0_102 = arith.constant 0 : index
    %117 = vector.load %arg12[%c224, %c0_102] : memref<320x128xbf16, #tpu.memory_space<vmem>>, vector<16x128xbf16>
    %c14 = arith.constant 14 : index
    %c0_103 = arith.constant 0 : index
    %c0_104 = arith.constant 0 : index
    %118 = vector.load %arg6[%c14, %c0_103, %c0_104] : memref<20x128x128xbf16, #tpu.memory_space<vmem>>, vector<1x128x128xbf16>
    %119 = vector.shape_cast %118 : vector<1x128x128xbf16> to vector<128x128xbf16>
    %cst_105 = arith.constant dense<0.000000e+00> : vector<16x128xf32>
    %120 = tpu.matmul %117, %119, %cst_105 {dimension_numbers = #tpu.dot_dimension_numbers<[1], [0], [0], [1], [0, 0, 1, 1], [], []>} : vector<16x128xbf16>, vector<128x128xbf16>, vector<16x128xf32> -> vector<16x128xf32>
    %121 = arith.addf %116, %120 : vector<16x128xf32>
    %c240 = arith.constant 240 : index
    %c0_106 = arith.constant 0 : index
    %122 = vector.load %arg12[%c240, %c0_106] : memref<320x128xbf16, #tpu.memory_space<vmem>>, vector<16x128xbf16>
    %c15 = arith.constant 15 : index
    %c0_107 = arith.constant 0 : index
    %c0_108 = arith.constant 0 : index
    %123 = vector.load %arg6[%c15, %c0_107, %c0_108] : memref<20x128x128xbf16, #tpu.memory_space<vmem>>, vector<1x128x128xbf16>
    %124 = vector.shape_cast %123 : vector<1x128x128xbf16> to vector<128x128xbf16>
    %cst_109 = arith.constant dense<0.000000e+00> : vector<16x128xf32>
    %125 = tpu.matmul %122, %124, %cst_109 {dimension_numbers = #tpu.dot_dimension_numbers<[1], [0], [0], [1], [0, 0, 1, 1], [], []>} : vector<16x128xbf16>, vector<128x128xbf16>, vector<16x128xf32> -> vector<16x128xf32>
    %126 = arith.addf %121, %125 : vector<16x128xf32>
    %c256 = arith.constant 256 : index
    %c0_110 = arith.constant 0 : index
    %127 = vector.load %arg12[%c256, %c0_110] : memref<320x128xbf16, #tpu.memory_space<vmem>>, vector<16x128xbf16>
    %c16_111 = arith.constant 16 : index
    %c0_112 = arith.constant 0 : index
    %c0_113 = arith.constant 0 : index
    %128 = vector.load %arg6[%c16_111, %c0_112, %c0_113] : memref<20x128x128xbf16, #tpu.memory_space<vmem>>, vector<1x128x128xbf16>
    %129 = vector.shape_cast %128 : vector<1x128x128xbf16> to vector<128x128xbf16>
    %cst_114 = arith.constant dense<0.000000e+00> : vector<16x128xf32>
    %130 = tpu.matmul %127, %129, %cst_114 {dimension_numbers = #tpu.dot_dimension_numbers<[1], [0], [0], [1], [0, 0, 1, 1], [], []>} : vector<16x128xbf16>, vector<128x128xbf16>, vector<16x128xf32> -> vector<16x128xf32>
    %131 = arith.addf %126, %130 : vector<16x128xf32>
    %c272 = arith.constant 272 : index
    %c0_115 = arith.constant 0 : index
    %132 = vector.load %arg12[%c272, %c0_115] : memref<320x128xbf16, #tpu.memory_space<vmem>>, vector<16x128xbf16>
    %c17 = arith.constant 17 : index
    %c0_116 = arith.constant 0 : index
    %c0_117 = arith.constant 0 : index
    %133 = vector.load %arg6[%c17, %c0_116, %c0_117] : memref<20x128x128xbf16, #tpu.memory_space<vmem>>, vector<1x128x128xbf16>
    %134 = vector.shape_cast %133 : vector<1x128x128xbf16> to vector<128x128xbf16>
    %cst_118 = arith.constant dense<0.000000e+00> : vector<16x128xf32>
    %135 = tpu.matmul %132, %134, %cst_118 {dimension_numbers = #tpu.dot_dimension_numbers<[1], [0], [0], [1], [0, 0, 1, 1], [], []>} : vector<16x128xbf16>, vector<128x128xbf16>, vector<16x128xf32> -> vector<16x128xf32>
    %136 = arith.addf %131, %135 : vector<16x128xf32>
    %c288 = arith.constant 288 : index
    %c0_119 = arith.constant 0 : index
    %137 = vector.load %arg12[%c288, %c0_119] : memref<320x128xbf16, #tpu.memory_space<vmem>>, vector<16x128xbf16>
    %c18 = arith.constant 18 : index
    %c0_120 = arith.constant 0 : index
    %c0_121 = arith.constant 0 : index
    %138 = vector.load %arg6[%c18, %c0_120, %c0_121] : memref<20x128x128xbf16, #tpu.memory_space<vmem>>, vector<1x128x128xbf16>
    %139 = vector.shape_cast %138 : vector<1x128x128xbf16> to vector<128x128xbf16>
    %cst_122 = arith.constant dense<0.000000e+00> : vector<16x128xf32>
    %140 = tpu.matmul %137, %139, %cst_122 {dimension_numbers = #tpu.dot_dimension_numbers<[1], [0], [0], [1], [0, 0, 1, 1], [], []>} : vector<16x128xbf16>, vector<128x128xbf16>, vector<16x128xf32> -> vector<16x128xf32>
    %141 = arith.addf %136, %140 : vector<16x128xf32>
    %c304 = arith.constant 304 : index
    %c0_123 = arith.constant 0 : index
    %142 = vector.load %arg12[%c304, %c0_123] : memref<320x128xbf16, #tpu.memory_space<vmem>>, vector<16x128xbf16>
    %c19 = arith.constant 19 : index
    %c0_124 = arith.constant 0 : index
    %c0_125 = arith.constant 0 : index
    %143 = vector.load %arg6[%c19, %c0_124, %c0_125] : memref<20x128x128xbf16, #tpu.memory_space<vmem>>, vector<1x128x128xbf16>
    %144 = vector.shape_cast %143 : vector<1x128x128xbf16> to vector<128x128xbf16>
    %cst_126 = arith.constant dense<0.000000e+00> : vector<16x128xf32>
    %145 = tpu.matmul %142, %144, %cst_126 {dimension_numbers = #tpu.dot_dimension_numbers<[1], [0], [0], [1], [0, 0, 1, 1], [], []>} : vector<16x128xbf16>, vector<128x128xbf16>, vector<16x128xf32> -> vector<16x128xf32>
    %146 = arith.addf %141, %145 : vector<16x128xf32>
    %c0_127 = arith.constant 0 : index
    %c0_128 = arith.constant 0 : index
    %147 = vector.load %arg7[%c0_127, %c0_128] : memref<1x128xf32, #tpu.memory_space<vmem>>, vector<1x128xf32>
    %148 = vector.broadcast %147 : vector<1x128xf32> to vector<16x128xf32>
    %149 = arith.addf %146, %148 : vector<16x128xf32>
    %cst_129 = arith.constant 0.000000e+00 : f32
    %150 = vector.broadcast %cst_129 : f32 to vector<16x128xf32>
    %151 = arith.maximumf %149, %150 : vector<16x128xf32>
    %152 = arith.truncf %151 : vector<16x128xf32> to vector<16x128xbf16>
    %c0_130 = arith.constant 0 : index
    %c0_131 = arith.constant 0 : index
    %153 = vector.load %arg8[%c0_130, %c0_131] : memref<128x128xbf16, #tpu.memory_space<vmem>>, vector<128x128xbf16>
    %cst_132 = arith.constant dense<0.000000e+00> : vector<16x128xf32>
    %154 = tpu.matmul %152, %153, %cst_132 {dimension_numbers = #tpu.dot_dimension_numbers<[1], [0], [0], [1], [0, 0, 1, 1], [], []>} : vector<16x128xbf16>, vector<128x128xbf16>, vector<16x128xf32> -> vector<16x128xf32>
    %c0_133 = arith.constant 0 : index
    %c0_134 = arith.constant 0 : index
    %155 = vector.load %arg9[%c0_133, %c0_134] : memref<1x128xf32, #tpu.memory_space<vmem>>, vector<1x128xf32>
    %156 = vector.broadcast %155 : vector<1x128xf32> to vector<16x128xf32>
    %157 = arith.addf %154, %156 : vector<16x128xf32>
    %c0_135 = arith.constant 0 : index
    %c0_136 = arith.constant 0 : index
    %158 = vector.load %arg10[%c0_135, %c0_136] : memref<16x128xf32, #tpu.memory_space<vmem>>, vector<16x128xf32>
    tpu.vector_store %arg10[%c0_135, %c0_136], %157 {strides = array<i32>} : memref<16x128xf32, #tpu.memory_space<vmem>>, vector<16x128xf32>,
    return
  }
  func.func @transform_0(%arg0: i32) -> (i32, i32, i32) {
    %c0_i32 = arith.constant 0 : i32
    %c0_i32_0 = arith.constant 0 : i32
    %c0_i32_1 = arith.constant 0 : i32
    return %arg0, %c0_i32, %c0_i32_0 : i32, i32, i32
  }
  func.func @transform_1(%arg0: i32) -> (i32, i32) {
    %c0_i32 = arith.constant 0 : i32
    %c0_i32_0 = arith.constant 0 : i32
    %c0_i32_1 = arith.constant 0 : i32
    return %c0_i32, %c0_i32_0 : i32, i32
  }
  func.func @transform_2(%arg0: i32) -> (i32, i32) {
    %c0_i32 = arith.constant 0 : i32
    %c0_i32_0 = arith.constant 0 : i32
    %c0_i32_1 = arith.constant 0 : i32
    return %c0_i32, %c0_i32_0 : i32, i32
  }
  func.func @transform_3(%arg0: i32) -> (i32, i32, i32) {
    %c0_i32 = arith.constant 0 : i32
    %c0_i32_0 = arith.constant 0 : i32
    %c0_i32_1 = arith.constant 0 : i32
    %c0_i32_2 = arith.constant 0 : i32
    return %c0_i32, %c0_i32_0, %c0_i32_1 : i32, i32, i32
  }
  func.func @transform_4(%arg0: i32) -> (i32, i32) {
    %c0_i32 = arith.constant 0 : i32
    %c0_i32_0 = arith.constant 0 : i32
    %c0_i32_1 = arith.constant 0 : i32
    return %c0_i32, %c0_i32_0 : i32, i32
  }
  func.func @transform_5(%arg0: i32) -> (i32, i32, i32) {
    %c0_i32 = arith.constant 0 : i32
    %c0_i32_0 = arith.constant 0 : i32
    %c0_i32_1 = arith.constant 0 : i32
    %c0_i32_2 = arith.constant 0 : i32
    return %c0_i32, %c0_i32_0, %c0_i32_1 : i32, i32, i32
  }
  func.func @transform_6(%arg0: i32) -> (i32, i32) {
    %c0_i32 = arith.constant 0 : i32
    %c0_i32_0 = arith.constant 0 : i32
    %c0_i32_1 = arith.constant 0 : i32
    return %c0_i32, %c0_i32_0 : i32, i32
  }
  func.func @transform_7(%arg0: i32) -> (i32, i32) {
    %c0_i32 = arith.constant 0 : i32
    %c0_i32_0 = arith.constant 0 : i32
    %c0_i32_1 = arith.constant 0 : i32
    return %c0_i32, %c0_i32_0 : i32, i32
  }
  func.func @transform_8(%arg0: i32) -> (i32, i32) {
    %c0_i32 = arith.constant 0 : i32
    %c0_i32_0 = arith.constant 0 : i32
    %c0_i32_1 = arith.constant 0 : i32
    return %c0_i32, %c0_i32_0 : i32, i32
  }
  func.func @transform_9(%arg0: i32) -> (i32, i32) {
    %c0_i32 = arith.constant 0 : i32
    %c0_i32_0 = arith.constant 0 : i32
    return %arg0, %c0_i32 : i32, i32
  }
}

</mosaic_0001>

<bundles_post_ra>
// kernel: cvcnn_forward.1
= control target key start
LH: loop header
LB: loop body
LE: loop exit
PB: predicated region body
PF: predicated region fallthrough
CT: control target
= control target key end

     0   :  { %14 = vsyncpa [#allocation5], 0  ;;  %s9592_s0 = inlined_call_operand.vmem [shape: bf16[1,384,128], index: 0, kind: input, shape index: {}]   ;;  %s9593_s1 = inlined_call_operand.vmem [shape: bf16[128,256], index: 1, kind: input, shape index: {}]   ;;  %s9594_s2 = inlined_call_operand.vmem [shape: f32[1,256], index: 2, kind: input, shape index: {}]   ;;  %s9595_s3 = inlined_call_operand.hbm [shape: bf16[5,256,256], index: 3, kind: input, shape index: {}]   ;;  %s9596_s4 = inlined_call_operand.vmem [shape: f32[1,256], index: 4, kind: input, shape index: {}]   ;;  %s9597_s5 = inlined_call_operand.hbm [shape: bf16[20,128,128], index: 5, kind: input, shape index: {}]   ;;  %s9598_s6 = inlined_call_operand.vmem [shape: f32[1,128], index: 6, kind: input, shape index: {}]   ;;  %s9599_s7 = inlined_call_operand.vmem [shape: bf16[128,128], index: 7, kind: input, shape index: {}]   ;;  %s9600_s8 = inlined_call_operand.vmem [shape: f32[1,128], index: 8, kind: input, shape index: {}]   ;;  %s9601_s9 = inlined_call_operand.vmem [shape: f32[16,128], index: 9, kind: output, shape index: {}]  }
   0x1   :  { %15 = vsyncpa [#allocation7], 0  ;;  %s8168_s30 = smov [#allocation4]   ;;  %s8120_s13 = scalar_lea.hbm %s9595_s3, 20480 }
   0x2   :  { %s27_s10 = sshll.u32 %s8168_s30, 4  ;;  %p8121_p0 = scmp.ne.s32.totalorder %s9595_s3, %s8120_s13  ;;  %s28_s10 = int_to_ptr.vmem [resolvable:$true] %s27_s10 }
   0x3   :  { %p8124_p1 = scmp.lt.u32.totalorder %s8120_s13, %s9595_s3 }
   0x5   :  { %p8126_p2 = pnand %p8124_p1, %p8121_p0 }
   0x7   :  { %8129 = shalt.err (!%p8126_p2)
}
   0x8   :  { %s8130_s18 = scalar_lea.vmem %s28_s10, 20480  ;;  %p8135_p4 = scmp.lt.s32.totalorder %s28_s10, %s28_s10 }
   0x9   :  { %p8131_p3 = scmp.ne.s32.totalorder %s28_s10, %s8130_s18  ;;  %p8136_p5 = scmp.lt.s32.totalorder %s8130_s18, %s8130_s18 }
   0xb   :  { %p8137_p6 = por %p8136_p5, %p8135_p4 }
   0xd   :  { %p8138_p7 = pnand %p8137_p6, %p8131_p3 }
   0xf   :  { %8141 = shalt.err (!%p8138_p7)
}
  0x10   :  { %s8169_s19 = smov 128   ;;  %s8170_s20 = smov 8  }
  0x11   :  { %33 = dma.hbm_to_vmem [thread:$0]  %s9595_s3, 20480, %s28_s10, [#allocation5], %s8169_s19, %s8169_s19, %s8170_s20  }
  0x12   :  { %s8171_s23 = smov [#allocation6]   ;;  %s8142_s27 = scalar_lea.hbm %s9597_s5, 20480 }
  0x13   :  { %s41_s24 = sshll.u32 %s8171_s23, 4  ;;  %p8143_p8 = scmp.ne.s32.totalorder %s9597_s5, %s8142_s27  ;;  %s42_s24 = int_to_ptr.vmem [resolvable:$true] %s41_s24 }
  0x14   :  { %p8146_p9 = scmp.lt.u32.totalorder %s8142_s27, %s9597_s5 }
  0x16   :  { %p8148_p10 = pnand %p8146_p9, %p8143_p8 }
  0x18   :  { %8151 = shalt.err (!%p8148_p10)
}
  0x19   :  { %s8152_s12 = scalar_lea.vmem %s42_s24, 20480  ;;  %p8157_p12 = scmp.lt.s32.totalorder %s42_s24, %s42_s24 }
  0x1a   :  { %p8153_p11 = scmp.ne.s32.totalorder %s42_s24, %s8152_s12  ;;  %p8158_p13 = scmp.lt.s32.totalorder %s8152_s12, %s8152_s12 }
  0x1c   :  { %p8159_p0 = por %p8158_p13, %p8157_p12 }
  0x1e   :  { %p8160_p1 = pnand %p8159_p0, %p8153_p11 }
  0x20   :  { %8163 = shalt.err (!%p8160_p1)
}
  0x21   :  { %s8172_s3 = smov 64   ;;  %s8173_s10 = smov 4  }
  0x22   :  { %47 = dma.hbm_to_vmem [thread:$0]  %s9597_s5, 20480, %s42_s24, [#allocation7], %s8172_s3, %s8172_s3, %s8173_s10  }
  0x23   :  { %8164 = dma.done.wait [#allocation5], 20480  }
  0x24   :  { %8165 = vsyncadd [#allocation5], 4294946816 }
  0x25   :  { %8166 = dma.done.wait [#allocation7], 20480  }
  0x26   :  { %8167 = vsyncadd [#allocation7], 4294946816  ;;  %v8174_v0 = vmov 0   ;;  %v7584_v1 = vld [vmem:[%s9593_s1 + $0x4] ss:$8 sps:$4 sm:$0xff]   ;;  %v7610_v19 = vld [vmem:[%s9592_s0 + $0x10] sm:$0xff]  }
  0x27   :  { %393 = vmatprep.mubr.bf16.mxu0 %v8174_v0  ;;  %v7586_v2 = vld [vmem:[%s9593_s1] ss:$8 sps:$4 sm:$0xff]   ;;  %361 = vmatprep.subr.bf16.mxu0 %v7584_v1  ;;  %v7587_v3 = vld [vmem:[%s9593_s1 + $0x14] ss:$8 sps:$4 sm:$0xff]   ;;  %v7589_v4 = vld [vmem:[%s9593_s1 + $0x10] ss:$8 sps:$4 sm:$0xff]  }
  0x28   :  { %362 = vmatpush1.bf16.msra.mxu0 %v7586_v2  ;;  %v7590_v5 = vld [vmem:[%s9593_s1 + $0x24] ss:$8 sps:$4 sm:$0xff]   ;;  %v7592_v6 = vld [vmem:[%s9593_s1 + $0x20] ss:$8 sps:$4 sm:$0xff]   ;;  %v7593_v7 = vld [vmem:[%s9593_s1 + $0x34] ss:$8 sps:$4 sm:$0xff]  }
  0x29   :  { %363 = vmatprep.subr.bf16.mxu0 %v7587_v3  ;;  %v7595_v8 = vld [vmem:[%s9593_s1 + $0x30] ss:$8 sps:$4 sm:$0xff]   ;;  %v7596_v9 = vld [vmem:[%s9593_s1 + $0x44] ss:$8 sps:$4 sm:$0xff]   ;;  %v7598_v10 = vld [vmem:[%s9593_s1 + $0x40] ss:$8 sps:$4 sm:$0xff]  }
  0x2a   :  { %v7599_v11 = vld [vmem:[%s9593_s1 + $0x54] ss:$8 sps:$4 sm:$0xff]   ;;  %v7601_v12 = vld [vmem:[%s9593_s1 + $0x50] ss:$8 sps:$4 sm:$0xff]   ;;  %v7602_v13 = vld [vmem:[%s9593_s1 + $0x64] ss:$8 sps:$4 sm:$0xff]  }
  0x2b   :  { %v7604_v14 = vld [vmem:[%s9593_s1 + $0x60] ss:$8 sps:$4 sm:$0xff]   ;;  %v7605_v15 = vld [vmem:[%s9593_s1 + $0x74] ss:$8 sps:$4 sm:$0xff]   ;;  %v7607_v16 = vld [vmem:[%s9593_s1 + $0x70] ss:$8 sps:$4 sm:$0xff]  }
  0x2c   :  { %364 = vmatpush1.bf16.msra.mxu0 %v7589_v4  ;;  %v7608_v17 = vld [vmem:[%s9592_s0] sm:$0xff]   ;;  %v7609_v18 = vld [vmem:[%s9592_s0 + $0x8] sm:$0xff]   ;;  %v7611_v20 = vld [vmem:[%s9592_s0 + $0x18] sm:$0xff]   ;;  %vm8176_vm0 = vmmov 0  }
  0x2d   :  { %365 = vmatprep.subr.bf16.mxu0 %v7590_v5  ;;  %v7612_v21 = vld [vmem:[%s9592_s0 + $0x20] sm:$0xff]   ;;  %v7632_v24 = vld [vmem:[#allocation4 + $0x114] ss:$8 sps:$4 sm:$0xff]   ;;  %v7634_v25 = vld [vmem:[#allocation4 + $0x110] ss:$8 sps:$4 sm:$0xff]  }
  0x2e   :  { %v7629_v22 = vld [vmem:[#allocation4 + $0x104] ss:$8 sps:$4 sm:$0xff]   ;;  %v7631_v23 = vld [vmem:[#allocation4 + $0x100] ss:$8 sps:$4 sm:$0xff]   ;;  %v7638_v29 = vld [vmem:[#allocation4 + $0x134] ss:$8 sps:$4 sm:$0xff]  }
  0x2f   :  { %1093 = vmatprep.subr.bf16.mxu1 %v7629_v22  ;;  %v7613_v26 = vld [vmem:[%s9592_s0 + $0x28] sm:$0xff]   ;;  %v7640_v30 = vld [vmem:[#allocation4 + $0x130] ss:$8 sps:$4 sm:$0xff]   ;;  %v7644_v34 = vld [vmem:[#allocation4 + $0x154] ss:$8 sps:$4 sm:$0xff]  }
  0x30   :  { %366 = vmatpush1.bf16.msra.mxu0 %v7592_v6  ;;  %1094 = vmatpush1.bf16.msra.mxu1 %v7631_v23  ;;  %v7635_v27 = vld [vmem:[#allocation4 + $0x124] ss:$8 sps:$4 sm:$0xff]   ;;  %v7637_v28 = vld [vmem:[#allocation4 + $0x120] ss:$8 sps:$4 sm:$0xff]   ;;  %v7614_v31 = vld [vmem:[%s9592_s0 + $0x30] sm:$0xff]  }
  0x31   :  { %367 = vmatprep.subr.bf16.mxu0 %v7593_v7  ;;  %1095 = vmatprep.subr.bf16.mxu1 %v7632_v24  ;;  %v7641_v32 = vld [vmem:[#allocation4 + $0x144] ss:$8 sps:$4 sm:$0xff]   ;;  %v7643_v33 = vld [vmem:[#allocation4 + $0x140] ss:$8 sps:$4 sm:$0xff]   ;;  %v7646_v35 = vld [vmem:[#allocation4 + $0x150] ss:$8 sps:$4 sm:$0xff]  }
  0x32   :  { %v7615_v36 = vld [vmem:[%s9592_s0 + $0x38] sm:$0xff]   ;;  %v7647_v37 = vld [vmem:[#allocation4 + $0x164] ss:$8 sps:$4 sm:$0xff]   ;;  %v7649_v38 = vld [vmem:[#allocation4 + $0x160] ss:$8 sps:$4 sm:$0xff]  }
  0x33   :  { %v7650_v39 = vld [vmem:[#allocation4 + $0x174] ss:$8 sps:$4 sm:$0xff]   ;;  %v7652_v40 = vld [vmem:[#allocation4 + $0x170] ss:$8 sps:$4 sm:$0xff]   ;;  %v7616_v41 = vld [vmem:[%s9592_s0 + $0x40] sm:$0xff]  }
  0x34   :  { %368 = vmatpush1.bf16.msra.mxu0 %v7595_v8  ;;  %1096 = vmatpush1.bf16.msra.mxu1 %v7634_v25  ;;  %v7653_v42 = vld [vmem:[#allocation4 + $0x184] ss:$8 sps:$4 sm:$0xff]   ;;  %v7655_v43 = vld [vmem:[#allocation4 + $0x180] ss:$8 sps:$4 sm:$0xff]   ;;  %v7656_v44 = vld [vmem:[#allocation4 + $0x194] ss:$8 sps:$4 sm:$0xff]   ;;  %v127_v8 = vlaneseq }
  0x35   :  { %369 = vmatprep.subr.bf16.mxu0 %v7596_v9  ;;  %1097 = vmatprep.subr.bf16.mxu1 %v7635_v27  ;;  %v7658_v45 = vld [vmem:[#allocation4 + $0x190] ss:$8 sps:$4 sm:$0xff]   ;;  %v7617_v46 = vld [vmem:[%s9592_s0 + $0x48] sm:$0xff]   ;;  %v7662_v49 = vld [vmem:[#allocation4 + $0x1b4] ss:$8 sps:$4 sm:$0xff]  }
  0x36   :  { %v7659_v47 = vld [vmem:[#allocation4 + $0x1a4] ss:$8 sps:$4 sm:$0xff]   ;;  %v7661_v48 = vld [vmem:[#allocation4 + $0x1a0] ss:$8 sps:$4 sm:$0xff]   ;;  %v7664_v50 = vld [vmem:[#allocation4 + $0x1b0] ss:$8 sps:$4 sm:$0xff]  }
  0x37   :  { %v7618_v51 = vld [vmem:[%s9592_s0 + $0x50] sm:$0xff]   ;;  %v7619_v52 = vld [vmem:[%s9592_s0 + $0x58] sm:$0xff]   ;;  %v7665_v53 = vld [vmem:[#allocation4 + $0x1c4] ss:$8 sps:$4 sm:$0xff]   ;;  %v8384_v9 = vshrl.u32 %v127_v8, 7 }
  0x38   :  { %370 = vmatpush1.bf16.msra.mxu0 %v7598_v10  ;;  %1098 = vmatpush1.bf16.msra.mxu1 %v7637_v28  ;;  %v7667_v54 = vld [vmem:[#allocation4 + $0x1c0] ss:$8 sps:$4 sm:$0xff]   ;;  %v7668_v55 = vld [vmem:[#allocation4 + $0x1d4] ss:$8 sps:$4 sm:$0xff]   ;;  %v7670_v56 = vld [vmem:[#allocation4 + $0x1d0] ss:$8 sps:$4 sm:$0xff]  }
  0x39   :  { %371 = vmatprep.subr.bf16.mxu0 %v7599_v11  ;;  %1099 = vmatprep.subr.bf16.mxu1 %v7638_v29  ;;  %v7620_v57 = vld [vmem:[%s9592_s0 + $0x60] sm:$0xff]   ;;  %v7674_v60 = vld [vmem:[#allocation4 + $0x1f4] ss:$8 sps:$4 sm:$0xff]   ;;  %v7676_v61 = vld [vmem:[#allocation4 + $0x1f0] ss:$8 sps:$4 sm:$0xff]   ;;  %v129_v10 = vsub.s32 0, %v8384_v9 }
  0x3a   :  { %v7671_v58 = vld [vmem:[#allocation4 + $0x1e4] ss:$8 sps:$4 sm:$0xff]   ;;  %v7673_v59 = vld [vmem:[#allocation4 + $0x1e0] ss:$8 sps:$4 sm:$0xff]   ;;  %v7622_v63 = vld [vmem:[%s9592_s0 + $0x70] sm:$0xff]  }
  0x3b   :  { %v7621_v62 = vld [vmem:[%s9592_s0 + $0x68] sm:$0xff]   ;;  %v7623_v2 = vld [vmem:[%s9592_s0 + $0x78] sm:$0xff]   ;;  %v7624_v3 = vld [vmem:[%s9592_s0 + $0x80] sm:$0xff]  }
  0x3c   :  { %372 = vmatpush1.bf16.msra.mxu0 %v7601_v12  ;;  %1100 = vmatpush1.bf16.msra.mxu1 %v7640_v30  ;;  %v7679_v1 = vld [vmem:[#allocation4 + $0x4] ss:$8 sps:$4 sm:$0xff]   ;;  %v7626_v5 = vld [vmem:[%s9592_s0 + $0x90] sm:$0xff]   ;;  %v7627_v6 = vld [vmem:[%s9592_s0 + $0x98] sm:$0xff]   ;;  %v133_v12 = vsub.s32 1, %v8384_v9 }
  0x3d   :  { %373 = vmatprep.subr.bf16.mxu0 %v7602_v13  ;;  %1101 = vmatprep.subr.bf16.mxu1 %v7641_v32  ;;  %v7625_v4 = vld [vmem:[%s9592_s0 + $0x88] sm:$0xff]   ;;  %v7628_v7 = vld [vmem:[%s9592_s0 + $0xa0] sm:$0xff]   ;;  %v7686_v8 = vld [vmem:[#allocation4 + $0x30] ss:$8 sps:$4 sm:$0xff]  }
  0x3e   :  { %v125_v11 = vld [vmem:[%s9594_s2] sm:$0x3] }
  0x3f   :  { %v8393_v13 = vrot.slane %v125_v11, %v129_v10 }
  0x40   :  { %374 = vmatpush1.bf16.msra.mxu0 %v7604_v14  ;;  %1102 = vmatpush1.bf16.msra.mxu1 %v7643_v33  ;;  %v8397_v14 = vrot.slane %v125_v11, %v133_v12 }
  0x41   :  { %375 = vmatprep.subr.bf16.mxu0 %v7605_v15  ;;  %1103 = vmatprep.subr.bf16.mxu1 %v7644_v34 }
  0x44   :  { %376 = vmatpush1.bf16.msra.mxu0 %v7607_v16  ;;  %1104 = vmatpush1.bf16.msra.mxu1 %v7646_v35 }
  0x45   :  { %1105 = vmatprep.subr.bf16.mxu1 %v7647_v37 }
  0x47   :  { %394 = vmatmul.mubr.bf16.vlgmr.msra.gmra.mrb[0].mxu0 %v7608_v17 }
  0x48   :  { %403 = vmatprep.mubr.bf16.mxu0 %v8174_v0  ;;  %1106 = vmatpush1.bf16.msra.mxu1 %v7649_v38 }
  0x49   :  { %1107 = vmatprep.subr.bf16.mxu1 %v7650_v39 }
  0x4c   :  { %1108 = vmatpush1.bf16.msra.mxu1 %v7652_v40 }
  0x4d   :  { %1109 = vmatprep.subr.bf16.mxu1 %v7653_v42 }
  0x4f   :  { %404 = vmatmul.mubr.bf16.gmra.mrb[4].mxu0 %v7609_v18 }
  0x50   :  { %413 = vmatprep.mubr.bf16.mxu0 %v8174_v0  ;;  %1110 = vmatpush1.bf16.msra.mxu1 %v7655_v43 }
  0x51   :  { %1111 = vmatprep.subr.bf16.mxu1 %v7656_v44  ;;  %v7677_v44 = vld [vmem:[#allocation4] ss:$8 sps:$4 sm:$0xff]  }
  0x54   :  { %1112 = vmatpush1.bf16.msra.mxu1 %v7658_v45 }
  0x55   :  { %1113 = vmatprep.subr.bf16.mxu1 %v7659_v47  ;;  %v7682_v47 = vld [vmem:[#allocation4 + $0x14] ss:$8 sps:$4 sm:$0xff]  }
  0x57   :  { %414 = vmatmul.mubr.bf16.gmra.mrb[8].mxu0 %v7610_v19 }
  0x58   :  { %423 = vmatprep.mubr.bf16.mxu0 %v8174_v0  ;;  %1114 = vmatpush1.bf16.msra.mxu1 %v7661_v48 }
  0x59   :  { %1115 = vmatprep.subr.bf16.mxu1 %v7662_v49 }
  0x5c   :  { %1116 = vmatpush1.bf16.msra.mxu1 %v7664_v50 }
  0x5d   :  { %1117 = vmatprep.subr.bf16.mxu1 %v7665_v53  ;;  %v7680_v53 = vld [vmem:[#allocation4 + $0x10] ss:$8 sps:$4 sm:$0xff]  }
  0x5f   :  { %424 = vmatmul.mubr.bf16.gmra.mrb[12].mxu0 %v7611_v20 }
  0x60   :  { %433 = vmatprep.mubr.bf16.mxu0 %v8174_v0  ;;  %1118 = vmatpush1.bf16.msra.mxu1 %v7667_v54 }
  0x61   :  { %1119 = vmatprep.subr.bf16.mxu1 %v7668_v55 }
  0x64   :  { %1120 = vmatpush1.bf16.msra.mxu1 %v7670_v56  ;;  %v7685_v56 = vld [vmem:[#allocation4 + $0x24] ss:$8 sps:$4 sm:$0xff]  }
  0x65   :  { %1121 = vmatprep.subr.bf16.mxu1 %v7671_v58 }
  0x67   :  { %434 = vmatmul.mubr.bf16.gmra.mrb[16].mxu0 %v7612_v21 }
  0x68   :  { %443 = vmatprep.mubr.bf16.mxu0 %v8174_v0  ;;  %1122 = vmatpush1.bf16.msra.mxu1 %v7673_v59 }
  0x69   :  { %1123 = vmatprep.subr.bf16.mxu1 %v7674_v60 }
  0x6c   :  { %1124 = vmatpush1.bf16.msra.mxu1 %v7676_v61 }
  0x6d   :  { %1486 = vmatprep.subr.bf16.mxu1 %v7679_v1 }
  0x6f   :  { %444 = vmatmul.mubr.bf16.gmra.mrb[20].mxu0 %v7613_v26 }
  0x70   :  { %453 = vmatprep.mubr.bf16.mxu0 %v8174_v0 }
  0x77   :  { %454 = vmatmul.mubr.bf16.gmra.mrb[24].mxu0 %v7614_v31 }
  0x78   :  { %463 = vmatprep.mubr.bf16.mxu0 %v8174_v0 }
  0x7f   :  { %464 = vmatmul.mubr.bf16.gmra.mrb[28].mxu0 %v7615_v36 }
  0x80   :  { %473 = vmatprep.mubr.bf16.mxu0 %v8174_v0 }
  0x87   :  { %474 = vmatmul.mubr.bf16.gmra.mrb[32].mxu0 %v7616_v41 }
  0x88   :  { %483 = vmatprep.mubr.bf16.mxu0 %v8174_v0 }
  0x8f   :  { %484 = vmatmul.mubr.bf16.gmra.mrb[36].mxu0 %v7617_v46 }
  0x90   :  { %493 = vmatprep.mubr.bf16.mxu0 %v8174_v0 }
  0x97   :  { %494 = vmatmul.mubr.bf16.gmra.mrb[40].mxu0 %v7618_v51 }
  0x98   :  { %503 = vmatprep.mubr.bf16.mxu0 %v8174_v0 }
  0x9f   :  { %504 = vmatmul.mubr.bf16.gmra.mrb[44].mxu0 %v7619_v52 }
  0xa0   :  { %513 = vmatprep.mubr.bf16.mxu0 %v8174_v0 }
  0xa7   :  { %514 = vmatmul.mubr.bf16.gmra.mrb[48].mxu0 %v7620_v57 }
  0xa8   :  { %523 = vmatprep.mubr.bf16.mxu0 %v8174_v0 }
  0xaf   :  { %524 = vmatmul.mubr.bf16.gmra.mrb[52].mxu0 %v7621_v62  ;;  %v7683_v62 = vld [vmem:[#allocation4 + $0x20] ss:$8 sps:$4 sm:$0xff]  }
  0xb0   :  { %533 = vmatprep.mubr.bf16.mxu0 %v8174_v0 }
  0xb7   :  { %534 = vmatmul.mubr.bf16.gmra.mrb[56].mxu0 %v7622_v63 }
  0xb8   :  { %543 = vmatprep.mubr.bf16.mxu0 %v8174_v0 }
  0xbf   :  { %544 = vmatmul.mubr.bf16.gmra.mrb[60].mxu0 %v7623_v2  ;;  %v7688_v2 = vld [vmem:[#allocation4 + $0x34] ss:$8 sps:$4 sm:$0xff]  }
  0xc0   :  { %553 = vmatprep.mubr.bf16.mxu0 %v8174_v0 }
  0xc7   :  { %554 = vmatmul.mubr.bf16.gmra.mrb[64].mxu0 %v7624_v3 }
  0xc8   :  { %563 = vmatprep.mubr.bf16.mxu0 %v8174_v0 }
  0xcf   :  { %564 = vmatmul.mubr.bf16.gmra.mrb[68].mxu0 %v7625_v4 }
  0xd0   :  { %573 = vmatprep.mubr.bf16.mxu0 %v8174_v0 }
  0xd7   :  { %574 = vmatmul.mubr.bf16.gmra.mrb[72].mxu0 %v7626_v5 }
  0xd8   :  { %583 = vmatprep.mubr.bf16.mxu0 %v8174_v0 }
  0xdf   :  { %584 = vmatmul.mubr.bf16.gmra.mrb[76].mxu0 %v7627_v6 }
  0xe0   :  { %593 = vmatprep.mubr.bf16.mxu0 %v8174_v0 }
  0xe7   :  { %594 = vmatmul.mubr.bf16.gmra.mrb[80].mxu0 %v7628_v7 }
  0xe8   :  { %603 = vmatprep.mubr.bf16.mxu0 %v8174_v0 }
 0x11a   :  { %v395_v15 = vpop.f32.mrb[0].mxu0 }
 0x11b   :  { %v396_v16 = vadd.f32 %v395_v15, %v8393_v13  ;;  %v397_v17 = vpop.f32.mrb[1].mxu0 }
 0x11c   :  { %v398_v18 = vadd.f32 %v397_v17, %v8397_v14  ;;  %v399_v19 = vpop.f32.mrb[2].mxu0 }
 0x11d   :  { %v400_v20 = vadd.f32 %v399_v19, %v8393_v13  ;;  %v401_v21 = vpop.f32.mrb[3].mxu0  ;;  %v634_v23 = vmax.f32 %v396_v16, 0.0  ;;  %v7691_v16 = vld [vmem:[#allocation4 + $0x44] ss:$8 sps:$4 sm:$0xff]  }
 0x11e   :  { %v402_v22 = vadd.f32 %v401_v21, %v8397_v14  ;;  %v635_v25 = vmax.f32 %v398_v18, 0.0 }
 0x11f   :  { %v636_v24 = vmax.f32 %v400_v20, 0.0 }
 0x120   :  { %v637_v26 = vmax.f32 %v402_v22, 0.0  ;;  %v7689_v22 = vld [vmem:[#allocation4 + $0x40] ss:$8 sps:$4 sm:$0xff]  }
 0x121   :  { %v8403_v27 = vpack.c.bf16 %v636_v24, %v634_v23 }
 0x122   :  { %v8405_v28 = vpack.c.bf16 %v637_v26, %v635_v25  ;;  %v405_v29 = vpop.f32.mrb[4].mxu0  ;;  %v7694_v25 = vld [vmem:[#allocation4 + $0x54] ss:$8 sps:$4 sm:$0xff]  }
 0x123   :  { %v406_v30 = vadd.f32 %v405_v29, %v8393_v13  ;;  %v407_v31 = vpop.f32.mrb[5].mxu0 }
 0x124   :  { %v408_v32 = vadd.f32 %v407_v31, %v8397_v14  ;;  %v409_v33 = vpop.f32.mrb[6].mxu0 }
 0x125   :  { %v410_v34 = vadd.f32 %v409_v33, %v8393_v13  ;;  %v411_v35 = vpop.f32.mrb[7].mxu0  ;;  %v638_v37 = vmax.f32 %v406_v30, 0.0  ;;  %v7692_v33 = vld [vmem:[#allocation4 + $0x50] ss:$8 sps:$4 sm:$0xff]  }
 0x126   :  { %v412_v36 = vadd.f32 %v411_v35, %v8397_v14  ;;  %v639_v39 = vmax.f32 %v408_v32, 0.0 }
 0x127   :  { %v640_v38 = vmax.f32 %v410_v34, 0.0 }
 0x128   :  { %v641_v40 = vmax.f32 %v412_v36, 0.0  ;;  %v7697_v36 = vld [vmem:[#allocation4 + $0x64] ss:$8 sps:$4 sm:$0xff]  }
 0x129   :  { %v8411_v41 = vpack.c.bf16 %v640_v38, %v638_v37 }
 0x12a   :  { %v415_v42 = vpop.f32.mrb[8].mxu0  ;;  %v8413_v43 = vpack.c.bf16 %v641_v40, %v639_v39 }
 0x12b   :  { %v416_v45 = vadd.f32 %v415_v42, %v8393_v13  ;;  %v417_v46 = vpop.f32.mrb[9].mxu0 }
 0x12c   :  { %v418_v48 = vadd.f32 %v417_v46, %v8397_v14  ;;  %v419_v49 = vpop.f32.mrb[10].mxu0  ;;  %1125 = vmatprep.mubr.bf16.mxu1 %v8413_v43 }
 0x12d   :  { %v420_v50 = vadd.f32 %v419_v49, %v8393_v13  ;;  %v421_v51 = vpop.f32.mrb[11].mxu0  ;;  %1126 = vmatmul.mubr.bf16.vlgmr.msra.gmra.mrb[0].mxu1 %v8411_v41  ;;  %v642_v54 = vmax.f32 %v416_v45, 0.0 }
 0x12e   :  { %v422_v52 = vadd.f32 %v421_v51, %v8397_v14  ;;  %1487 = vmatpush1.bf16.msra.mxu1 %v7677_v44  ;;  %v643_v57 = vmax.f32 %v418_v48, 0.0  ;;  %v7695_v44 = vld [vmem:[#allocation4 + $0x60] ss:$8 sps:$4 sm:$0xff]  }
 0x12f   :  { %v644_v55 = vmax.f32 %v420_v50, 0.0  ;;  %1488 = vmatprep.subr.bf16.mxu1 %v7682_v47  ;;  %v7700_v47 = vld [vmem:[#allocation4 + $0x74] ss:$8 sps:$4 sm:$0xff]  }
 0x130   :  { %v645_v58 = vmax.f32 %v422_v52, 0.0 }
 0x131   :  { %v8421_v59 = vpack.c.bf16 %v644_v55, %v642_v54 }
 0x132   :  { %v8423_v60 = vpack.c.bf16 %v645_v58, %v643_v57  ;;  %v425_v61 = vpop.f32.mrb[12].mxu0  ;;  %1489 = vmatpush1.bf16.msra.mxu1 %v7680_v53  ;;  %v7698_v53 = vld [vmem:[#allocation4 + $0x70] ss:$8 sps:$4 sm:$0xff]  }
 0x133   :  { %v426_v63 = vadd.f32 %v425_v61, %v8393_v13  ;;  %v427_v1 = vpop.f32.mrb[13].mxu0  ;;  %1490 = vmatprep.subr.bf16.mxu1 %v7685_v56  ;;  %v7703_v56 = vld [vmem:[#allocation4 + $0x84] ss:$8 sps:$4 sm:$0xff]  }
 0x134   :  { %v428_v3 = vadd.f32 %v427_v1, %v8397_v14  ;;  %v429_v4 = vpop.f32.mrb[14].mxu0  ;;  %1135 = vmatprep.mubr.bf16.mxu1 %v8423_v60  ;;  %v7701_v1 = vld [vmem:[#allocation4 + $0x80] ss:$8 sps:$4 sm:$0xff]  }
 0x135   :  { %v430_v5 = vadd.f32 %v429_v4, %v8393_v13  ;;  %v431_v6 = vpop.f32.mrb[15].mxu0  ;;  %1136 = vmatmul.mubr.bf16.gmra.mrb[4].mxu1 %v8421_v59  ;;  %v646_v11 = vmax.f32 %v426_v63, 0.0  ;;  %v7706_v4 = vld [vmem:[#allocation4 + $0x94] ss:$8 sps:$4 sm:$0xff]  }
 0x136   :  { %v432_v7 = vadd.f32 %v431_v6, %v8397_v14  ;;  %1491 = vmatpush1.bf16.msra.mxu1 %v7683_v62  ;;  %v647_v17 = vmax.f32 %v428_v3, 0.0 }
 0x137   :  { %v648_v15 = vmax.f32 %v430_v5, 0.0  ;;  %1492 = vmatprep.subr.bf16.mxu1 %v7688_v2 }
 0x138   :  { %v649_v18 = vmax.f32 %v432_v7, 0.0 }
 0x139   :  { %v8431_v19 = vpack.c.bf16 %v648_v15, %v646_v11  ;;  %v7704_v15 = vld [vmem:[#allocation4 + $0x90] ss:$8 sps:$4 sm:$0xff]  }
 0x13a   :  { %v8433_v20 = vpack.c.bf16 %v649_v18, %v647_v17  ;;  %v435_v21 = vpop.f32.mrb[16].mxu0  ;;  %1493 = vmatpush1.bf16.msra.mxu1 %v7686_v8  ;;  %v7709_v18 = vld [vmem:[#allocation4 + $0xa4] ss:$8 sps:$4 sm:$0xff]  }
 0x13b   :  { %v436_v23 = vadd.f32 %v435_v21, %v8393_v13  ;;  %v437_v24 = vpop.f32.mrb[17].mxu0  ;;  %1494 = vmatprep.subr.bf16.mxu1 %v7691_v16 }
 0x13c   :  { %v438_v26 = vadd.f32 %v437_v24, %v8397_v14  ;;  %v439_v29 = vpop.f32.mrb[18].mxu0  ;;  %1145 = vmatprep.mubr.bf16.mxu1 %v8433_v20 }
 0x13d   :  { %v440_v30 = vadd.f32 %v439_v29, %v8393_v13  ;;  %v441_v31 = vpop.f32.mrb[19].mxu0  ;;  %1146 = vmatmul.mubr.bf16.gmra.mrb[8].mxu1 %v8431_v19  ;;  %v650_v34 = vmax.f32 %v436_v23, 0.0 }
 0x13e   :  { %v442_v32 = vadd.f32 %v441_v31, %v8397_v14  ;;  %1495 = vmatpush1.bf16.msra.mxu1 %v7689_v22  ;;  %v651_v37 = vmax.f32 %v438_v26, 0.0  ;;  %v7707_v26 = vld [vmem:[#allocation4 + $0xa0] ss:$8 sps:$4 sm:$0xff]   ;;  %v7712_v31 = vld [vmem:[#allocation4 + $0xb4] ss:$8 sps:$4 sm:$0xff]  }
 0x13f   :  { %v652_v35 = vmax.f32 %v440_v30, 0.0  ;;  %1496 = vmatprep.subr.bf16.mxu1 %v7694_v25 }
 0x140   :  { %v653_v38 = vmax.f32 %v442_v32, 0.0 }
 0x141   :  { %v8441_v39 = vpack.c.bf16 %v652_v35, %v650_v34 }
 0x142   :  { %v8443_v40 = vpack.c.bf16 %v653_v38, %v651_v37  ;;  %v445_v42 = vpop.f32.mrb[20].mxu0  ;;  %1497 = vmatpush1.bf16.msra.mxu1 %v7692_v33  ;;  %v7710_v37 = vld [vmem:[#allocation4 + $0xb0] ss:$8 sps:$4 sm:$0xff]  }
 0x143   :  { %v446_v45 = vadd.f32 %v445_v42, %v8393_v13  ;;  %v447_v46 = vpop.f32.mrb[21].mxu0  ;;  %1498 = vmatprep.subr.bf16.mxu1 %v7697_v36 }
 0x144   :  { %v448_v48 = vadd.f32 %v447_v46, %v8397_v14  ;;  %v449_v49 = vpop.f32.mrb[22].mxu0  ;;  %1155 = vmatprep.mubr.bf16.mxu1 %v8443_v40 }
 0x145   :  { %v450_v50 = vadd.f32 %v449_v49, %v8393_v13  ;;  %v451_v51 = vpop.f32.mrb[23].mxu0  ;;  %1156 = vmatmul.mubr.bf16.gmra.mrb[12].mxu1 %v8441_v39  ;;  %v654_v54 = vmax.f32 %v446_v45, 0.0 }
 0x146   :  { %v452_v52 = vadd.f32 %v451_v51, %v8397_v14  ;;  %1499 = vmatpush1.bf16.msra.mxu1 %v7695_v44  ;;  %v655_v57 = vmax.f32 %v448_v48, 0.0  ;;  %v7715_v44 = vld [vmem:[#allocation4 + $0xc4] ss:$8 sps:$4 sm:$0xff]  }
 0x147   :  { %v656_v55 = vmax.f32 %v450_v50, 0.0  ;;  %1500 = vmatprep.subr.bf16.mxu1 %v7700_v47  ;;  %v7713_v50 = vld [vmem:[#allocation4 + $0xc0] ss:$8 sps:$4 sm:$0xff]  }
 0x148   :  { %v657_v58 = vmax.f32 %v452_v52, 0.0 }
 0x149   :  { %v8451_v61 = vpack.c.bf16 %v656_v55, %v654_v54 }
 0x14a   :  { %v8453_v62 = vpack.c.bf16 %v657_v58, %v655_v57  ;;  %v455_v63 = vpop.f32.mrb[24].mxu0  ;;  %1501 = vmatpush1.bf16.msra.mxu1 %v7698_v53  ;;  %v7718_v53 = vld [vmem:[#allocation4 + $0xd4] ss:$8 sps:$4 sm:$0xff]  }
 0x14b   :  { %v456_v2 = vadd.f32 %v455_v63, %v8393_v13  ;;  %v457_v3 = vpop.f32.mrb[25].mxu0  ;;  %1502 = vmatprep.subr.bf16.mxu1 %v7703_v56  ;;  %v7716_v63 = vld [vmem:[#allocation4 + $0xd0] ss:$8 sps:$4 sm:$0xff]  }
 0x14c   :  { %v458_v5 = vadd.f32 %v457_v3, %v8397_v14  ;;  %v459_v6 = vpop.f32.mrb[26].mxu0  ;;  %1165 = vmatprep.mubr.bf16.mxu1 %v8453_v62  ;;  %v7721_v3 = vld [vmem:[#allocation4 + $0xe4] ss:$8 sps:$4 sm:$0xff]  }
 0x14d   :  { %v460_v7 = vadd.f32 %v459_v6, %v8393_v13  ;;  %v461_v8 = vpop.f32.mrb[27].mxu0  ;;  %1166 = vmatmul.mubr.bf16.gmra.mrb[16].mxu1 %v8451_v61  ;;  %v658_v16 = vmax.f32 %v456_v2, 0.0 }
 0x14e   :  { %v462_v11 = vadd.f32 %v461_v8, %v8397_v14  ;;  %1503 = vmatpush1.bf16.msra.mxu1 %v7701_v1  ;;  %v659_v21 = vmax.f32 %v458_v5, 0.0 }
 0x14f   :  { %v660_v17 = vmax.f32 %v460_v7, 0.0  ;;  %1504 = vmatprep.subr.bf16.mxu1 %v7706_v4 }
 0x150   :  { %v661_v22 = vmax.f32 %v462_v11, 0.0  ;;  %v7719_v11 = vld [vmem:[#allocation4 + $0xe0] ss:$8 sps:$4 sm:$0xff]  }
 0x151   :  { %v8461_v23 = vpack.c.bf16 %v660_v17, %v658_v16  ;;  %v7724_v17 = vld [vmem:[#allocation4 + $0xf4] ss:$8 sps:$4 sm:$0xff]  }
 0x152   :  { %v8463_v24 = vpack.c.bf16 %v661_v22, %v659_v21  ;;  %v465_v25 = vpop.f32.mrb[28].mxu0  ;;  %1505 = vmatpush1.bf16.msra.mxu1 %v7704_v15 }
 0x153   :  { %v466_v29 = vadd.f32 %v465_v25, %v8393_v13  ;;  %v467_v30 = vpop.f32.mrb[29].mxu0  ;;  %1506 = vmatprep.subr.bf16.mxu1 %v7709_v18 }
 0x154   :  { %v468_v32 = vadd.f32 %v467_v30, %v8397_v14  ;;  %v469_v33 = vpop.f32.mrb[30].mxu0  ;;  %1175 = vmatprep.mubr.bf16.mxu1 %v8463_v24 }
 0x155   :  { %v470_v34 = vadd.f32 %v469_v33, %v8393_v13  ;;  %v471_v35 = vpop.f32.mrb[31].mxu0  ;;  %1176 = vmatmul.mubr.bf16.gmra.mrb[20].mxu1 %v8461_v23  ;;  %v662_v38 = vmax.f32 %v466_v29, 0.0  ;;  %v7722_v29 = vld [vmem:[#allocation4 + $0xf0] ss:$8 sps:$4 sm:$0xff]  }
 0x156   :  { %v472_v36 = vadd.f32 %v471_v35, %v8397_v14  ;;  %1507 = vmatpush1.bf16.msra.mxu1 %v7707_v26  ;;  %v663_v45 = vmax.f32 %v468_v32, 0.0  ;;  %v7727_v32 = vld [vmem:[#allocation4 + $0x204] ss:$8 sps:$4 sm:$0xff]  }
 0x157   :  { %v664_v42 = vmax.f32 %v470_v34, 0.0  ;;  %1508 = vmatprep.subr.bf16.mxu1 %v7712_v31 }
 0x158   :  { %v665_v46 = vmax.f32 %v472_v36, 0.0 }
 0x159   :  { %v8471_v47 = vpack.c.bf16 %v664_v42, %v662_v38 }
 0x15a   :  { %v8473_v48 = vpack.c.bf16 %v665_v46, %v663_v45  ;;  %v475_v49 = vpop.f32.mrb[32].mxu0  ;;  %1509 = vmatpush1.bf16.msra.mxu1 %v7710_v37 }
 0x15b   :  { %v476_v51 = vadd.f32 %v475_v49, %v8393_v13  ;;  %v477_v52 = vpop.f32.mrb[33].mxu0  ;;  %1510 = vmatprep.subr.bf16.mxu1 %v7715_v44 }
 0x15c   :  { %v478_v54 = vadd.f32 %v477_v52, %v8397_v14  ;;  %v479_v55 = vpop.f32.mrb[34].mxu0  ;;  %1185 = vmatprep.mubr.bf16.mxu1 %v8473_v48 }
 0x15d   :  { %v480_v56 = vadd.f32 %v479_v55, %v8393_v13  ;;  %v481_v57 = vpop.f32.mrb[35].mxu0  ;;  %1186 = vmatmul.mubr.bf16.gmra.mrb[24].mxu1 %v8471_v47  ;;  %v666_v1 = vmax.f32 %v476_v51, 0.0 }
 0x15e   :  { %v482_v58 = vadd.f32 %v481_v57, %v8397_v14  ;;  %1511 = vmatpush1.bf16.msra.mxu1 %v7713_v50  ;;  %v667_v4 = vmax.f32 %v478_v54, 0.0 }
 0x15f   :  { %v668_v2 = vmax.f32 %v480_v56, 0.0  ;;  %1512 = vmatprep.subr.bf16.mxu1 %v7718_v53 }
 0x160   :  { %v669_v5 = vmax.f32 %v482_v58, 0.0 }
 0x161   :  { %v8481_v6 = vpack.c.bf16 %v668_v2, %v666_v1 }
 0x162   :  { %v8483_v7 = vpack.c.bf16 %v669_v5, %v667_v4  ;;  %v485_v8 = vpop.f32.mrb[36].mxu0  ;;  %1513 = vmatpush1.bf16.msra.mxu1 %v7716_v63 }
 0x163   :  { %v486_v15 = vadd.f32 %v485_v8, %v8393_v13  ;;  %v487_v16 = vpop.f32.mrb[37].mxu0  ;;  %1514 = vmatprep.subr.bf16.mxu1 %v7721_v3 }
 0x164   :  { %v488_v18 = vadd.f32 %v487_v16, %v8397_v14  ;;  %v489_v21 = vpop.f32.mrb[38].mxu0  ;;  %1195 = vmatprep.mubr.bf16.mxu1 %v8483_v7 }
 0x165   :  { %v490_v22 = vadd.f32 %v489_v21, %v8393_v13  ;;  %v491_v25 = vpop.f32.mrb[39].mxu0  ;;  %1196 = vmatmul.mubr.bf16.gmra.mrb[28].mxu1 %v8481_v6  ;;  %v670_v30 = vmax.f32 %v486_v15, 0.0 }
 0x166   :  { %v492_v26 = vadd.f32 %v491_v25, %v8397_v14  ;;  %1515 = vmatpush1.bf16.msra.mxu1 %v7719_v11  ;;  %v671_v33 = vmax.f32 %v488_v18, 0.0 }
 0x167   :  { %v672_v31 = vmax.f32 %v490_v22, 0.0  ;;  %1516 = vmatprep.subr.bf16.mxu1 %v7724_v17 }
 0x168   :  { %v673_v34 = vmax.f32 %v492_v26, 0.0 }
 0x169   :  { %v8491_v35 = vpack.c.bf16 %v672_v31, %v670_v30 }
 0x16a   :  { %v8493_v36 = vpack.c.bf16 %v673_v34, %v671_v33  ;;  %v495_v37 = vpop.f32.mrb[40].mxu0  ;;  %1517 = vmatpush1.bf16.msra.mxu1 %v7722_v29 }
 0x16b   :  { %v496_v38 = vadd.f32 %v495_v37, %v8393_v13  ;;  %v497_v42 = vpop.f32.mrb[41].mxu0  ;;  %1952 = vmatprep.subr.bf16.mxu1 %v7727_v32 }
 0x16c   :  { %v498_v44 = vadd.f32 %v497_v42, %v8397_v14  ;;  %v499_v45 = vpop.f32.mrb[42].mxu0  ;;  %1205 = vmatprep.mubr.bf16.mxu1 %v8493_v36 }
 0x16d   :  { %v500_v46 = vadd.f32 %v499_v45, %v8393_v13  ;;  %v501_v49 = vpop.f32.mrb[43].mxu0  ;;  %1206 = vmatmul.mubr.bf16.gmra.mrb[32].mxu1 %v8491_v35  ;;  %v674_v51 = vmax.f32 %v496_v38, 0.0 }
 0x16e   :  { %v502_v50 = vadd.f32 %v501_v49, %v8397_v14  ;;  %v675_v53 = vmax.f32 %v498_v44, 0.0 }
 0x16f   :  { %v676_v52 = vmax.f32 %v500_v46, 0.0 }
 0x170   :  { %v677_v54 = vmax.f32 %v502_v50, 0.0 }
 0x171   :  { %v8501_v55 = vpack.c.bf16 %v676_v52, %v674_v51 }
 0x172   :  { %v8503_v56 = vpack.c.bf16 %v677_v54, %v675_v53  ;;  %v505_v57 = vpop.f32.mrb[44].mxu0 }
 0x173   :  { %v506_v58 = vadd.f32 %v505_v57, %v8393_v13  ;;  %v507_v63 = vpop.f32.mrb[45].mxu0 }
 0x174   :  { %v508_v1 = vadd.f32 %v507_v63, %v8397_v14  ;;  %v509_v2 = vpop.f32.mrb[46].mxu0  ;;  %1215 = vmatprep.mubr.bf16.mxu1 %v8503_v56 }
 0x175   :  { %v510_v3 = vadd.f32 %v509_v2, %v8393_v13  ;;  %v511_v4 = vpop.f32.mrb[47].mxu0  ;;  %1216 = vmatmul.mubr.bf16.gmra.mrb[36].mxu1 %v8501_v55  ;;  %v678_v8 = vmax.f32 %v506_v58, 0.0 }
 0x176   :  { %v512_v5 = vadd.f32 %v511_v4, %v8397_v14  ;;  %v679_v15 = vmax.f32 %v508_v1, 0.0 }
 0x177   :  { %v680_v11 = vmax.f32 %v510_v3, 0.0 }
 0x178   :  { %v681_v16 = vmax.f32 %v512_v5, 0.0 }
 0x179   :  { %v8511_v17 = vpack.c.bf16 %v680_v11, %v678_v8 }
 0x17a   :  { %v8513_v18 = vpack.c.bf16 %v681_v16, %v679_v15  ;;  %v515_v21 = vpop.f32.mrb[48].mxu0 }
 0x17b   :  { %v516_v22 = vadd.f32 %v515_v21, %v8393_v13  ;;  %v517_v25 = vpop.f32.mrb[49].mxu0 }
 0x17c   :  { %v518_v26 = vadd.f32 %v517_v25, %v8397_v14  ;;  %v519_v29 = vpop.f32.mrb[50].mxu0  ;;  %1225 = vmatprep.mubr.bf16.mxu1 %v8513_v18 }
 0x17d   :  { %v520_v30 = vadd.f32 %v519_v29, %v8393_v13  ;;  %v521_v31 = vpop.f32.mrb[51].mxu0  ;;  %1226 = vmatmul.mubr.bf16.gmra.mrb[40].mxu1 %v8511_v17  ;;  %v682_v33 = vmax.f32 %v516_v22, 0.0 }
 0x17e   :  { %v522_v32 = vadd.f32 %v521_v31, %v8397_v14  ;;  %v683_v37 = vmax.f32 %v518_v26, 0.0 }
 0x17f   :  { %v684_v34 = vmax.f32 %v520_v30, 0.0 }
 0x180   :  { %v685_v38 = vmax.f32 %v522_v32, 0.0 }
 0x181   :  { %v8521_v42 = vpack.c.bf16 %v684_v34, %v682_v33 }
 0x182   :  { %v8523_v44 = vpack.c.bf16 %v685_v38, %v683_v37  ;;  %v525_v45 = vpop.f32.mrb[52].mxu0 }
 0x183   :  { %v526_v46 = vadd.f32 %v525_v45, %v8393_v13  ;;  %v527_v49 = vpop.f32.mrb[53].mxu0 }
 0x184   :  { %v528_v50 = vadd.f32 %v527_v49, %v8397_v14  ;;  %v529_v51 = vpop.f32.mrb[54].mxu0  ;;  %1235 = vmatprep.mubr.bf16.mxu1 %v8523_v44 }
 0x185   :  { %v530_v52 = vadd.f32 %v529_v51, %v8393_v13  ;;  %v531_v53 = vpop.f32.mrb[55].mxu0  ;;  %1236 = vmatmul.mubr.bf16.gmra.mrb[44].mxu1 %v8521_v42  ;;  %v686_v57 = vmax.f32 %v526_v46, 0.0 }
 0x186   :  { %v532_v54 = vadd.f32 %v531_v53, %v8397_v14  ;;  %v687_v63 = vmax.f32 %v528_v50, 0.0 }
 0x187   :  { %v688_v58 = vmax.f32 %v530_v52, 0.0 }
 0x188   :  { %v689_v1 = vmax.f32 %v532_v54, 0.0 }
 0x189   :  { %v8531_v2 = vpack.c.bf16 %v688_v58, %v686_v57 }
 0x18a   :  { %v8533_v3 = vpack.c.bf16 %v689_v1, %v687_v63  ;;  %v535_v4 = vpop.f32.mrb[56].mxu0 }
 0x18b   :  { %v536_v5 = vadd.f32 %v535_v4, %v8393_v13  ;;  %v537_v8 = vpop.f32.mrb[57].mxu0 }
 0x18c   :  { %v538_v11 = vadd.f32 %v537_v8, %v8397_v14  ;;  %v539_v15 = vpop.f32.mrb[58].mxu0  ;;  %1245 = vmatprep.mubr.bf16.mxu1 %v8533_v3 }
 0x18d   :  { %v540_v16 = vadd.f32 %v539_v15, %v8393_v13  ;;  %v541_v21 = vpop.f32.mrb[59].mxu0  ;;  %1246 = vmatmul.mubr.bf16.gmra.mrb[48].mxu1 %v8531_v2  ;;  %v690_v25 = vmax.f32 %v536_v5, 0.0 }
 0x18e   :  { %v542_v22 = vadd.f32 %v541_v21, %v8397_v14  ;;  %v691_v29 = vmax.f32 %v538_v11, 0.0  ;;  %v7752_v21 = vld [vmem:[%s9592_s0 + $0xa8] sm:$0xff]  }
 0x18f   :  { %v692_v26 = vmax.f32 %v540_v16, 0.0  ;;  %604 = vmatmul.mubr.bf16.gmra.mrb[84].mxu0 %v7752_v21 }
 0x190   :  { %v693_v30 = vmax.f32 %v542_v22, 0.0  ;;  %613 = vmatprep.mubr.bf16.mxu0 %v8174_v0 }
 0x191   :  { %v8541_v31 = vpack.c.bf16 %v692_v26, %v690_v25 }
 0x192   :  { %v8543_v32 = vpack.c.bf16 %v693_v30, %v691_v29  ;;  %v545_v33 = vpop.f32.mrb[60].mxu0 }
 0x193   :  { %v546_v34 = vadd.f32 %v545_v33, %v8393_v13  ;;  %v547_v37 = vpop.f32.mrb[61].mxu0 }
 0x194   :  { %v548_v38 = vadd.f32 %v547_v37, %v8397_v14  ;;  %v549_v45 = vpop.f32.mrb[62].mxu0  ;;  %1255 = vmatprep.mubr.bf16.mxu1 %v8543_v32 }
 0x195   :  { %v550_v46 = vadd.f32 %v549_v45, %v8393_v13  ;;  %v551_v49 = vpop.f32.mrb[63].mxu0  ;;  %1256 = vmatmul.mubr.bf16.gmra.mrb[52].mxu1 %v8541_v31  ;;  %v694_v51 = vmax.f32 %v546_v34, 0.0 }
 0x196   :  { %v552_v50 = vadd.f32 %v551_v49, %v8397_v14  ;;  %v695_v53 = vmax.f32 %v548_v38, 0.0 }
 0x197   :  { %v696_v52 = vmax.f32 %v550_v46, 0.0 }
 0x198   :  { %v697_v54 = vmax.f32 %v552_v50, 0.0 }
 0x199   :  { %v8551_v57 = vpack.c.bf16 %v696_v52, %v694_v51 }
 0x19a   :  { %v8553_v58 = vpack.c.bf16 %v697_v54, %v695_v53  ;;  %v555_v63 = vpop.f32.mrb[64].mxu0 }
 0x19b   :  { %v556_v1 = vadd.f32 %v555_v63, %v8393_v13  ;;  %v557_v4 = vpop.f32.mrb[65].mxu0 }
 0x19c   :  { %v558_v5 = vadd.f32 %v557_v4, %v8397_v14  ;;  %v559_v8 = vpop.f32.mrb[66].mxu0  ;;  %1265 = vmatprep.mubr.bf16.mxu1 %v8553_v58 }
 0x19d   :  { %v560_v11 = vadd.f32 %v559_v8, %v8393_v13  ;;  %v561_v15 = vpop.f32.mrb[67].mxu0  ;;  %1266 = vmatmul.mubr.bf16.gmra.mrb[56].mxu1 %v8551_v57  ;;  %v698_v22 = vmax.f32 %v556_v1, 0.0 }
 0x19e   :  { %v562_v16 = vadd.f32 %v561_v15, %v8397_v14  ;;  %v699_v26 = vmax.f32 %v558_v5, 0.0 }
 0x19f   :  { %v700_v25 = vmax.f32 %v560_v11, 0.0 }
 0x1a0   :  { %v701_v29 = vmax.f32 %v562_v16, 0.0 }
 0x1a1   :  { %v8564_v30 = vpack.c.bf16 %v700_v25, %v698_v22 }
 0x1a2   :  { %v8567_v33 = vpack.c.bf16 %v701_v29, %v699_v26  ;;  %v565_v34 = vpop.f32.mrb[68].mxu0 }
 0x1a3   :  { %v566_v37 = vadd.f32 %v565_v34, %v8393_v13  ;;  %v567_v38 = vpop.f32.mrb[69].mxu0 }
 0x1a4   :  { %v568_v45 = vadd.f32 %v567_v38, %v8397_v14  ;;  %v569_v46 = vpop.f32.mrb[70].mxu0  ;;  %1275 = vmatprep.mubr.bf16.mxu1 %v8567_v33 }
 0x1a5   :  { %v570_v49 = vadd.f32 %v569_v46, %v8393_v13  ;;  %v571_v50 = vpop.f32.mrb[71].mxu0  ;;  %1276 = vmatmul.mubr.bf16.gmra.mrb[60].mxu1 %v8564_v30  ;;  %v702_v52 = vmax.f32 %v566_v37, 0.0 }
 0x1a6   :  { %v572_v51 = vadd.f32 %v571_v50, %v8397_v14  ;;  %v703_v54 = vmax.f32 %v568_v45, 0.0 }
 0x1a7   :  { %v704_v53 = vmax.f32 %v570_v49, 0.0 }
 0x1a8   :  { %v705_v63 = vmax.f32 %v572_v51, 0.0 }
 0x1a9   :  { %v8575_v1 = vpack.c.bf16 %v704_v53, %v702_v52 }
 0x1aa   :  { %v8577_v4 = vpack.c.bf16 %v705_v63, %v703_v54  ;;  %v575_v5 = vpop.f32.mrb[72].mxu0 }
 0x1ab   :  { %v576_v8 = vadd.f32 %v575_v5, %v8393_v13  ;;  %v577_v11 = vpop.f32.mrb[73].mxu0 }
 0x1ac   :  { %v578_v15 = vadd.f32 %v577_v11, %v8397_v14  ;;  %v579_v16 = vpop.f32.mrb[74].mxu0  ;;  %1285 = vmatprep.mubr.bf16.mxu1 %v8577_v4 }
 0x1ad   :  { %v580_v21 = vadd.f32 %v579_v16, %v8393_v13  ;;  %v581_v22 = vpop.f32.mrb[75].mxu0  ;;  %1286 = vmatmul.mubr.bf16.gmra.mrb[64].mxu1 %v8575_v1  ;;  %v706_v26 = vmax.f32 %v576_v8, 0.0 }
 0x1ae   :  { %v582_v25 = vadd.f32 %v581_v22, %v8397_v14  ;;  %v707_v34 = vmax.f32 %v578_v15, 0.0 }
 0x1af   :  { %v708_v29 = vmax.f32 %v580_v21, 0.0 }
 0x1b0   :  { %v709_v37 = vmax.f32 %v582_v25, 0.0 }
 0x1b1   :  { %v8585_v38 = vpack.c.bf16 %v708_v29, %v706_v26 }
 0x1b2   :  { %v8587_v45 = vpack.c.bf16 %v709_v37, %v707_v34  ;;  %v585_v46 = vpop.f32.mrb[76].mxu0 }
 0x1b3   :  { %v586_v49 = vadd.f32 %v585_v46, %v8393_v13  ;;  %v587_v50 = vpop.f32.mrb[77].mxu0 }
 0x1b4   :  { %v588_v51 = vadd.f32 %v587_v50, %v8397_v14  ;;  %v589_v52 = vpop.f32.mrb[78].mxu0  ;;  %1295 = vmatprep.mubr.bf16.mxu1 %v8587_v45 }
 0x1b5   :  { %v590_v53 = vadd.f32 %v589_v52, %v8393_v13  ;;  %v591_v54 = vpop.f32.mrb[79].mxu0  ;;  %1296 = vmatmul.mubr.bf16.gmra.mrb[68].mxu1 %v8585_v38  ;;  %v710_v5 = vmax.f32 %v586_v49, 0.0 }
 0x1b6   :  { %v592_v63 = vadd.f32 %v591_v54, %v8397_v14  ;;  %v711_v11 = vmax.f32 %v588_v51, 0.0 }
 0x1b7   :  { %v712_v8 = vmax.f32 %v590_v53, 0.0 }
 0x1b8   :  { %v713_v15 = vmax.f32 %v592_v63, 0.0 }
 0x1b9   :  { %v8595_v16 = vpack.c.bf16 %v712_v8, %v710_v5  ;;  %v7725_v5 = vld [vmem:[#allocation4 + $0x200] ss:$8 sps:$4 sm:$0xff]   ;;  %v7730_v8 = vld [vmem:[#allocation4 + $0x214] ss:$8 sps:$4 sm:$0xff]  }
 0x1ba   :  { %v8597_v21 = vpack.c.bf16 %v713_v15, %v711_v11  ;;  %v595_v22 = vpop.f32.mrb[80].mxu0  ;;  %v7728_v11 = vld [vmem:[#allocation4 + $0x210] ss:$8 sps:$4 sm:$0xff]   ;;  %v7733_v15 = vld [vmem:[#allocation4 + $0x224] ss:$8 sps:$4 sm:$0xff]  }
 0x1bb   :  { %v596_v25 = vadd.f32 %v595_v22, %v8393_v13  ;;  %v597_v26 = vpop.f32.mrb[81].mxu0  ;;  %v7731_v22 = vld [vmem:[#allocation4 + $0x220] ss:$8 sps:$4 sm:$0xff]  }
 0x1bc   :  { %v598_v29 = vadd.f32 %v597_v26, %v8397_v14  ;;  %v599_v34 = vpop.f32.mrb[82].mxu0  ;;  %1305 = vmatprep.mubr.bf16.mxu1 %v8597_v21  ;;  %v7739_v26 = vld [vmem:[#allocation4 + $0x244] ss:$8 sps:$4 sm:$0xff]  }
 0x1bd   :  { %v600_v37 = vadd.f32 %v599_v34, %v8393_v13  ;;  %v601_v46 = vpop.f32.mrb[83].mxu0  ;;  %1306 = vmatmul.mubr.bf16.gmra.mrb[72].mxu1 %v8595_v16  ;;  %v714_v50 = vmax.f32 %v596_v25, 0.0  ;;  %v7736_v25 = vld [vmem:[#allocation4 + $0x234] ss:$8 sps:$4 sm:$0xff]   ;;  %v7745_v34 = vld [vmem:[#allocation4 + $0x264] ss:$8 sps:$4 sm:$0xff]  }
 0x1be   :  { %v602_v49 = vadd.f32 %v601_v46, %v8397_v14  ;;  %v715_v52 = vmax.f32 %v598_v29, 0.0  ;;  %v7742_v29 = vld [vmem:[#allocation4 + $0x254] ss:$8 sps:$4 sm:$0xff]   ;;  %v7746_v46 = vld [vmem:[#allocation4 + $0x270] ss:$8 sps:$4 sm:$0xff]  }
 0x1bf   :  { %v716_v51 = vmax.f32 %v600_v37, 0.0  ;;  %v7748_v37 = vld [vmem:[#allocation4 + $0x274] ss:$8 sps:$4 sm:$0xff]  }
 0x1c0   :  { %v717_v53 = vmax.f32 %v602_v49, 0.0  ;;  %v7751_v49 = vld [vmem:[#allocation4 + $0x284] ss:$8 sps:$4 sm:$0xff]  }
 0x1c1   :  { %v8605_v54 = vpack.c.bf16 %v716_v51, %v714_v50  ;;  %v7749_v50 = vld [vmem:[#allocation4 + $0x280] ss:$8 sps:$4 sm:$0xff]   ;;  %v7755_v51 = vld [vmem:[#allocation4 + $0x294] ss:$8 sps:$4 sm:$0xff]  }
 0x1c2   :  { %v8607_v63 = vpack.c.bf16 %v717_v53, %v715_v52  ;;  %v7753_v52 = vld [vmem:[#allocation4 + $0x290] ss:$8 sps:$4 sm:$0xff]   ;;  %v7758_v53 = vld [vmem:[#allocation4 + $0x2a4] ss:$8 sps:$4 sm:$0xff]  }
 0x1c4   :  { %1315 = vmatprep.mubr.bf16.mxu1 %v8607_v63 }
 0x1c5   :  { %1316 = vmatmul.mubr.bf16.gmra.mrb[76].mxu1 %v8605_v54 }
 0x1c6   :  { %1518 = vmatprep.mubr.bf16.mxu1 %v8405_v28  ;;  %v7734_v28 = vld [vmem:[#allocation4 + $0x230] ss:$8 sps:$4 sm:$0xff]  }
 0x1cd   :  { %1519 = vmatmul.mubr.bf16.vlgmr.msra.gmra.mrb[0].mxu1 %v8403_v27  ;;  %v7737_v27 = vld [vmem:[#allocation4 + $0x240] ss:$8 sps:$4 sm:$0xff]  }
 0x1ce   :  { %1953 = vmatpush1.bf16.msra.mxu1 %v7725_v5  ;;  %1528 = vmatprep.mubr.bf16.mxu1 %v8413_v43  ;;  %v7740_v43 = vld [vmem:[#allocation4 + $0x250] ss:$8 sps:$4 sm:$0xff]   ;;  %v7756_v5 = vld [vmem:[#allocation4 + $0x2a0] ss:$8 sps:$4 sm:$0xff]  }
 0x1cf   :  { %1954 = vmatprep.subr.bf16.mxu1 %v7730_v8  ;;  %v7761_v8 = vld [vmem:[#allocation4 + $0x2b4] ss:$8 sps:$4 sm:$0xff]  }
 0x1d2   :  { %1955 = vmatpush1.bf16.msra.mxu1 %v7728_v11  ;;  %v7759_v11 = vld [vmem:[#allocation4 + $0x2b0] ss:$8 sps:$4 sm:$0xff]  }
 0x1d3   :  { %1956 = vmatprep.subr.bf16.mxu1 %v7733_v15  ;;  %v7764_v15 = vld [vmem:[#allocation4 + $0x2c4] ss:$8 sps:$4 sm:$0xff]  }
 0x1d5   :  { %1529 = vmatmul.mubr.bf16.gmra.mrb[4].mxu1 %v8411_v41  ;;  %v7743_v41 = vld [vmem:[#allocation4 + $0x260] ss:$8 sps:$4 sm:$0xff]  }
 0x1d6   :  { %1538 = vmatprep.mubr.bf16.mxu1 %v8423_v60  ;;  %1957 = vmatpush1.bf16.msra.mxu1 %v7731_v22  ;;  %v7762_v22 = vld [vmem:[#allocation4 + $0x2c0] ss:$8 sps:$4 sm:$0xff]  }
 0x1d7   :  { %1958 = vmatprep.subr.bf16.mxu1 %v7736_v25  ;;  %v7767_v25 = vld [vmem:[#allocation4 + $0x2d4] ss:$8 sps:$4 sm:$0xff]  }
 0x1da   :  { %1959 = vmatpush1.bf16.msra.mxu1 %v7734_v28  ;;  %v7765_v28 = vld [vmem:[#allocation4 + $0x2d0] ss:$8 sps:$4 sm:$0xff]  }
 0x1db   :  { %1960 = vmatprep.subr.bf16.mxu1 %v7739_v26  ;;  %v7770_v26 = vld [vmem:[#allocation4 + $0x2e4] ss:$8 sps:$4 sm:$0xff]  }
 0x1dd   :  { %1539 = vmatmul.mubr.bf16.gmra.mrb[8].mxu1 %v8421_v59 }
 0x1de   :  { %1548 = vmatprep.mubr.bf16.mxu1 %v8433_v20  ;;  %1961 = vmatpush1.bf16.msra.mxu1 %v7737_v27  ;;  %v7768_v27 = vld [vmem:[#allocation4 + $0x2e0] ss:$8 sps:$4 sm:$0xff]  }
 0x1df   :  { %1962 = vmatprep.subr.bf16.mxu1 %v7742_v29  ;;  %v7773_v29 = vld [vmem:[#allocation4 + $0x2f4] ss:$8 sps:$4 sm:$0xff]  }
 0x1e2   :  { %1963 = vmatpush1.bf16.msra.mxu1 %v7740_v43  ;;  %v7771_v43 = vld [vmem:[#allocation4 + $0x2f0] ss:$8 sps:$4 sm:$0xff]  }
 0x1e3   :  { %1964 = vmatprep.subr.bf16.mxu1 %v7745_v34  ;;  %v7776_v34 = vld [vmem:[#allocation4 + $0x304] ss:$8 sps:$4 sm:$0xff]  }
 0x1e5   :  { %1549 = vmatmul.mubr.bf16.gmra.mrb[12].mxu1 %v8431_v19 }
 0x1e6   :  { %1558 = vmatprep.mubr.bf16.mxu1 %v8443_v40  ;;  %1965 = vmatpush1.bf16.msra.mxu1 %v7743_v41  ;;  %v7801_v41 = vld [vmem:[%s9592_s0 + $0xb0] sm:$0xff]  }
 0x1e7   :  { %1966 = vmatprep.subr.bf16.mxu1 %v7748_v37  ;;  %614 = vmatmul.mubr.bf16.gmra.mrb[88].mxu0 %v7801_v41  ;;  %v7779_v37 = vld [vmem:[#allocation4 + $0x314] ss:$8 sps:$4 sm:$0xff]  }
 0x1e8   :  { %623 = vmatprep.mubr.bf16.mxu0 %v8174_v0  ;;  %v7774_v0 = vld [vmem:[#allocation4 + $0x300] ss:$8 sps:$4 sm:$0xff]  }
 0x1ea   :  { %1967 = vmatpush1.bf16.msra.mxu1 %v7746_v46  ;;  %v7777_v46 = vld [vmem:[#allocation4 + $0x310] ss:$8 sps:$4 sm:$0xff]  }
 0x1eb   :  { %1968 = vmatprep.subr.bf16.mxu1 %v7751_v49  ;;  %v7782_v49 = vld [vmem:[#allocation4 + $0x324] ss:$8 sps:$4 sm:$0xff]  }
 0x1ed   :  { %1559 = vmatmul.mubr.bf16.gmra.mrb[16].mxu1 %v8441_v39 }
 0x1ee   :  { %1568 = vmatprep.mubr.bf16.mxu1 %v8453_v62  ;;  %1969 = vmatpush1.bf16.msra.mxu1 %v7749_v50  ;;  %v7780_v50 = vld [vmem:[#allocation4 + $0x320] ss:$8 sps:$4 sm:$0xff]  }
 0x1ef   :  { %1970 = vmatprep.subr.bf16.mxu1 %v7755_v51  ;;  %v7785_v51 = vld [vmem:[#allocation4 + $0x334] ss:$8 sps:$4 sm:$0xff]  }
 0x1f2   :  { %1971 = vmatpush1.bf16.msra.mxu1 %v7753_v52 }
 0x1f3   :  { %1972 = vmatprep.subr.bf16.mxu1 %v7758_v53  ;;  %v7788_v53 = vld [vmem:[#allocation4 + $0x344] ss:$8 sps:$4 sm:$0xff]  }
 0x1f5   :  { %1569 = vmatmul.mubr.bf16.gmra.mrb[20].mxu1 %v8451_v61 }
 0x1f6   :  { %1578 = vmatprep.mubr.bf16.mxu1 %v8463_v24  ;;  %1973 = vmatpush1.bf16.msra.mxu1 %v7756_v5 }
 0x1f7   :  { %1974 = vmatprep.subr.bf16.mxu1 %v7761_v8 }
 0x1fa   :  { %1975 = vmatpush1.bf16.msra.mxu1 %v7759_v11 }
 0x1fb   :  { %1976 = vmatprep.subr.bf16.mxu1 %v7764_v15 }
 0x1fd   :  { %1579 = vmatmul.mubr.bf16.gmra.mrb[24].mxu1 %v8461_v23 }
 0x1fe   :  { %1588 = vmatprep.mubr.bf16.mxu1 %v8473_v48  ;;  %1977 = vmatpush1.bf16.msra.mxu1 %v7762_v22 }
 0x1ff   :  { %1978 = vmatprep.subr.bf16.mxu1 %v7767_v25 }
 0x202   :  { %1979 = vmatpush1.bf16.msra.mxu1 %v7765_v28  ;;  %v7786_v28 = vld [vmem:[#allocation4 + $0x340] ss:$8 sps:$4 sm:$0xff]  }
 0x203   :  { %1980 = vmatprep.subr.bf16.mxu1 %v7770_v26 }
 0x205   :  { %1589 = vmatmul.mubr.bf16.gmra.mrb[28].mxu1 %v8471_v47 }
 0x206   :  { %1598 = vmatprep.mubr.bf16.mxu1 %v8483_v7  ;;  %1981 = vmatpush1.bf16.msra.mxu1 %v7768_v27 }
 0x207   :  { %1982 = vmatprep.subr.bf16.mxu1 %v7773_v29  ;;  %v7791_v29 = vld [vmem:[#allocation4 + $0x354] ss:$8 sps:$4 sm:$0xff]  }
 0x20a   :  { %1983 = vmatpush1.bf16.msra.mxu1 %v7771_v43 }
 0x20b   :  { %2498 = vmatprep.subr.bf16.mxu1 %v7776_v34 }
 0x20d   :  { %1599 = vmatmul.mubr.bf16.gmra.mrb[32].mxu1 %v8481_v6 }
 0x20e   :  { %1608 = vmatprep.mubr.bf16.mxu1 %v8493_v36 }
 0x215   :  { %1609 = vmatmul.mubr.bf16.gmra.mrb[36].mxu1 %v8491_v35 }
 0x216   :  { %1618 = vmatprep.mubr.bf16.mxu1 %v8503_v56 }
 0x21d   :  { %1619 = vmatmul.mubr.bf16.gmra.mrb[40].mxu1 %v8501_v55 }
 0x21e   :  { %1628 = vmatprep.mubr.bf16.mxu1 %v8513_v18 }
 0x225   :  { %1629 = vmatmul.mubr.bf16.gmra.mrb[44].mxu1 %v8511_v17 }
 0x226   :  { %1638 = vmatprep.mubr.bf16.mxu1 %v8523_v44 }
 0x22d   :  { %1639 = vmatmul.mubr.bf16.gmra.mrb[48].mxu1 %v8521_v42 }
 0x22e   :  { %1648 = vmatprep.mubr.bf16.mxu1 %v8533_v3 }
 0x235   :  { %1649 = vmatmul.mubr.bf16.gmra.mrb[52].mxu1 %v8531_v2 }
 0x236   :  { %1658 = vmatprep.mubr.bf16.mxu1 %v8543_v32 }
 0x23d   :  { %1659 = vmatmul.mubr.bf16.gmra.mrb[56].mxu1 %v8541_v31 }
 0x23e   :  { %1668 = vmatprep.mubr.bf16.mxu1 %v8553_v58 }
 0x245   :  { %1669 = vmatmul.mubr.bf16.gmra.mrb[60].mxu1 %v8551_v57 }
 0x246   :  { %1678 = vmatprep.mubr.bf16.mxu1 %v8567_v33 }
 0x24d   :  { %1679 = vmatmul.mubr.bf16.gmra.mrb[64].mxu1 %v8564_v30 }
 0x24e   :  { %1688 = vmatprep.mubr.bf16.mxu1 %v8577_v4 }
 0x255   :  { %1689 = vmatmul.mubr.bf16.gmra.mrb[68].mxu1 %v8575_v1 }
 0x256   :  { %1698 = vmatprep.mubr.bf16.mxu1 %v8587_v45 }
 0x25d   :  { %1699 = vmatmul.mubr.bf16.gmra.mrb[72].mxu1 %v8585_v38 }
 0x25e   :  { %1708 = vmatprep.mubr.bf16.mxu1 %v8597_v21 }
 0x262   :  { %v605_v52 = vpop.f32.mrb[84].mxu0 }
 0x263   :  { %v607_v5 = vpop.f32.mrb[85].mxu0 }
 0x264   :  { %v608_v8 = vadd.f32 %v607_v5, %v8397_v14  ;;  %v609_v11 = vpop.f32.mrb[86].mxu0  ;;  %v7807_v5 = vld [vmem:[#allocation4 + $0x3a4] ss:$8 sps:$4 sm:$0xff]  }
 0x265   :  { %1709 = vmatmul.mubr.bf16.gmra.mrb[76].mxu1 %v8595_v16  ;;  %v610_v22 = vadd.f32 %v609_v11, %v8393_v13  ;;  %v611_v25 = vpop.f32.mrb[87].mxu0  ;;  %v7810_v11 = vld [vmem:[#allocation4 + $0x3b4] ss:$8 sps:$4 sm:$0xff]  }
 0x266   :  { %1984 = vmatprep.mubr.bf16.mxu1 %v8423_v60  ;;  %v7783_v60 = vld [vmem:[#allocation4 + $0x330] ss:$8 sps:$4 sm:$0xff]   ;;  %v719_v26 = vmax.f32 %v608_v8, 0.0  ;;  %v612_v27 = vadd.f32 %v611_v25, %v8397_v14  ;;  %v7805_v8 = vld [vmem:[#allocation4 + $0x3a0] ss:$8 sps:$4 sm:$0xff]  }
 0x267   :  { %v720_v43 = vmax.f32 %v610_v22, 0.0  ;;  %v7813_v22 = vld [vmem:[#allocation4 + $0x3c4] ss:$8 sps:$4 sm:$0xff]   ;;  %v7811_v25 = vld [vmem:[#allocation4 + $0x3c0] ss:$8 sps:$4 sm:$0xff]  }
 0x268   :  { %v721_v34 = vmax.f32 %v612_v27, 0.0  ;;  %v7819_v27 = vld [vmem:[#allocation4 + $0x3e4] ss:$8 sps:$4 sm:$0xff]  }
 0x26d   :  { %1985 = vmatmul.mubr.bf16.vlgmr.msra.gmra.mrb[0].mxu1 %v8421_v59  ;;  %v606_v59 = vadd.f32 %v605_v52, %v8393_v13  ;;  %v7798_v52 = vld [vmem:[#allocation4 + $0x380] ss:$8 sps:$4 sm:$0xff]  }
 0x26e   :  { %2499 = vmatpush1.bf16.msra.mxu1 %v7774_v0  ;;  %1994 = vmatprep.mubr.bf16.mxu1 %v8433_v20  ;;  %v7789_v0 = vld [vmem:[#allocation4 + $0x350] ss:$8 sps:$4 sm:$0xff]  }
 0x26f   :  { %2500 = vmatprep.subr.bf16.mxu1 %v7779_v37  ;;  %v718_v15 = vmax.f32 %v606_v59, 0.0  ;;  %v8668_v37 = vpack.c.bf16 %v721_v34, %v719_v26  ;;  %v7802_v59 = vld [vmem:[#allocation4 + $0x390] ss:$8 sps:$4 sm:$0xff]  }
 0x270   :  { %v7814_v26 = vld [vmem:[#allocation4 + $0x3d0] ss:$8 sps:$4 sm:$0xff]  }
 0x271   :  { %v8665_v41 = vpack.c.bf16 %v720_v43, %v718_v15  ;;  %v7808_v15 = vld [vmem:[#allocation4 + $0x3b0] ss:$8 sps:$4 sm:$0xff]   ;;  %v7822_v43 = vld [vmem:[#allocation4 + $0x3f4] ss:$8 sps:$4 sm:$0xff]  }
 0x272   :  { %2501 = vmatpush1.bf16.msra.mxu1 %v7777_v46  ;;  %v7794_v46 = vld [vmem:[#allocation4 + $0x364] ss:$8 sps:$4 sm:$0xff]   ;;  %v7820_v34 = vld [vmem:[#allocation4 + $0x3f0] ss:$8 sps:$4 sm:$0xff]  }
 0x273   :  { %2502 = vmatprep.subr.bf16.mxu1 %v7782_v49  ;;  %v7792_v49 = vld [vmem:[#allocation4 + $0x360] ss:$8 sps:$4 sm:$0xff]  }
 0x275   :  { %1995 = vmatmul.mubr.bf16.gmra.mrb[4].mxu1 %v8431_v19 }
 0x276   :  { %2004 = vmatprep.mubr.bf16.mxu1 %v8443_v40  ;;  %2503 = vmatpush1.bf16.msra.mxu1 %v7780_v50  ;;  %v7797_v50 = vld [vmem:[#allocation4 + $0x374] ss:$8 sps:$4 sm:$0xff]  }
 0x277   :  { %2504 = vmatprep.subr.bf16.mxu1 %v7785_v51  ;;  %v7795_v51 = vld [vmem:[#allocation4 + $0x370] ss:$8 sps:$4 sm:$0xff]  }
 0x27a   :  { %2505 = vmatpush1.bf16.msra.mxu1 %v7783_v60  ;;  %v7800_v60 = vld [vmem:[#allocation4 + $0x384] ss:$8 sps:$4 sm:$0xff]  }
 0x27b   :  { %2506 = vmatprep.subr.bf16.mxu1 %v7788_v53  ;;  %v7804_v53 = vld [vmem:[#allocation4 + $0x394] ss:$8 sps:$4 sm:$0xff]  }
 0x27d   :  { %2005 = vmatmul.mubr.bf16.gmra.mrb[8].mxu1 %v8441_v39 }
 0x27e   :  { %2014 = vmatprep.mubr.bf16.mxu1 %v8453_v62  ;;  %2507 = vmatpush1.bf16.msra.mxu1 %v7786_v28  ;;  %v7816_v28 = vld [vmem:[#allocation4 + $0x3d4] ss:$8 sps:$4 sm:$0xff]  }
 0x27f   :  { %2508 = vmatprep.subr.bf16.mxu1 %v7791_v29  ;;  %v7817_v29 = vld [vmem:[#allocation4 + $0x3e0] ss:$8 sps:$4 sm:$0xff]  }
 0x282   :  { %2509 = vmatpush1.bf16.msra.mxu1 %v7789_v0  ;;  %v7825_v0 = vld [vmem:[#allocation4 + $0x404] ss:$8 sps:$4 sm:$0xff]  }
 0x283   :  { %2510 = vmatprep.subr.bf16.mxu1 %v7794_v46  ;;  %v7853_v46 = vld [vmem:[%s9592_s0 + $0xb8] sm:$0xff]  }
 0x284   :  { %624 = vmatmul.mubr.bf16.gmra.mrb[92].mxu0 %v7853_v46 }
 0x285   :  { %2015 = vmatmul.mubr.bf16.gmra.mrb[12].mxu1 %v8451_v61 }
 0x286   :  { %2024 = vmatprep.mubr.bf16.mxu1 %v8463_v24  ;;  %2511 = vmatpush1.bf16.msra.mxu1 %v7792_v49  ;;  %v7823_v49 = vld [vmem:[#allocation4 + $0x400] ss:$8 sps:$4 sm:$0xff]  }
 0x287   :  { %2512 = vmatprep.subr.bf16.mxu1 %v7797_v50  ;;  %v7828_v50 = vld [vmem:[#allocation4 + $0x414] ss:$8 sps:$4 sm:$0xff]  }
 0x28a   :  { %2513 = vmatpush1.bf16.msra.mxu1 %v7795_v51  ;;  %v7826_v51 = vld [vmem:[#allocation4 + $0x410] ss:$8 sps:$4 sm:$0xff]  }
 0x28b   :  { %2514 = vmatprep.subr.bf16.mxu1 %v7800_v60  ;;  %v7831_v60 = vld [vmem:[#allocation4 + $0x424] ss:$8 sps:$4 sm:$0xff]  }
 0x28d   :  { %2025 = vmatmul.mubr.bf16.gmra.mrb[16].mxu1 %v8461_v23 }
 0x28e   :  { %2034 = vmatprep.mubr.bf16.mxu1 %v8473_v48  ;;  %2515 = vmatpush1.bf16.msra.mxu1 %v7798_v52  ;;  %v7829_v52 = vld [vmem:[#allocation4 + $0x420] ss:$8 sps:$4 sm:$0xff]  }
 0x28f   :  { %2516 = vmatprep.subr.bf16.mxu1 %v7804_v53  ;;  %v7834_v53 = vld [vmem:[#allocation4 + $0x434] ss:$8 sps:$4 sm:$0xff]  }
 0x292   :  { %2517 = vmatpush1.bf16.msra.mxu1 %v7802_v59 }
 0x293   :  { %2518 = vmatprep.subr.bf16.mxu1 %v7807_v5  ;;  %v7837_v5 = vld [vmem:[#allocation4 + $0x444] ss:$8 sps:$4 sm:$0xff]  }
 0x295   :  { %2035 = vmatmul.mubr.bf16.gmra.mrb[20].mxu1 %v8471_v47 }
 0x296   :  { %2044 = vmatprep.mubr.bf16.mxu1 %v8483_v7  ;;  %2519 = vmatpush1.bf16.msra.mxu1 %v7805_v8 }
 0x297   :  { %2520 = vmatprep.subr.bf16.mxu1 %v7810_v11 }
 0x29a   :  { %2521 = vmatpush1.bf16.msra.mxu1 %v7808_v15 }
 0x29b   :  { %2522 = vmatprep.subr.bf16.mxu1 %v7813_v22 }
 0x29d   :  { %2045 = vmatmul.mubr.bf16.gmra.mrb[24].mxu1 %v8481_v6 }
 0x29e   :  { %2054 = vmatprep.mubr.bf16.mxu1 %v8493_v36  ;;  %2523 = vmatpush1.bf16.msra.mxu1 %v7811_v25 }
 0x29f   :  { %2524 = vmatprep.subr.bf16.mxu1 %v7816_v28 }
 0x2a2   :  { %2525 = vmatpush1.bf16.msra.mxu1 %v7814_v26  ;;  %v7835_v26 = vld [vmem:[#allocation4 + $0x440] ss:$8 sps:$4 sm:$0xff]  }
 0x2a3   :  { %2526 = vmatprep.subr.bf16.mxu1 %v7819_v27 }
 0x2a5   :  { %2055 = vmatmul.mubr.bf16.gmra.mrb[28].mxu1 %v8491_v35 }
 0x2a6   :  { %2064 = vmatprep.mubr.bf16.mxu1 %v8503_v56  ;;  %2527 = vmatpush1.bf16.msra.mxu1 %v7817_v29 }
 0x2a7   :  { %2528 = vmatprep.subr.bf16.mxu1 %v7822_v43  ;;  %v7840_v43 = vld [vmem:[#allocation4 + $0x454] ss:$8 sps:$4 sm:$0xff]  }
 0x2aa   :  { %2529 = vmatpush1.bf16.msra.mxu1 %v7820_v34 }
 0x2ab   :  { %3044 = vmatprep.subr.bf16.mxu1 %v7825_v0 }
 0x2ad   :  { %2065 = vmatmul.mubr.bf16.gmra.mrb[32].mxu1 %v8501_v55 }
 0x2ae   :  { %2074 = vmatprep.mubr.bf16.mxu1 %v8513_v18 }
 0x2b5   :  { %2075 = vmatmul.mubr.bf16.gmra.mrb[36].mxu1 %v8511_v17 }
 0x2b6   :  { %2084 = vmatprep.mubr.bf16.mxu1 %v8523_v44 }
 0x2ba   :  { %v615_v59 = vpop.f32.mrb[88].mxu0 }
 0x2bb   :  { %v617_v8 = vpop.f32.mrb[89].mxu0 }
 0x2bc   :  { %v618_v11 = vadd.f32 %v617_v8, %v8397_v14  ;;  %v619_v15 = vpop.f32.mrb[90].mxu0  ;;  %v7856_v8 = vld [vmem:[#allocation4 + $0x4a4] ss:$8 sps:$4 sm:$0xff]  }
 0x2bd   :  { %2085 = vmatmul.mubr.bf16.gmra.mrb[40].mxu1 %v8521_v42  ;;  %v620_v25 = vadd.f32 %v619_v15, %v8393_v13  ;;  %v621_v28 = vpop.f32.mrb[91].mxu0  ;;  %v7859_v15 = vld [vmem:[#allocation4 + $0x4b4] ss:$8 sps:$4 sm:$0xff]  }
 0x2be   :  { %2094 = vmatprep.mubr.bf16.mxu1 %v8533_v3  ;;  %v723_v27 = vmax.f32 %v618_v11, 0.0  ;;  %v622_v29 = vadd.f32 %v621_v28, %v8397_v14  ;;  %v7854_v11 = vld [vmem:[#allocation4 + $0x4a0] ss:$8 sps:$4 sm:$0xff]  }
 0x2bf   :  { %v724_v34 = vmax.f32 %v620_v25, 0.0  ;;  %v7862_v25 = vld [vmem:[#allocation4 + $0x4c4] ss:$8 sps:$4 sm:$0xff]   ;;  %v7860_v28 = vld [vmem:[#allocation4 + $0x4c0] ss:$8 sps:$4 sm:$0xff]  }
 0x2c0   :  { %v725_v0 = vmax.f32 %v622_v29, 0.0  ;;  %v7868_v29 = vld [vmem:[#allocation4 + $0x4e4] ss:$8 sps:$4 sm:$0xff]  }
 0x2c5   :  { %2095 = vmatmul.mubr.bf16.gmra.mrb[44].mxu1 %v8531_v2 }
 0x2c6   :  { %2104 = vmatprep.mubr.bf16.mxu1 %v8543_v32 }
 0x2cd   :  { %2105 = vmatmul.mubr.bf16.gmra.mrb[48].mxu1 %v8541_v31 }
 0x2ce   :  { %2114 = vmatprep.mubr.bf16.mxu1 %v8553_v58 }
 0x2d5   :  { %2115 = vmatmul.mubr.bf16.gmra.mrb[52].mxu1 %v8551_v57 }
 0x2d6   :  { %2124 = vmatprep.mubr.bf16.mxu1 %v8567_v33 }
 0x2dd   :  { %2125 = vmatmul.mubr.bf16.gmra.mrb[56].mxu1 %v8564_v30 }
 0x2de   :  { %2134 = vmatprep.mubr.bf16.mxu1 %v8577_v4 }
 0x2e5   :  { %2135 = vmatmul.mubr.bf16.gmra.mrb[60].mxu1 %v8575_v1 }
 0x2e6   :  { %2144 = vmatprep.mubr.bf16.mxu1 %v8587_v45 }
 0x2ed   :  { %2145 = vmatmul.mubr.bf16.gmra.mrb[64].mxu1 %v8585_v38 }
 0x2ee   :  { %2154 = vmatprep.mubr.bf16.mxu1 %v8597_v21 }
 0x2f5   :  { %2155 = vmatmul.mubr.bf16.gmra.mrb[68].mxu1 %v8595_v16 }
 0x2f6   :  { %2164 = vmatprep.mubr.bf16.mxu1 %v8607_v63 }
 0x2fd   :  { %2165 = vmatmul.mubr.bf16.gmra.mrb[72].mxu1 %v8605_v54 }
 0x2fe   :  { %2174 = vmatprep.mubr.bf16.mxu1 %v8668_v37 }
 0x305   :  { %2175 = vmatmul.mubr.bf16.gmra.mrb[76].mxu1 %v8665_v41 }
 0x306   :  { %2530 = vmatprep.mubr.bf16.mxu1 %v8433_v20  ;;  %v7832_v20 = vld [vmem:[#allocation4 + $0x430] ss:$8 sps:$4 sm:$0xff]  }
 0x30d   :  { %2531 = vmatmul.mubr.bf16.vlgmr.msra.gmra.mrb[0].mxu1 %v8431_v19  ;;  %v616_v19 = vadd.f32 %v615_v59, %v8393_v13  ;;  %v7847_v59 = vld [vmem:[#allocation4 + $0x480] ss:$8 sps:$4 sm:$0xff]  }
 0x30e   :  { %3045 = vmatpush1.bf16.msra.mxu1 %v7823_v49  ;;  %2540 = vmatprep.mubr.bf16.mxu1 %v8443_v40  ;;  %v7838_v49 = vld [vmem:[#allocation4 + $0x450] ss:$8 sps:$4 sm:$0xff]  }
 0x30f   :  { %3046 = vmatprep.subr.bf16.mxu1 %v7828_v50  ;;  %v722_v22 = vmax.f32 %v616_v19, 0.0  ;;  %v8719_v50 = vpack.c.bf16 %v725_v0, %v723_v27  ;;  %v7850_v19 = vld [vmem:[#allocation4 + $0x490] ss:$8 sps:$4 sm:$0xff]  }
 0x310   :  { %v7863_v27 = vld [vmem:[#allocation4 + $0x4d0] ss:$8 sps:$4 sm:$0xff]  }
 0x311   :  { %v8716_v46 = vpack.c.bf16 %v724_v34, %v722_v22  ;;  %v7857_v22 = vld [vmem:[#allocation4 + $0x4b0] ss:$8 sps:$4 sm:$0xff]   ;;  %v7871_v34 = vld [vmem:[#allocation4 + $0x4f4] ss:$8 sps:$4 sm:$0xff]  }
 0x312   :  { %3047 = vmatpush1.bf16.msra.mxu1 %v7826_v51  ;;  %v7843_v51 = vld [vmem:[#allocation4 + $0x464] ss:$8 sps:$4 sm:$0xff]   ;;  %v7869_v0 = vld [vmem:[#allocation4 + $0x4f0] ss:$8 sps:$4 sm:$0xff]  }
 0x313   :  { %3048 = vmatprep.subr.bf16.mxu1 %v7831_v60  ;;  %v7841_v60 = vld [vmem:[#allocation4 + $0x460] ss:$8 sps:$4 sm:$0xff]  }
 0x315   :  { %2541 = vmatmul.mubr.bf16.gmra.mrb[4].mxu1 %v8441_v39 }
 0x316   :  { %2550 = vmatprep.mubr.bf16.mxu1 %v8453_v62  ;;  %3049 = vmatpush1.bf16.msra.mxu1 %v7829_v52  ;;  %v7846_v52 = vld [vmem:[#allocation4 + $0x474] ss:$8 sps:$4 sm:$0xff]  }
 0x317   :  { %3050 = vmatprep.subr.bf16.mxu1 %v7834_v53  ;;  %v7844_v53 = vld [vmem:[#allocation4 + $0x470] ss:$8 sps:$4 sm:$0xff]  }
 0x31a   :  { %3051 = vmatpush1.bf16.msra.mxu1 %v7832_v20  ;;  %v7849_v20 = vld [vmem:[#allocation4 + $0x484] ss:$8 sps:$4 sm:$0xff]  }
 0x31b   :  { %3052 = vmatprep.subr.bf16.mxu1 %v7837_v5  ;;  %v7852_v5 = vld [vmem:[#allocation4 + $0x494] ss:$8 sps:$4 sm:$0xff]  }
 0x31d   :  { %2551 = vmatmul.mubr.bf16.gmra.mrb[8].mxu1 %v8451_v61 }
 0x31e   :  { %2560 = vmatprep.mubr.bf16.mxu1 %v8463_v24  ;;  %3053 = vmatpush1.bf16.msra.mxu1 %v7835_v26  ;;  %v7865_v26 = vld [vmem:[#allocation4 + $0x4d4] ss:$8 sps:$4 sm:$0xff]  }
 0x31f   :  { %3054 = vmatprep.subr.bf16.mxu1 %v7840_v43  ;;  %v7866_v43 = vld [vmem:[#allocation4 + $0x4e0] ss:$8 sps:$4 sm:$0xff]  }
 0x322   :  { %3055 = vmatpush1.bf16.msra.mxu1 %v7838_v49  ;;  %v8175_v49 = vmov 0.0  }
 0x323   :  { %3056 = vmatprep.subr.bf16.mxu1 %v7843_v51  ;;  %6835 = vmatprep.subr.bf16.mxu0 %v8175_v49  ;;  %v7872_v51 = vld [vmem:[#allocation6 + $0x40] sm:$0xff]  }
 0x324   :  { %6836 = vmatpush3.bf16.msra.mxu0 %v7872_v51  ;;  %6851 = vmatprep.mubr.msk.bf16.mxu0 %vm8176_vm0, %v8175_v49 }
 0x325   :  { %2561 = vmatmul.mubr.bf16.gmra.mrb[12].mxu1 %v8461_v23  ;;  %6837 = vmatprep.subr.bf16.mxu0 %v8175_v49 }
 0x326   :  { %2570 = vmatprep.mubr.bf16.mxu1 %v8473_v48  ;;  %3057 = vmatpush1.bf16.msra.mxu1 %v7841_v60  ;;  %v7873_v60 = vld [vmem:[#allocation6 + $0x48] sm:$0xff]  }
 0x327   :  { %3058 = vmatprep.subr.bf16.mxu1 %v7846_v52  ;;  %v7874_v52 = vld [vmem:[#allocation6 + $0x50] sm:$0xff]  }
 0x328   :  { %6838 = vmatpush3.bf16.msra.mxu0 %v7873_v60 }
 0x329   :  { %6839 = vmatprep.subr.bf16.mxu0 %v8175_v49 }
 0x32a   :  { %3059 = vmatpush1.bf16.msra.mxu1 %v7844_v53  ;;  %v7875_v53 = vld [vmem:[#allocation6 + $0x58] sm:$0xff]  }
 0x32b   :  { %3060 = vmatprep.subr.bf16.mxu1 %v7849_v20 }
 0x32c   :  { %6840 = vmatpush3.bf16.msra.mxu0 %v7874_v52 }
 0x32d   :  { %2571 = vmatmul.mubr.bf16.gmra.mrb[16].mxu1 %v8471_v47  ;;  %6841 = vmatprep.subr.bf16.mxu0 %v8175_v49 }
 0x32e   :  { %2580 = vmatprep.mubr.bf16.mxu1 %v8483_v7  ;;  %3061 = vmatpush1.bf16.msra.mxu1 %v7847_v59 }
 0x32f   :  { %3062 = vmatprep.subr.bf16.mxu1 %v7852_v5 }
 0x330   :  { %6842 = vmatpush3.bf16.msra.mxu0 %v7875_v53 }
 0x331   :  { %6843 = vmatprep.subr.bf16.mxu0 %v8175_v49 }
 0x332   :  { %3063 = vmatpush1.bf16.msra.mxu1 %v7850_v19 }
 0x333   :  { %3064 = vmatprep.subr.bf16.mxu1 %v7856_v8 }
 0x335   :  { %2581 = vmatmul.mubr.bf16.gmra.mrb[20].mxu1 %v8481_v6 }
 0x336   :  { %2590 = vmatprep.mubr.bf16.mxu1 %v8493_v36  ;;  %3065 = vmatpush1.bf16.msra.mxu1 %v7854_v11 }
 0x337   :  { %3066 = vmatprep.subr.bf16.mxu1 %v7859_v15 }
 0x33a   :  { %3067 = vmatpush1.bf16.msra.mxu1 %v7857_v22 }
 0x33b   :  { %3068 = vmatprep.subr.bf16.mxu1 %v7862_v25 }
 0x33d   :  { %2591 = vmatmul.mubr.bf16.gmra.mrb[24].mxu1 %v8491_v35 }
 0x33e   :  { %2600 = vmatprep.mubr.bf16.mxu1 %v8503_v56  ;;  %3069 = vmatpush1.bf16.msra.mxu1 %v7860_v28  ;;  %v7876_v28 = vld [vmem:[#allocation6 + $0x60] sm:$0xff]  }
 0x33f   :  { %3070 = vmatprep.subr.bf16.mxu1 %v7865_v26  ;;  %6844 = vmatpush3.bf16.msra.mxu0 %v7876_v28 }
 0x340   :  { %6845 = vmatprep.subr.bf16.mxu0 %v8175_v49 }
 0x342   :  { %3071 = vmatpush1.bf16.msra.mxu1 %v7863_v27 }
 0x343   :  { %3072 = vmatprep.subr.bf16.mxu1 %v7868_v29 }
 0x345   :  { %2601 = vmatmul.mubr.bf16.gmra.mrb[28].mxu1 %v8501_v55 }
 0x346   :  { %2610 = vmatprep.mubr.bf16.mxu1 %v8513_v18  ;;  %3073 = vmatpush1.bf16.msra.mxu1 %v7866_v43 }
 0x347   :  { %3074 = vmatprep.subr.bf16.mxu1 %v7871_v34 }
 0x34a   :  { %3075 = vmatpush1.bf16.msra.mxu1 %v7869_v0 }
 0x34d   :  { %2611 = vmatmul.mubr.bf16.gmra.mrb[32].mxu1 %v8511_v17 }
 0x34e   :  { %2620 = vmatprep.mubr.bf16.mxu1 %v8523_v44 }
 0x355   :  { %2621 = vmatmul.mubr.bf16.gmra.mrb[36].mxu1 %v8521_v42 }
 0x356   :  { %2630 = vmatprep.mubr.bf16.mxu1 %v8533_v3 }
 0x357   :  { %v625_v20 = vpop.f32.mrb[92].mxu0 }
 0x358   :  { %v626_v59 = vadd.f32 %v625_v20, %v8393_v13  ;;  %v627_v5 = vpop.f32.mrb[93].mxu0 }
 0x359   :  { %v628_v19 = vadd.f32 %v627_v5, %v8397_v14  ;;  %v629_v8 = vpop.f32.mrb[94].mxu0 }
 0x35b   :  { %v727_v11 = vmax.f32 %v628_v19, 0.0 }
 0x35d   :  { %2631 = vmatmul.mubr.bf16.gmra.mrb[40].mxu1 %v8531_v2 }
 0x35e   :  { %2640 = vmatprep.mubr.bf16.mxu1 %v8543_v32 }
 0x365   :  { %2641 = vmatmul.mubr.bf16.gmra.mrb[44].mxu1 %v8541_v31 }
 0x366   :  { %2650 = vmatprep.mubr.bf16.mxu1 %v8553_v58 }
 0x36d   :  { %2651 = vmatmul.mubr.bf16.gmra.mrb[48].mxu1 %v8551_v57 }
 0x36e   :  { %2660 = vmatprep.mubr.bf16.mxu1 %v8567_v33 }
 0x375   :  { %2661 = vmatmul.mubr.bf16.gmra.mrb[52].mxu1 %v8564_v30 }
 0x376   :  { %2670 = vmatprep.mubr.bf16.mxu1 %v8577_v4 }
 0x37d   :  { %2671 = vmatmul.mubr.bf16.gmra.mrb[56].mxu1 %v8575_v1 }
 0x37e   :  { %2680 = vmatprep.mubr.bf16.mxu1 %v8587_v45 }
 0x385   :  { %2681 = vmatmul.mubr.bf16.gmra.mrb[60].mxu1 %v8585_v38 }
 0x386   :  { %2690 = vmatprep.mubr.bf16.mxu1 %v8597_v21 }
 0x38d   :  { %2691 = vmatmul.mubr.bf16.gmra.mrb[64].mxu1 %v8595_v16 }
 0x38e   :  { %2700 = vmatprep.mubr.bf16.mxu1 %v8607_v63 }
 0x395   :  { %2701 = vmatmul.mubr.bf16.gmra.mrb[68].mxu1 %v8605_v54 }
 0x396   :  { %2710 = vmatprep.mubr.bf16.mxu1 %v8668_v37 }
 0x39d   :  { %2711 = vmatmul.mubr.bf16.gmra.mrb[72].mxu1 %v8665_v41 }
 0x39e   :  { %2720 = vmatprep.mubr.bf16.mxu1 %v8719_v50 }
 0x3a5   :  { %2721 = vmatmul.mubr.bf16.gmra.mrb[76].mxu1 %v8716_v46 }
 0x3a6   :  { %3076 = vmatprep.mubr.bf16.mxu1 %v8443_v40  ;;  %v630_v40 = vadd.f32 %v629_v8, %v8393_v13  ;;  %v7878_v13 = vld [vmem:[#allocation6 + $0x70] sm:$0xff]  }
 0x3a8   :  { %v728_v15 = vmax.f32 %v630_v40, 0.0 }
 0x3ad   :  { %3077 = vmatmul.mubr.bf16.vlgmr.msra.gmra.mrb[0].mxu1 %v8441_v39  ;;  %v726_v39 = vmax.f32 %v626_v59, 0.0 }
 0x3ae   :  { %3086 = vmatprep.mubr.bf16.mxu1 %v8453_v62  ;;  %v631_v62 = vpop.f32.mrb[95].mxu0 }
 0x3af   :  { %v776_v22 = vpack.c.bf16 %v728_v15, %v726_v39 }
 0x3b5   :  { %3087 = vmatmul.mubr.bf16.gmra.mrb[4].mxu1 %v8451_v61  ;;  %v632_v61 = vadd.f32 %v631_v62, %v8397_v14  ;;  %v7879_v14 = vld [vmem:[#allocation6 + $0x78] sm:$0xff]  }
 0x3b6   :  { %3096 = vmatprep.mubr.bf16.mxu1 %v8463_v24 }
 0x3b7   :  { %v729_v24 = vmax.f32 %v632_v61, 0.0 }
 0x3b9   :  { %v777_v25 = vpack.c.bf16 %v729_v24, %v727_v11 }
 0x3bd   :  { %3097 = vmatmul.mubr.bf16.gmra.mrb[8].mxu1 %v8461_v23  ;;  %v7877_v23 = vld [vmem:[#allocation6 + $0x68] sm:$0xff]  }
 0x3be   :  { %3106 = vmatprep.mubr.bf16.mxu1 %v8473_v48  ;;  %6846 = vmatpush3.bf16.msra.mxu0 %v7877_v23 }
 0x3bf   :  { %6847 = vmatprep.subr.bf16.mxu0 %v8175_v49 }
 0x3c2   :  { %6848 = vmatpush3.bf16.msra.mxu0 %v7878_v13 }
 0x3c3   :  { %6849 = vmatprep.subr.bf16.mxu0 %v8175_v49 }
 0x3c5   :  { %3107 = vmatmul.mubr.bf16.gmra.mrb[12].mxu1 %v8471_v47  ;;  %v3357_v47 = vld [vmem:[%s9596_s4] sm:$0x3] }
 0x3c6   :  { %3116 = vmatprep.mubr.bf16.mxu1 %v8483_v7  ;;  %6850 = vmatpush3.bf16.msra.mxu0 %v7879_v14  ;;  %v8812_v48 = vrot.slane %v3357_v47, %v129_v10 }
 0x3c7   :  { %6855 = vmatprep.subr.bf16.mxu0 %v8175_v49 }
 0x3cd   :  { %3117 = vmatmul.mubr.bf16.gmra.mrb[16].mxu1 %v8481_v6  ;;  %v8816_v6 = vrot.slane %v3357_v47, %v133_v12 }
 0x3ce   :  { %3126 = vmatprep.mubr.bf16.mxu1 %v8493_v36 }
 0x3d5   :  { %3127 = vmatmul.mubr.bf16.gmra.mrb[20].mxu1 %v8491_v35 }
 0x3d6   :  { %3136 = vmatprep.mubr.bf16.mxu1 %v8503_v56 }
 0x3dd   :  { %3137 = vmatmul.mubr.bf16.gmra.mrb[24].mxu1 %v8501_v55 }
 0x3de   :  { %3146 = vmatprep.mubr.bf16.mxu1 %v8513_v18 }
 0x3e5   :  { %3147 = vmatmul.mubr.bf16.gmra.mrb[28].mxu1 %v8511_v17 }
 0x3e6   :  { %3156 = vmatprep.mubr.bf16.mxu1 %v8523_v44 }
 0x3ed   :  { %3157 = vmatmul.mubr.bf16.gmra.mrb[32].mxu1 %v8521_v42 }
 0x3ee   :  { %3166 = vmatprep.mubr.bf16.mxu1 %v8533_v3 }
 0x3f5   :  { %3167 = vmatmul.mubr.bf16.gmra.mrb[36].mxu1 %v8531_v2 }
 0x3f6   :  { %3176 = vmatprep.mubr.bf16.mxu1 %v8543_v32 }
 0x3fd   :  { %3177 = vmatmul.mubr.bf16.gmra.mrb[40].mxu1 %v8541_v31 }
 0x3fe   :  { %3186 = vmatprep.mubr.bf16.mxu1 %v8553_v58 }
 0x405   :  { %3187 = vmatmul.mubr.bf16.gmra.mrb[44].mxu1 %v8551_v57 }
 0x406   :  { %3196 = vmatprep.mubr.bf16.mxu1 %v8567_v33 }
 0x40d   :  { %3197 = vmatmul.mubr.bf16.gmra.mrb[48].mxu1 %v8564_v30 }
 0x40e   :  { %3206 = vmatprep.mubr.bf16.mxu1 %v8577_v4 }
 0x415   :  { %3207 = vmatmul.mubr.bf16.gmra.mrb[52].mxu1 %v8575_v1 }
 0x416   :  { %3216 = vmatprep.mubr.bf16.mxu1 %v8587_v45 }
 0x41d   :  { %3217 = vmatmul.mubr.bf16.gmra.mrb[56].mxu1 %v8585_v38 }
 0x41e   :  { %3226 = vmatprep.mubr.bf16.mxu1 %v8597_v21 }
 0x425   :  { %3227 = vmatmul.mubr.bf16.gmra.mrb[60].mxu1 %v8595_v16 }
 0x426   :  { %3236 = vmatprep.mubr.bf16.mxu1 %v8607_v63 }
 0x42d   :  { %3237 = vmatmul.mubr.bf16.gmra.mrb[64].mxu1 %v8605_v54 }
 0x42e   :  { %3246 = vmatprep.mubr.bf16.mxu1 %v8668_v37 }
 0x435   :  { %3247 = vmatmul.mubr.bf16.gmra.mrb[68].mxu1 %v8665_v41 }
 0x436   :  { %3256 = vmatprep.mubr.bf16.mxu1 %v8719_v50 }
 0x43d   :  { %3257 = vmatmul.mubr.bf16.gmra.mrb[72].mxu1 %v8716_v46 }
 0x43e   :  { %3266 = vmatprep.mubr.bf16.mxu1 %v777_v25 }
 0x445   :  { %3267 = vmatmul.mubr.bf16.gmra.mrb[76].mxu1 %v776_v22 }
 0x480   :  { %v3078_v7 = vpop.f32.mrb[0].mxu1 }
 0x481   :  { %v3369_v35 = vadd.f32 %v8812_v48, %v3078_v7  ;;  %v3080_v36 = vpop.f32.mrb[1].mxu1 }
 0x482   :  { %v3370_v55 = vadd.f32 %v8816_v6, %v3080_v36  ;;  %v3082_v56 = vpop.f32.mrb[2].mxu1 }
 0x483   :  { %v3449_v17 = vmax.f32 %v3369_v35, 0.0  ;;  %v3371_v18 = vadd.f32 %v8812_v48, %v3082_v56  ;;  %v3084_v42 = vpop.f32.mrb[3].mxu1 }
 0x484   :  { %v3450_v44 = vmax.f32 %v3370_v55, 0.0  ;;  %v3372_v2 = vadd.f32 %v8816_v6, %v3084_v42 }
 0x485   :  { %v3529_v10 = vmul.f32 %v3449_v17, %v3449_v17  ;;  %v3451_v3 = vmax.f32 %v3371_v18, 0.0 }
 0x486   :  { %v3569_v31 = vmul.f32 %v3450_v44, %v3450_v44  ;;  %v3452_v9 = vmax.f32 %v3372_v2, 0.0 }
 0x487   :  { %v3530_v12 = vmul.f32 %v3451_v3, %v3451_v3 }
 0x488   :  { %v3609_v32 = vadd.f32 %v3569_v31, %v3529_v10  ;;  %v3570_v57 = vmul.f32 %v3452_v9, %v3452_v9  ;;  %v3088_v58 = vpop.f32.mrb[4].mxu1 }
 0x489   :  { %v3373_v30 = vadd.f32 %v8812_v48, %v3088_v58  ;;  %v3090_v33 = vpop.f32.mrb[5].mxu1 }
 0x48a   :  { %8040 = vrsqrt.f32 %v3609_v32  ;;  %v3610_v1 = vadd.f32 %v3570_v57, %v3530_v12  ;;  %v3374_v4 = vadd.f32 %v8816_v6, %v3090_v33  ;;  %v3092_v38 = vpop.f32.mrb[6].mxu1  ;;  %vm3651_vm1 = vcmp.eq.f32.partialorder %v3609_v32, inf }
 0x48b   :  { %v3453_v45 = vmax.f32 %v3373_v30, 0.0  ;;  %v3375_v16 = vadd.f32 %v8812_v48, %v3092_v38  ;;  %v3094_v21 = vpop.f32.mrb[7].mxu1  ;;  %vm3653_vm2 = vcmp.eq.f32.partialorder %v3609_v32, 0.0  ;;  %v3654_v22 = vand.u32 2147483648, %v3609_v32 }
 0x48c   :  { %8042 = vrsqrt.f32 %v3610_v1  ;;  %v3454_v54 = vmax.f32 %v3374_v4, 0.0  ;;  %v3376_v63 = vadd.f32 %v8816_v6, %v3094_v21  ;;  %vm3658_vm3 = vcmp.eq.f32.partialorder %v3610_v1, inf }
 0x48d   :  { %v3531_v41 = vmul.f32 %v3453_v45, %v3453_v45  ;;  %v3455_v37 = vmax.f32 %v3375_v16, 0.0  ;;  %v3661_v47 = vand.u32 2147483648, %v3610_v1  ;;  %vm3660_vm4 = vcmp.eq.f32.partialorder %v3610_v1, 0.0 }
 0x48e   :  { %v3571_v46 = vmul.f32 %v3454_v54, %v3454_v54  ;;  %v3456_v50 = vmax.f32 %v3376_v63, 0.0 }
 0x48f   :  { %v3532_v26 = vmul.f32 %v3455_v37, %v3455_v37 }
 0x490   :  { %v8826_v27 = vadd.f32 %v3571_v46, %v3531_v41  ;;  %v3572_v29 = vmul.f32 %v3456_v50, %v3456_v50  ;;  %v3098_v43 = vpop.f32.mrb[8].mxu1 }
 0x491   :  { %v3377_v34 = vadd.f32 %v8812_v48, %v3098_v43  ;;  %v3100_v0 = vpop.f32.mrb[9].mxu1 }
 0x492   :  { %8044 = vrsqrt.f32 %v8826_v27  ;;  %v8830_v51 = vadd.f32 %v3572_v29, %v3532_v26  ;;  %v3378_v60 = vadd.f32 %v8816_v6, %v3100_v0  ;;  %v3102_v52 = vpop.f32.mrb[10].mxu1  ;;  %vm3665_vm5 = vcmp.eq.f32.partialorder %v8826_v27, inf  ;;  %v7880_v0 = vld [vmem:[#allocation6] sm:$0xff]  }
 0x493   :  { %v3457_v53 = vmax.f32 %v3377_v34, 0.0  ;;  %v3379_v20 = vadd.f32 %v8812_v48, %v3102_v52  ;;  %v3104_v59 = vpop.f32.mrb[11].mxu1  ;;  %vm3667_vm6 = vcmp.eq.f32.partialorder %v8826_v27, 0.0  ;;  %v3668_v45 = vand.u32 2147483648, %v8826_v27 }
 0x494   :  { %v8041_v5 = vpop.eup %8040  ;;  %8046 = vrsqrt.f32 %v8830_v51  ;;  %v3458_v19 = vmax.f32 %v3378_v60, 0.0  ;;  %v3380_v8 = vadd.f32 %v8816_v6, %v3104_v59  ;;  %vm3672_vm7 = vcmp.eq.f32.partialorder %v8830_v51, inf }
 0x495   :  { %v3533_v39 = vmul.f32 %v3457_v53, %v3457_v53  ;;  %v3459_v40 = vmax.f32 %v3379_v20, 0.0  ;;  %v3650_v15 = vmul.f32 %v8041_v5, %v3609_v32  ;;  %v3675_v41 = vand.u32 2147483648, %v8830_v51 }
 0x496   :  { %v8043_v62 = vpop.eup %8042  ;;  %v3573_v11 = vmul.f32 %v3458_v19, %v3458_v19  ;;  %v3460_v61 = vmax.f32 %v3380_v8, 0.0  ;;  %vm3674_vm8 = vcmp.eq.f32.partialorder %v8830_v51, 0.0 }
 0x497   :  { %v3534_v24 = vmul.f32 %v3459_v40, %v3459_v40  ;;  %v3657_v25 = vmul.f32 %v8043_v62, %v3610_v1  ;;  %v3652_v14 = vsel %vm3651_vm1, %v3609_v32, %v3650_v15 }
 0x498   :  { %v8836_v28 = vadd.f32 %v3573_v11, %v3533_v39  ;;  %v3574_v23 = vmul.f32 %v3460_v61, %v3460_v61  ;;  %v3108_v13 = vpop.f32.mrb[12].mxu1  ;;  %v8839_v36 = vsel %vm3653_vm2, %v3654_v22, %v3652_v14  ;;  %v7881_v61 = vld [vmem:[#allocation6 + $0x8] sm:$0xff]  }
 0x499   :  { %v3381_v7 = vadd.f32 %v8812_v48, %v3108_v13  ;;  %v3110_v35 = vpop.f32.mrb[13].mxu1  ;;  %v3659_v55 = vsel %vm3658_vm3, %v3610_v1, %v3657_v25 }
 0x49a   :  { %8048 = vrsqrt.f32 %v8836_v28  ;;  %v8842_v56 = vadd.f32 %v3574_v23, %v3534_v24  ;;  %v3382_v17 = vadd.f32 %v8816_v6, %v3110_v35  ;;  %v3112_v18 = vpop.f32.mrb[14].mxu1  ;;  %v8845_v42 = vsel %vm3660_vm4, %v3661_v47, %v3659_v55 }
 0x49b   :  { %v3461_v44 = vmax.f32 %v3381_v7, 0.0  ;;  %v3383_v2 = vadd.f32 %v8812_v48, %v3112_v18  ;;  %v3114_v10 = vpop.f32.mrb[15].mxu1  ;;  %v3929_v3 = vpack.c.bf16 %v8845_v42, %v8839_v36  ;;  %vm3679_vm9 = vcmp.eq.f32.partialorder %v8836_v28, inf }
 0x49c   :  { %v8045_v31 = vpop.eup %8044  ;;  %8050 = vrsqrt.f32 %v8842_v56  ;;  %v3462_v9 = vmax.f32 %v3382_v17, 0.0  ;;  %v3384_v12 = vadd.f32 %v8816_v6, %v3114_v10  ;;  %vm3681_vm10 = vcmp.eq.f32.partialorder %v8836_v28, 0.0 }
 0x49d   :  { %v3535_v32 = vmul.f32 %v3461_v44, %v3461_v44  ;;  %v3463_v57 = vmax.f32 %v3383_v2, 0.0  ;;  %v3664_v58 = vmul.f32 %v8045_v31, %v8826_v27  ;;  %v3682_v22 = vand.u32 2147483648, %v8836_v28  ;;  %v7882_v2 = vld [vmem:[#allocation6 + $0x10] sm:$0xff]  }
 0x49e   :  { %v8047_v30 = vpop.eup %8046  ;;  %v3575_v33 = vmul.f32 %v3462_v9, %v3462_v9  ;;  %v3464_v1 = vmax.f32 %v3384_v12, 0.0  ;;  %vm3686_vm11 = vcmp.eq.f32.partialorder %v8842_v56, inf  ;;  %v3689_v47 = vand.u32 2147483648, %v8842_v56 }
 0x49f   :  { %v3536_v4 = vmul.f32 %v3463_v57, %v3463_v57  ;;  %v3666_v38 = vsel %vm3665_vm5, %v8826_v27, %v3664_v58  ;;  %v3671_v16 = vmul.f32 %v8047_v30, %v8830_v51  ;;  %vm3688_vm12 = vcmp.eq.f32.partialorder %v8842_v56, 0.0 }
 0x4a0   :  { %v8858_v21 = vadd.f32 %v3575_v33, %v3535_v32  ;;  %v3576_v54 = vmul.f32 %v3464_v1, %v3464_v1  ;;  %v3118_v63 = vpop.f32.mrb[16].mxu1  ;;  %v3669_v50 = vsel %vm3667_vm6, %v3668_v45, %v3666_v38 }
 0x4a1   :  { %v3385_v37 = vadd.f32 %v8812_v48, %v3118_v63  ;;  %v3120_v46 = vpop.f32.mrb[17].mxu1  ;;  %v3673_v26 = vsel %vm3672_vm7, %v8830_v51, %v3671_v16  ;;  %v7883_v16 = vld [vmem:[#allocation6 + $0x18] sm:$0xff]  }
 0x4a2   :  { %8052 = vrsqrt.f32 %v8858_v21  ;;  %v8866_v27 = vadd.f32 %v3576_v54, %v3536_v4  ;;  %v3386_v29 = vadd.f32 %v8816_v6, %v3120_v46  ;;  %v3122_v43 = vpop.f32.mrb[18].mxu1  ;;  %v3676_v34 = vsel %vm3674_vm8, %v3675_v41, %v3673_v26 }
 0x4a3   :  { %v3465_v60 = vmax.f32 %v3385_v37, 0.0  ;;  %v3387_v52 = vadd.f32 %v8812_v48, %v3122_v43  ;;  %v3124_v53 = vpop.f32.mrb[19].mxu1  ;;  %v3930_v20 = vpack.c.bf16 %v3676_v34, %v3669_v50  ;;  %vm3693_vm13 = vcmp.eq.f32.partialorder %v8858_v21, inf }
 0x4a4   :  { %v8049_v59 = vpop.eup %8048  ;;  %8054 = vrsqrt.f32 %v8866_v27  ;;  %v3466_v5 = vmax.f32 %v3386_v29, 0.0  ;;  %v3388_v51 = vadd.f32 %v8816_v6, %v3124_v53  ;;  %vm3695_vm14 = vcmp.eq.f32.partialorder %v8858_v21, 0.0 }
 0x4a5   :  { %v3537_v19 = vmul.f32 %v3465_v60, %v3465_v60  ;;  %v3467_v8 = vmax.f32 %v3387_v52, 0.0  ;;  %6852 = vmatmul.mubr.bf16.vlgmr.msra.gmra.mrb[96].mxu0 %v3930_v20  ;;  %v3678_v39 = vmul.f32 %v8049_v59, %v8836_v28  ;;  %v3696_v41 = vand.u32 2147483648, %v8858_v21  ;;  %v7884_v20 = vld [vmem:[#allocation6 + $0x20] sm:$0xff]  }
 0x4a6   :  { %v8051_v40 = vpop.eup %8050  ;;  %v3577_v62 = vmul.f32 %v3466_v5, %v3466_v5  ;;  %v3468_v11 = vmax.f32 %v3388_v51, 0.0  ;;  %6856 = vmatpush3.bf16.msra.mxu0 %v7880_v0  ;;  %6871 = vmatprep.mubr.msk.bf16.mxu0 %vm8176_vm0, %v8175_v49  ;;  %vm3700_vm15 = vcmp.eq.f32.partialorder %v8866_v27, inf  ;;  %v3703_v29 = vand.u32 2147483648, %v8866_v27 }
 0x4a7   :  { %v3538_v15 = vmul.f32 %v3467_v8, %v3467_v8  ;;  %6857 = vmatprep.subr.bf16.mxu0 %v8175_v49  ;;  %v3680_v24 = vsel %vm3679_vm9, %v8836_v28, %v3678_v39  ;;  %v3685_v25 = vmul.f32 %v8051_v40, %v8842_v56  ;;  %vm3702_vm1 = vcmp.eq.f32.partialorder %v8866_v27, 0.0 }
 0x4a8   :  { %v8881_v23 = vadd.f32 %v3577_v62, %v3537_v19  ;;  %v3578_v13 = vmul.f32 %v3468_v11, %v3468_v11  ;;  %v3128_v14 = vpop.f32.mrb[20].mxu1  ;;  %v8886_v55 = vsel %vm3681_vm10, %v3682_v22, %v3680_v24 }
 0x4a9   :  { %v3389_v7 = vadd.f32 %v8812_v48, %v3128_v14  ;;  %v3130_v35 = vpop.f32.mrb[21].mxu1  ;;  %v3687_v17 = vsel %vm3686_vm11, %v8842_v56, %v3685_v25  ;;  %v7885_v25 = vld [vmem:[#allocation6 + $0x28] sm:$0xff]  }
 0x4aa   :  { %8056 = vrsqrt.f32 %v8881_v23  ;;  %v8891_v28 = vadd.f32 %v3578_v13, %v3538_v15  ;;  %v3390_v18 = vadd.f32 %v8816_v6, %v3130_v35  ;;  %6858 = vmatpush3.bf16.msra.mxu0 %v7881_v61  ;;  %v3132_v44 = vpop.f32.mrb[22].mxu1  ;;  %v8894_v10 = vsel %vm3688_vm12, %v3689_v47, %v3687_v17 }
 0x4ab   :  { %v3469_v31 = vmax.f32 %v3389_v7, 0.0  ;;  %v3391_v9 = vadd.f32 %v8812_v48, %v3132_v44  ;;  %v3134_v12 = vpop.f32.mrb[23].mxu1  ;;  %6859 = vmatprep.subr.bf16.mxu0 %v8175_v49  ;;  %v3931_v56 = vpack.c.bf16 %v8894_v10, %v8886_v55  ;;  %vm3707_vm2 = vcmp.eq.f32.partialorder %v8881_v23, inf }
 0x4ac   :  { %v8053_v32 = vpop.eup %8052  ;;  %8058 = vrsqrt.f32 %v8891_v28  ;;  %v3470_v57 = vmax.f32 %v3390_v18, 0.0  ;;  %v3392_v58 = vadd.f32 %v8816_v6, %v3134_v12  ;;  %vm3709_vm3 = vcmp.eq.f32.partialorder %v8881_v23, 0.0 }
 0x4ad   :  { %v3539_v30 = vmul.f32 %v3469_v31, %v3469_v31  ;;  %v3471_v33 = vmax.f32 %v3391_v9, 0.0  ;;  %v3692_v1 = vmul.f32 %v8053_v32, %v8858_v21  ;;  %v3710_v47 = vand.u32 2147483648, %v8881_v23 }
 0x4ae   :  { %v8055_v4 = vpop.eup %8054  ;;  %v3579_v38 = vmul.f32 %v3470_v57, %v3470_v57  ;;  %v3472_v45 = vmax.f32 %v3392_v58, 0.0  ;;  %6860 = vmatpush3.bf16.msra.mxu0 %v7882_v2  ;;  %vm3714_vm4 = vcmp.eq.f32.partialorder %v8891_v28, inf  ;;  %v3717_v44 = vand.u32 2147483648, %v8891_v28  ;;  %v7886_v58 = vld [vmem:[#allocation6 + $0x30] sm:$0xff]  }
 0x4af   :  { %v3540_v54 = vmul.f32 %v3471_v33, %v3471_v33  ;;  %6861 = vmatprep.subr.bf16.mxu0 %v8175_v49  ;;  %v3694_v63 = vsel %vm3693_vm13, %v8858_v21, %v3692_v1  ;;  %v3699_v37 = vmul.f32 %v8055_v4, %v8866_v27  ;;  %vm3716_vm5 = vcmp.eq.f32.partialorder %v8891_v28, 0.0 }
 0x4b0   :  { %v8909_v46 = vadd.f32 %v3579_v38, %v3539_v30  ;;  %v3580_v50 = vmul.f32 %v3472_v45, %v3472_v45  ;;  %v3138_v26 = vpop.f32.mrb[24].mxu1  ;;  %v8914_v0 = vsel %vm3695_vm14, %v3696_v41, %v3694_v63 }
 0x4b1   :  { %v3393_v43 = vadd.f32 %v8812_v48, %v3138_v26  ;;  %v3140_v34 = vpop.f32.mrb[25].mxu1  ;;  %v3701_v60 = vsel %vm3700_vm15, %v8866_v27, %v3699_v37 }
 0x4b2   :  { %8060 = vrsqrt.f32 %v8909_v46  ;;  %v8919_v21 = vadd.f32 %v3580_v50, %v3540_v54  ;;  %v3394_v52 = vadd.f32 %v8816_v6, %v3140_v34  ;;  %6862 = vmatpush3.bf16.msra.mxu0 %v7883_v16  ;;  %v3142_v53 = vpop.f32.mrb[26].mxu1  ;;  %v8922_v59 = vsel %vm3702_vm1, %v3703_v29, %v3701_v60  ;;  %v7887_v29 = vld [vmem:[#allocation6 + $0x38] sm:$0xff]  }
 0x4b3   :  { %v3473_v5 = vmax.f32 %v3393_v43, 0.0  ;;  %v3395_v51 = vadd.f32 %v8812_v48, %v3142_v53  ;;  %v3144_v19 = vpop.f32.mrb[27].mxu1  ;;  %6863 = vmatprep.subr.bf16.mxu0 %v8175_v49  ;;  %v3932_v27 = vpack.c.bf16 %v8922_v59, %v8914_v0  ;;  %vm3721_vm6 = vcmp.eq.f32.partialorder %v8909_v46, inf }
 0x4b4   :  { %v8057_v8 = vpop.eup %8056  ;;  %8062 = vrsqrt.f32 %v8919_v21  ;;  %v3474_v39 = vmax.f32 %v3394_v52, 0.0  ;;  %v3396_v40 = vadd.f32 %v8816_v6, %v3144_v19  ;;  %vm3723_vm7 = vcmp.eq.f32.partialorder %v8909_v46, 0.0 }
 0x4b5   :  { %v3541_v62 = vmul.f32 %v3473_v5, %v3473_v5  ;;  %v3475_v11 = vmax.f32 %v3395_v51, 0.0  ;;  %v3706_v61 = vmul.f32 %v8057_v8, %v8881_v23  ;;  %v3724_v60 = vand.u32 2147483648, %v8909_v46 }
 0x4b6   :  { %v8059_v15 = vpop.eup %8058  ;;  %v3581_v24 = vmul.f32 %v3474_v39, %v3474_v39  ;;  %v3476_v22 = vmax.f32 %v3396_v40, 0.0  ;;  %6864 = vmatpush3.bf16.msra.mxu0 %v7884_v20  ;;  %vm3728_vm8 = vcmp.eq.f32.partialorder %v8919_v21, inf  ;;  %v3731_v51 = vand.u32 2147483648, %v8919_v21 }
 0x4b7   :  { %v3542_v13 = vmul.f32 %v3475_v11, %v3475_v11  ;;  %6865 = vmatprep.subr.bf16.mxu0 %v8175_v49  ;;  %v3708_v14 = vsel %vm3707_vm2, %v8881_v23, %v3706_v61  ;;  %v3713_v7 = vmul.f32 %v8059_v15, %v8891_v28  ;;  %vm3730_vm9 = vcmp.eq.f32.partialorder %v8919_v21, 0.0  ;;  %v7888_v61 = vld [vmem:[#allocation6 + $0x80] sm:$0xff]  }
 0x4b8   :  { %v8937_v35 = vadd.f32 %v3581_v24, %v3541_v62  ;;  %v3582_v17 = vmul.f32 %v3476_v22, %v3476_v22  ;;  %v3148_v18 = vpop.f32.mrb[28].mxu1  ;;  %v8942_v9 = vsel %vm3709_vm3, %v3710_v47, %v3708_v14 }
 0x4b9   :  { %v3397_v2 = vadd.f32 %v8812_v48, %v3148_v18  ;;  %v3150_v31 = vpop.f32.mrb[29].mxu1  ;;  %v3715_v12 = vsel %vm3714_vm4, %v8891_v28, %v3713_v7 }
 0x4ba   :  { %8064 = vrsqrt.f32 %v8937_v35  ;;  %v8947_v23 = vadd.f32 %v3582_v17, %v3542_v13  ;;  %v3398_v32 = vadd.f32 %v8816_v6, %v3150_v31  ;;  %6866 = vmatpush3.bf16.msra.mxu0 %v7885_v25  ;;  %v3152_v57 = vpop.f32.mrb[30].mxu1  ;;  %v8950_v30 = vsel %vm3716_vm5, %v3717_v44, %v3715_v12  ;;  %v7889_v12 = vld [vmem:[#allocation6 + $0x88] sm:$0xff]  }
 0x4bb   :  { %v3477_v33 = vmax.f32 %v3397_v2, 0.0  ;;  %v3399_v1 = vadd.f32 %v8812_v48, %v3152_v57  ;;  %v3154_v4 = vpop.f32.mrb[31].mxu1  ;;  %6867 = vmatprep.subr.bf16.mxu0 %v8175_v49  ;;  %v3933_v28 = vpack.c.bf16 %v8950_v30, %v8942_v9  ;;  %vm3735_vm10 = vcmp.eq.f32.partialorder %v8937_v35, inf }
 0x4bc   :  { %v8061_v38 = vpop.eup %8060  ;;  %8066 = vrsqrt.f32 %v8947_v23  ;;  %v3478_v45 = vmax.f32 %v3398_v32, 0.0  ;;  %v3400_v16 = vadd.f32 %v8816_v6, %v3154_v4  ;;  %vm3737_vm11 = vcmp.eq.f32.partialorder %v8937_v35, 0.0 }
 0x4bd   :  { %v3543_v54 = vmul.f32 %v3477_v33, %v3477_v33  ;;  %v3479_v63 = vmax.f32 %v3399_v1, 0.0  ;;  %v3720_v41 = vmul.f32 %v8061_v38, %v8909_v46  ;;  %v3738_v42 = vand.u32 2147483648, %v8937_v35 }
 0x4be   :  { %v8063_v37 = vpop.eup %8062  ;;  %v3583_v50 = vmul.f32 %v3478_v45, %v3478_v45  ;;  %v3480_v26 = vmax.f32 %v3400_v16, 0.0  ;;  %6868 = vmatpush3.bf16.msra.mxu0 %v7886_v58  ;;  %vm3742_vm12 = vcmp.eq.f32.partialorder %v8947_v23, inf  ;;  %v3745_v1 = vand.u32 2147483648, %v8947_v23 }
 0x4bf   :  { %v3544_v43 = vmul.f32 %v3479_v63, %v3479_v63  ;;  %6869 = vmatprep.subr.bf16.mxu0 %v8175_v49  ;;  %v3722_v34 = vsel %vm3721_vm6, %v8909_v46, %v3720_v41  ;;  %v3727_v52 = vmul.f32 %v8063_v37, %v8919_v21  ;;  %vm3744_vm13 = vcmp.eq.f32.partialorder %v8947_v23, 0.0  ;;  %v7890_v41 = vld [vmem:[#allocation6 + $0x90] sm:$0xff]  }
 0x4c0   :  { %v8965_v53 = vadd.f32 %v3583_v50, %v3543_v54  ;;  %v3584_v20 = vmul.f32 %v3480_v26, %v3480_v26  ;;  %v3158_v5 = vpop.f32.mrb[32].mxu1  ;;  %v8970_v39 = vsel %vm3723_vm7, %v3724_v60, %v3722_v34 }
 0x4c1   :  { %v3401_v19 = vadd.f32 %v8812_v48, %v3158_v5  ;;  %v3160_v8 = vpop.f32.mrb[33].mxu1  ;;  %v3729_v40 = vsel %vm3728_vm8, %v8919_v21, %v3727_v52 }
 0x4c2   :  { %8068 = vrsqrt.f32 %v8965_v53  ;;  %v8975_v46 = vadd.f32 %v3584_v20, %v3544_v43  ;;  %v3402_v62 = vadd.f32 %v8816_v6, %v3160_v8  ;;  %6870 = vmatpush3.bf16.msra.mxu0 %v7887_v29  ;;  %v3162_v11 = vpop.f32.mrb[34].mxu1  ;;  %v8978_v15 = vsel %vm3730_vm9, %v3731_v51, %v3729_v40  ;;  %v7891_v40 = vld [vmem:[#allocation6 + $0x98] sm:$0xff]  }
 0x4c3   :  { %v3481_v24 = vmax.f32 %v3401_v19, 0.0  ;;  %v3403_v22 = vadd.f32 %v8812_v48, %v3162_v11  ;;  %v3164_v25 = vpop.f32.mrb[35].mxu1  ;;  %6875 = vmatprep.subr.bf16.mxu0 %v8175_v49  ;;  %v3934_v21 = vpack.c.bf16 %v8978_v15, %v8970_v39  ;;  %vm3749_vm14 = vcmp.eq.f32.partialorder %v8965_v53, inf  ;;  %v7925_v39 = vld [vmem:[#allocation6 + $0x1a8] sm:$0xff]   ;;  %v7926_v15 = vld [vmem:[#allocation6 + $0x1b0] sm:$0xff]  }
 0x4c4   :  { %v8065_v13 = vpop.eup %8064  ;;  %8070 = vrsqrt.f32 %v8975_v46  ;;  %v3482_v14 = vmax.f32 %v3402_v62, 0.0  ;;  %v3404_v47 = vadd.f32 %v8816_v6, %v3164_v25  ;;  %vm3751_vm15 = vcmp.eq.f32.partialorder %v8965_v53, 0.0 }
 0x4c5   :  { %v3545_v7 = vmul.f32 %v3481_v24, %v3481_v24  ;;  %v3483_v17 = vmax.f32 %v3403_v22, 0.0  ;;  %6872 = vmatmul.mubr.bf16.vlgmr.msra.gmra.mrb[100].mxu0 %v3929_v3  ;;  %v3734_v18 = vmul.f32 %v8065_v13, %v8937_v35  ;;  %vm3756_vm1 = vcmp.eq.f32.partialorder %v8975_v46, inf }
 0x4c6   :  { %v8067_v44 = vpop.eup %8066  ;;  %v3585_v2 = vmul.f32 %v3482_v14, %v3482_v14  ;;  %v3484_v31 = vmax.f32 %v3404_v47, 0.0  ;;  %6876 = vmatpush3.bf16.msra.mxu0 %v7888_v61  ;;  %6891 = vmatprep.mubr.msk.bf16.mxu0 %vm8176_vm0, %v8175_v49  ;;  %v3752_v61 = vand.u32 2147483648, %v8965_v53  ;;  %v3759_v14 = vand.u32 2147483648, %v8975_v46 }
 0x4c7   :  { %v3546_v32 = vmul.f32 %v3483_v17, %v3483_v17  ;;  %6877 = vmatprep.subr.bf16.mxu0 %v8175_v49  ;;  %v3736_v36 = vsel %vm3735_vm10, %v8937_v35, %v3734_v18  ;;  %v3741_v3 = vmul.f32 %v8067_v44, %v8947_v23  ;;  %vm3758_vm2 = vcmp.eq.f32.partialorder %v8975_v46, 0.0 }
 0x4c8   :  { %v8998_v57 = vadd.f32 %v3585_v2, %v3545_v7  ;;  %v3586_v58 = vmul.f32 %v3484_v31, %v3484_v31  ;;  %v3168_v33 = vpop.f32.mrb[36].mxu1  ;;  %v9003_v45 = vsel %vm3737_vm11, %v3738_v42, %v3736_v36  ;;  %v7892_v31 = vld [vmem:[#allocation6 + $0xa0] sm:$0xff]  }
 0x4c9   :  { %v3405_v4 = vadd.f32 %v8812_v48, %v3168_v33  ;;  %v3170_v38 = vpop.f32.mrb[37].mxu1  ;;  %v3743_v16 = vsel %vm3742_vm12, %v8947_v23, %v3741_v3 }
 0x4ca   :  { %8072 = vrsqrt.f32 %v8998_v57  ;;  %v9008_v35 = vadd.f32 %v3586_v58, %v3546_v32  ;;  %v3406_v54 = vadd.f32 %v8816_v6, %v3170_v38  ;;  %6878 = vmatpush3.bf16.msra.mxu0 %v7889_v12  ;;  %v3172_v63 = vpop.f32.mrb[38].mxu1  ;;  %v9011_v37 = vsel %vm3744_vm13, %v3745_v1, %v3743_v16 }
 0x4cb   :  { %v3485_v50 = vmax.f32 %v3405_v4, 0.0  ;;  %v3407_v26 = vadd.f32 %v8812_v48, %v3172_v63  ;;  %v3174_v29 = vpop.f32.mrb[39].mxu1  ;;  %6879 = vmatprep.subr.bf16.mxu0 %v8175_v49  ;;  %v3935_v23 = vpack.c.bf16 %v9011_v37, %v9003_v45  ;;  %vm3763_vm3 = vcmp.eq.f32.partialorder %v8998_v57, inf  ;;  %v7933_v45 = vld [vmem:[#allocation6 + $0x1e8] sm:$0xff]  }
 0x4cc   :  { %v8069_v43 = vpop.eup %8068  ;;  %8074 = vrsqrt.f32 %v9008_v35  ;;  %v3486_v34 = vmax.f32 %v3406_v54, 0.0  ;;  %v3408_v60 = vadd.f32 %v8816_v6, %v3174_v29  ;;  %vm3765_vm4 = vcmp.eq.f32.partialorder %v8998_v57, 0.0 }
 0x4cd   :  { %v3547_v52 = vmul.f32 %v3485_v50, %v3485_v50  ;;  %v3487_v20 = vmax.f32 %v3407_v26, 0.0  ;;  %v3748_v5 = vmul.f32 %v8069_v43, %v8965_v53  ;;  %v3766_v29 = vand.u32 2147483648, %v8998_v57 }
 0x4ce   :  { %v8071_v51 = vpop.eup %8070  ;;  %v3587_v19 = vmul.f32 %v3486_v34, %v3486_v34  ;;  %v3488_v8 = vmax.f32 %v3408_v60, 0.0  ;;  %6880 = vmatpush3.bf16.msra.mxu0 %v7890_v41  ;;  %v7893_v41 = vld [vmem:[#allocation6 + $0xa8] sm:$0xff]   ;;  %vm3770_vm5 = vcmp.eq.f32.partialorder %v9008_v35, inf  ;;  %vm3772_vm6 = vcmp.eq.f32.partialorder %v9008_v35, 0.0 }
 0x4cf   :  { %v3548_v62 = vmul.f32 %v3487_v20, %v3487_v20  ;;  %6881 = vmatprep.subr.bf16.mxu0 %v8175_v49  ;;  %v3750_v11 = vsel %vm3749_vm14, %v8965_v53, %v3748_v5  ;;  %v3755_v24 = vmul.f32 %v8071_v51, %v8975_v46  ;;  %v3773_v20 = vand.u32 2147483648, %v9008_v35 }
 0x4d0   :  { %v9026_v22 = vadd.f32 %v3587_v19, %v3547_v52  ;;  %v3588_v25 = vmul.f32 %v3488_v8, %v3488_v8  ;;  %v3178_v13 = vpop.f32.mrb[40].mxu1  ;;  %v9031_v17 = vsel %vm3751_vm15, %v3752_v61, %v3750_v11  ;;  %v7894_v11 = vld [vmem:[#allocation6 + $0xb0] sm:$0xff]  }
 0x4d1   :  { %v3409_v47 = vadd.f32 %v8812_v48, %v3178_v13  ;;  %v3180_v7 = vpop.f32.mrb[41].mxu1  ;;  %v3757_v18 = vsel %vm3756_vm1, %v8975_v46, %v3755_v24 }
 0x4d2   :  { %8076 = vrsqrt.f32 %v9026_v22  ;;  %v9036_v53 = vadd.f32 %v3588_v25, %v3548_v62  ;;  %v3410_v44 = vadd.f32 %v8816_v6, %v3180_v7  ;;  %6882 = vmatpush3.bf16.msra.mxu0 %v7891_v40  ;;  %v3182_v2 = vpop.f32.mrb[42].mxu1  ;;  %v9039_v12 = vsel %vm3758_vm2, %v3759_v14, %v3757_v18 }
 0x4d3   :  { %v3489_v32 = vmax.f32 %v3409_v47, 0.0  ;;  %v3411_v36 = vadd.f32 %v8812_v48, %v3182_v2  ;;  %v3184_v42 = vpop.f32.mrb[43].mxu1  ;;  %6883 = vmatprep.subr.bf16.mxu0 %v8175_v49  ;;  %v3936_v46 = vpack.c.bf16 %v9039_v12, %v9031_v17  ;;  %vm3777_vm7 = vcmp.eq.f32.partialorder %v9026_v22, inf  ;;  %v7941_v17 = vld [vmem:[#allocation6 + $0x228] sm:$0xff]  }
 0x4d4   :  { %v8073_v3 = vpop.eup %8072  ;;  %8078 = vrsqrt.f32 %v9036_v53  ;;  %v3490_v58 = vmax.f32 %v3410_v44, 0.0  ;;  %v3412_v33 = vadd.f32 %v8816_v6, %v3184_v42  ;;  %v7895_v42 = vld [vmem:[#allocation6 + $0xb8] sm:$0xff]   ;;  %vm3779_vm8 = vcmp.eq.f32.partialorder %v9026_v22, 0.0 }
 0x4d5   :  { %v3549_v1 = vmul.f32 %v3489_v32, %v3489_v32  ;;  %v3491_v4 = vmax.f32 %v3411_v36, 0.0  ;;  %v3762_v38 = vmul.f32 %v8073_v3, %v8998_v57  ;;  %vm3784_vm9 = vcmp.eq.f32.partialorder %v9036_v53, inf }
 0x4d6   :  { %v8075_v16 = vpop.eup %8074  ;;  %v3589_v54 = vmul.f32 %v3490_v58, %v3490_v58  ;;  %v3492_v63 = vmax.f32 %v3412_v33, 0.0  ;;  %6884 = vmatpush3.bf16.msra.mxu0 %v7892_v31  ;;  %v3780_v33 = vand.u32 2147483648, %v9026_v22  ;;  %vm3786_vm10 = vcmp.eq.f32.partialorder %v9036_v53, 0.0 }
 0x4d7   :  { %v3550_v50 = vmul.f32 %v3491_v4, %v3491_v4  ;;  %6885 = vmatprep.subr.bf16.mxu0 %v8175_v49  ;;  %v3764_v26 = vsel %vm3763_vm3, %v8998_v57, %v3762_v38  ;;  %v3769_v43 = vmul.f32 %v8075_v16, %v9008_v35 }
 0x4d8   :  { %v9054_v34 = vadd.f32 %v3589_v54, %v3549_v1  ;;  %v3590_v60 = vmul.f32 %v3492_v63, %v3492_v63  ;;  %v3188_v52 = vpop.f32.mrb[44].mxu1  ;;  %v9059_v19 = vsel %vm3765_vm4, %v3766_v29, %v3764_v26  ;;  %v3787_v54 = vand.u32 2147483648, %v9036_v53 }
 0x4d9   :  { %v3413_v5 = vadd.f32 %v8812_v48, %v3188_v52  ;;  %v3190_v51 = vpop.f32.mrb[45].mxu1  ;;  %v3771_v8 = vsel %vm3770_vm5, %v9008_v35, %v3769_v43 }
 0x4da   :  { %8080 = vrsqrt.f32 %v9054_v34  ;;  %v9064_v57 = vadd.f32 %v3590_v60, %v3550_v50  ;;  %v3414_v40 = vadd.f32 %v8816_v6, %v3190_v51  ;;  %6886 = vmatpush3.bf16.msra.mxu0 %v7893_v41  ;;  %v3192_v62 = vpop.f32.mrb[46].mxu1  ;;  %v9067_v61 = vsel %vm3772_vm6, %v3773_v20, %v3771_v8  ;;  %v7896_v60 = vld [vmem:[#allocation6 + $0xc0] sm:$0xff]  }
 0x4db   :  { %v3493_v24 = vmax.f32 %v3413_v5, 0.0  ;;  %v3415_v25 = vadd.f32 %v8812_v48, %v3192_v62  ;;  %v3194_v13 = vpop.f32.mrb[47].mxu1  ;;  %6887 = vmatprep.subr.bf16.mxu0 %v8175_v49  ;;  %v3937_v35 = vpack.c.bf16 %v9067_v61, %v9059_v19  ;;  %vm3791_vm11 = vcmp.eq.f32.partialorder %v9054_v34, inf  ;;  %v7949_v19 = vld [vmem:[#allocation6 + $0x268] sm:$0xff]  }
 0x4dc   :  { %v8077_v14 = vpop.eup %8076  ;;  %8082 = vrsqrt.f32 %v9064_v57  ;;  %v3494_v47 = vmax.f32 %v3414_v40, 0.0  ;;  %v3416_v7 = vadd.f32 %v8816_v6, %v3194_v13  ;;  %vm3793_vm12 = vcmp.eq.f32.partialorder %v9054_v34, 0.0 }
 0x4dd   :  { %v3551_v18 = vmul.f32 %v3493_v24, %v3493_v24  ;;  %v3495_v44 = vmax.f32 %v3415_v25, 0.0  ;;  %v3776_v2 = vmul.f32 %v8077_v14, %v9026_v22  ;;  %v3794_v10 = vand.u32 2147483648, %v9054_v34 }
 0x4de   :  { %v8079_v31 = vpop.eup %8078  ;;  %v3591_v32 = vmul.f32 %v3494_v47, %v3494_v47  ;;  %v3496_v36 = vmax.f32 %v3416_v7, 0.0  ;;  %6888 = vmatpush3.bf16.msra.mxu0 %v7894_v11  ;;  %v7897_v7 = vld [vmem:[#allocation6 + $0xc8] sm:$0xff]   ;;  %vm3798_vm13 = vcmp.eq.f32.partialorder %v9064_v57, inf  ;;  %vm3800_vm14 = vcmp.eq.f32.partialorder %v9064_v57, 0.0 }
 0x4df   :  { %v3552_v3 = vmul.f32 %v3495_v44, %v3495_v44  ;;  %6889 = vmatprep.subr.bf16.mxu0 %v8175_v49  ;;  %v3778_v58 = vsel %vm3777_vm7, %v9026_v22, %v3776_v2  ;;  %v3783_v1 = vmul.f32 %v8079_v31, %v9036_v53 }
 0x4e0   :  { %v9082_v4 = vadd.f32 %v3591_v32, %v3551_v18  ;;  %v3592_v38 = vmul.f32 %v3496_v36, %v3496_v36  ;;  %v3198_v16 = vpop.f32.mrb[48].mxu1  ;;  %v9087_v50 = vsel %vm3779_vm8, %v3780_v33, %v3778_v58  ;;  %v3801_v32 = vand.u32 2147483648, %v9064_v57 }
 0x4e1   :  { %v3417_v63 = vadd.f32 %v8812_v48, %v3198_v16  ;;  %v3200_v41 = vpop.f32.mrb[49].mxu1  ;;  %v3785_v26 = vsel %vm3784_vm9, %v9036_v53, %v3783_v1 }
 0x4e2   :  { %8084 = vrsqrt.f32 %v9082_v4  ;;  %v9092_v22 = vadd.f32 %v3592_v38, %v3552_v3  ;;  %v3418_v29 = vadd.f32 %v8816_v6, %v3200_v41  ;;  %6890 = vmatpush3.bf16.msra.mxu0 %v7895_v42  ;;  %v3202_v43 = vpop.f32.mrb[50].mxu1  ;;  %v9095_v52 = vsel %vm3786_vm10, %v3787_v54, %v3785_v26  ;;  %v7898_v38 = vld [vmem:[#allocation6 + $0xd0] sm:$0xff]  }
 0x4e3   :  { %v3497_v20 = vmax.f32 %v3417_v63, 0.0  ;;  %v3419_v5 = vadd.f32 %v8812_v48, %v3202_v43  ;;  %v3204_v51 = vpop.f32.mrb[51].mxu1  ;;  %6895 = vmatprep.subr.bf16.mxu0 %v8175_v49  ;;  %v3938_v53 = vpack.c.bf16 %v9095_v52, %v9087_v50  ;;  %vm3805_vm15 = vcmp.eq.f32.partialorder %v9082_v4, inf  ;;  %v7957_v50 = vld [vmem:[#allocation6 + $0x2a8] sm:$0xff]  }
 0x4e4   :  { %v8081_v8 = vpop.eup %8080  ;;  %8086 = vrsqrt.f32 %v9092_v22  ;;  %v3498_v40 = vmax.f32 %v3418_v29, 0.0  ;;  %v3420_v62 = vadd.f32 %v8816_v6, %v3204_v51  ;;  %vm3807_vm1 = vcmp.eq.f32.partialorder %v9082_v4, 0.0 }
 0x4e5   :  { %v3553_v11 = vmul.f32 %v3497_v20, %v3497_v20  ;;  %v3499_v24 = vmax.f32 %v3419_v5, 0.0  ;;  %6892 = vmatmul.mubr.bf16.vlgmr.msra.gmra.mrb[104].mxu0 %v3931_v56  ;;  %v3790_v25 = vmul.f32 %v8081_v8, %v9054_v34  ;;  %vm3812_vm2 = vcmp.eq.f32.partialorder %v9092_v22, inf }
 0x4e6   :  { %v8083_v13 = vpop.eup %8082  ;;  %v3593_v14 = vmul.f32 %v3498_v40, %v3498_v40  ;;  %v3500_v47 = vmax.f32 %v3420_v62, 0.0  ;;  %6896 = vmatpush3.bf16.msra.mxu0 %v7896_v60  ;;  %6911 = vmatprep.mubr.msk.bf16.mxu0 %vm8176_vm0, %v8175_v49  ;;  %v7899_v62 = vld [vmem:[#allocation6 + $0xd8] sm:$0xff]   ;;  %vm3814_vm3 = vcmp.eq.f32.partialorder %v9092_v22, 0.0 }
 0x4e7   :  { %v3554_v18 = vmul.f32 %v3499_v24, %v3499_v24  ;;  %6897 = vmatprep.subr.bf16.mxu0 %v8175_v49  ;;  %v3792_v55 = vsel %vm3791_vm11, %v9054_v34, %v3790_v25  ;;  %v3797_v56 = vmul.f32 %v8083_v13, %v9064_v57  ;;  %v3808_v25 = vand.u32 2147483648, %v9082_v4 }
 0x4e8   :  { %v9115_v44 = vadd.f32 %v3593_v14, %v3553_v11  ;;  %v3594_v2 = vmul.f32 %v3500_v47, %v3500_v47  ;;  %v3208_v31 = vpop.f32.mrb[52].mxu1  ;;  %v9120_v3 = vsel %vm3793_vm12, %v3794_v10, %v3792_v55 }
 0x4e9   :  { %v3421_v36 = vadd.f32 %v8812_v48, %v3208_v31  ;;  %v3210_v42 = vpop.f32.mrb[53].mxu1  ;;  %v3799_v58 = vsel %vm3798_vm13, %v9064_v57, %v3797_v56 }
 0x4ea   :  { %8088 = vrsqrt.f32 %v9115_v44  ;;  %v9125_v34 = vadd.f32 %v3594_v2, %v3554_v18  ;;  %v3422_v33 = vadd.f32 %v8816_v6, %v3210_v42  ;;  %6898 = vmatpush3.bf16.msra.mxu0 %v7897_v7  ;;  %v3212_v1 = vpop.f32.mrb[54].mxu1  ;;  %v9128_v16 = vsel %vm3800_vm14, %v3801_v32, %v3799_v58 }
 0x4eb   :  { %v3501_v54 = vmax.f32 %v3421_v36, 0.0  ;;  %v3423_v63 = vadd.f32 %v8812_v48, %v3212_v1  ;;  %v3214_v41 = vpop.f32.mrb[55].mxu1  ;;  %6899 = vmatprep.subr.bf16.mxu0 %v8175_v49  ;;  %v3939_v57 = vpack.c.bf16 %v9128_v16, %v9120_v3  ;;  %v3815_v18 = vand.u32 2147483648, %v9092_v22  ;;  %v7900_v36 = vld [vmem:[#allocation6 + $0xe0] sm:$0xff]   ;;  %v7965_v3 = vld [vmem:[#allocation6 + $0x2e8] sm:$0xff]  }
 0x4ec   :  { %v8085_v26 = vpop.eup %8084  ;;  %8090 = vrsqrt.f32 %v9125_v34  ;;  %v3502_v29 = vmax.f32 %v3422_v33, 0.0  ;;  %v3424_v43 = vadd.f32 %v8816_v6, %v3214_v41  ;;  %vm3819_vm4 = vcmp.eq.f32.partialorder %v9115_v44, inf }
 0x4ed   :  { %v3555_v60 = vmul.f32 %v3501_v54, %v3501_v54  ;;  %v3503_v20 = vmax.f32 %v3423_v63, 0.0  ;;  %v3804_v5 = vmul.f32 %v8085_v26, %v9082_v4  ;;  %vm3821_vm5 = vcmp.eq.f32.partialorder %v9115_v44, 0.0 }
 0x4ee   :  { %v8087_v51 = vpop.eup %8086  ;;  %v3595_v8 = vmul.f32 %v3502_v29, %v3502_v29  ;;  %v3504_v40 = vmax.f32 %v3424_v43, 0.0  ;;  %6900 = vmatpush3.bf16.msra.mxu0 %v7898_v38  ;;  %vm3826_vm6 = vcmp.eq.f32.partialorder %v9125_v34, inf  ;;  %vm3828_vm7 = vcmp.eq.f32.partialorder %v9125_v34, 0.0 }
 0x4ef   :  { %v3556_v11 = vmul.f32 %v3503_v20, %v3503_v20  ;;  %6901 = vmatprep.subr.bf16.mxu0 %v8175_v49  ;;  %v3806_v24 = vsel %vm3805_vm15, %v9082_v4, %v3804_v5  ;;  %v3811_v13 = vmul.f32 %v8087_v51, %v9092_v22  ;;  %v7901_v5 = vld [vmem:[#allocation6 + $0xe8] sm:$0xff]  }
 0x4f0   :  { %v9143_v14 = vadd.f32 %v3595_v8, %v3555_v60  ;;  %v3596_v47 = vmul.f32 %v3504_v40, %v3504_v40  ;;  %v3218_v7 = vpop.f32.mrb[56].mxu1  ;;  %v9148_v56 = vsel %vm3807_vm1, %v3808_v25, %v3806_v24  ;;  %v3822_v40 = vand.u32 2147483648, %v9115_v44 }
 0x4f1   :  { %v3425_v55 = vadd.f32 %v8812_v48, %v3218_v7  ;;  %v3220_v10 = vpop.f32.mrb[57].mxu1  ;;  %v3813_v2 = vsel %vm3812_vm2, %v9092_v22, %v3811_v13  ;;  %v3829_v13 = vand.u32 2147483648, %v9125_v34 }
 0x4f2   :  { %8092 = vrsqrt.f32 %v9143_v14  ;;  %v9153_v4 = vadd.f32 %v3596_v47, %v3556_v11  ;;  %v3426_v31 = vadd.f32 %v8816_v6, %v3220_v10  ;;  %6902 = vmatpush3.bf16.msra.mxu0 %v7899_v62  ;;  %v3222_v32 = vpop.f32.mrb[58].mxu1  ;;  %v9156_v42 = vsel %vm3814_vm3, %v3815_v18, %v3813_v2 }
 0x4f3   :  { %v3505_v58 = vmax.f32 %v3425_v55, 0.0  ;;  %v3427_v33 = vadd.f32 %v8812_v48, %v3222_v32  ;;  %v3224_v1 = vpop.f32.mrb[59].mxu1  ;;  %6903 = vmatprep.subr.bf16.mxu0 %v8175_v49  ;;  %v3940_v22 = vpack.c.bf16 %v9156_v42, %v9148_v56  ;;  %vm3833_vm8 = vcmp.eq.f32.partialorder %v9143_v14, inf  ;;  %v7973_v56 = vld [vmem:[#allocation6 + $0x328] sm:$0xff]  }
 0x4f4   :  { %v8089_v38 = vpop.eup %8088  ;;  %8094 = vrsqrt.f32 %v9153_v4  ;;  %v3506_v54 = vmax.f32 %v3426_v31, 0.0  ;;  %v3428_v63 = vadd.f32 %v8816_v6, %v3224_v1  ;;  %v7902_v31 = vld [vmem:[#allocation6 + $0xf0] sm:$0xff]   ;;  %vm3835_vm9 = vcmp.eq.f32.partialorder %v9143_v14, 0.0 }
 0x4f5   :  { %v3557_v41 = vmul.f32 %v3505_v58, %v3505_v58  ;;  %v3507_v26 = vmax.f32 %v3427_v33, 0.0  ;;  %v3818_v29 = vmul.f32 %v8089_v38, %v9115_v44  ;;  %vm3840_vm10 = vcmp.eq.f32.partialorder %v9153_v4, inf }
 0x4f6   :  { %v8091_v43 = vpop.eup %8090  ;;  %v3597_v60 = vmul.f32 %v3506_v54, %v3506_v54  ;;  %v3508_v20 = vmax.f32 %v3428_v63, 0.0  ;;  %6904 = vmatpush3.bf16.msra.mxu0 %v7900_v36  ;;  %vm3842_vm11 = vcmp.eq.f32.partialorder %v9153_v4, 0.0 }
 0x4f7   :  { %v3558_v51 = vmul.f32 %v3507_v26, %v3507_v26  ;;  %6905 = vmatprep.subr.bf16.mxu0 %v8175_v49  ;;  %v3820_v8 = vsel %vm3819_vm4, %v9115_v44, %v3818_v29  ;;  %v3825_v62 = vmul.f32 %v8091_v43, %v9125_v34 }
 0x4f8   :  { %v9171_v11 = vadd.f32 %v3597_v60, %v3557_v41  ;;  %v3598_v24 = vmul.f32 %v3508_v20, %v3508_v20  ;;  %v3228_v25 = vpop.f32.mrb[60].mxu1  ;;  %v9176_v18 = vsel %vm3821_vm5, %v3822_v40, %v3820_v8  ;;  %v7903_v20 = vld [vmem:[#allocation6 + $0xf8] sm:$0xff]   ;;  %v3836_v8 = vand.u32 2147483648, %v9143_v14 }
 0x4f9   :  { %v3429_v47 = vadd.f32 %v8812_v48, %v3228_v25  ;;  %v3230_v7 = vpop.f32.mrb[61].mxu1  ;;  %v3827_v55 = vsel %vm3826_vm6, %v9125_v34, %v3825_v62 }
 0x4fa   :  { %8096 = vrsqrt.f32 %v9171_v11  ;;  %v9181_v44 = vadd.f32 %v3598_v24, %v3558_v51  ;;  %v3430_v10 = vadd.f32 %v8816_v6, %v3230_v7  ;;  %6906 = vmatpush3.bf16.msra.mxu0 %v7901_v5  ;;  %v3232_v2 = vpop.f32.mrb[62].mxu1  ;;  %v9184_v32 = vsel %vm3828_vm7, %v3829_v13, %v3827_v55 }
 0x4fb   :  { %v3509_v36 = vmax.f32 %v3429_v47, 0.0  ;;  %v3431_v58 = vadd.f32 %v8812_v48, %v3232_v2  ;;  %v3234_v33 = vpop.f32.mrb[63].mxu1  ;;  %6907 = vmatprep.subr.bf16.mxu0 %v8175_v49  ;;  %v3941_v34 = vpack.c.bf16 %v9184_v32, %v9176_v18  ;;  %v3843_v13 = vand.u32 2147483648, %v9153_v4  ;;  %v7981_v18 = vld [vmem:[#allocation6 + $0x368] sm:$0xff]  }
 0x4fc   :  { %v8093_v1 = vpop.eup %8092  ;;  %8098 = vrsqrt.f32 %v9181_v44  ;;  %v3510_v38 = vmax.f32 %v3430_v10, 0.0  ;;  %v3432_v54 = vadd.f32 %v8816_v6, %v3234_v33  ;;  %vm3847_vm12 = vcmp.eq.f32.partialorder %v9171_v11, inf }
 0x4fd   :  { %v3559_v63 = vmul.f32 %v3509_v36, %v3509_v36  ;;  %v3511_v41 = vmax.f32 %v3431_v58, 0.0  ;;  %v3832_v26 = vmul.f32 %v8093_v1, %v9143_v14  ;;  %v7904_v36 = vld [vmem:[#allocation6 + $0x100] sm:$0xff]   ;;  %vm3849_vm13 = vcmp.eq.f32.partialorder %v9171_v11, 0.0 }
 0x4fe   :  { %v8095_v29 = vpop.eup %8094  ;;  %v3599_v43 = vmul.f32 %v3510_v38, %v3510_v38  ;;  %v3512_v60 = vmax.f32 %v3432_v54, 0.0  ;;  %6908 = vmatpush3.bf16.msra.mxu0 %v7902_v31  ;;  %v3850_v59 = vand.u32 2147483648, %v9171_v11  ;;  %vm3854_vm14 = vcmp.eq.f32.partialorder %v9181_v44, inf }
 0x4ff   :  { %v3560_v5 = vmul.f32 %v3511_v41, %v3511_v41  ;;  %6909 = vmatprep.subr.bf16.mxu0 %v8175_v49  ;;  %v3834_v51 = vsel %vm3833_vm8, %v9143_v14, %v3832_v26  ;;  %v3839_v40 = vmul.f32 %v8095_v29, %v9153_v4  ;;  %vm3856_vm15 = vcmp.eq.f32.partialorder %v9181_v44, 0.0 }
 0x500   :  { %v9199_v62 = vadd.f32 %v3599_v43, %v3559_v63  ;;  %v3600_v24 = vmul.f32 %v3512_v60, %v3512_v60  ;;  %v3238_v25 = vpop.f32.mrb[64].mxu1  ;;  %v9204_v55 = vsel %vm3835_vm9, %v3836_v8, %v3834_v51  ;;  %v7905_v51 = vld [vmem:[#allocation6 + $0x108] sm:$0xff]  }
 0x501   :  { %v3433_v47 = vadd.f32 %v8812_v48, %v3238_v25  ;;  %v3240_v7 = vpop.f32.mrb[65].mxu1  ;;  %v3841_v10 = vsel %vm3840_vm10, %v9153_v4, %v3839_v40 }
 0x502   :  { %8100 = vrsqrt.f32 %v9199_v62  ;;  %v9209_v14 = vadd.f32 %v3600_v24, %v3560_v5  ;;  %v3434_v2 = vadd.f32 %v8816_v6, %v3240_v7  ;;  %6910 = vmatpush3.bf16.msra.mxu0 %v7903_v20  ;;  %v3242_v31 = vpop.f32.mrb[66].mxu1  ;;  %v9212_v58 = vsel %vm3842_vm11, %v3843_v13, %v3841_v10 }
 0x503   :  { %v3513_v33 = vmax.f32 %v3433_v47, 0.0  ;;  %v3435_v1 = vadd.f32 %v8812_v48, %v3242_v31  ;;  %v3244_v38 = vpop.f32.mrb[67].mxu1  ;;  %6915 = vmatprep.subr.bf16.mxu0 %v8175_v49  ;;  %v3942_v4 = vpack.c.bf16 %v9212_v58, %v9204_v55  ;;  %v3857_v13 = vand.u32 2147483648, %v9181_v44  ;;  %v7989_v55 = vld [vmem:[#allocation6 + $0x3a8] sm:$0xff]  }
 0x504   :  { %v8097_v54 = vpop.eup %8096  ;;  %8102 = vrsqrt.f32 %v9209_v14  ;;  %v3514_v63 = vmax.f32 %v3434_v2, 0.0  ;;  %v3436_v41 = vadd.f32 %v8816_v6, %v3244_v38  ;;  %vm3861_vm1 = vcmp.eq.f32.partialorder %v9199_v62, inf }
 0x505   :  { %v3561_v26 = vmul.f32 %v3513_v33, %v3513_v33  ;;  %v3515_v29 = vmax.f32 %v3435_v1, 0.0  ;;  %6912 = vmatmul.mubr.bf16.vlgmr.msra.gmra.mrb[108].mxu0 %v3932_v27  ;;  %v3846_v43 = vmul.f32 %v8097_v54, %v9171_v11  ;;  %v7906_v33 = vld [vmem:[#allocation6 + $0x110] sm:$0xff]   ;;  %vm3863_vm2 = vcmp.eq.f32.partialorder %v9199_v62, 0.0 }
 0x506   :  { %v8099_v60 = vpop.eup %8098  ;;  %v3601_v20 = vmul.f32 %v3514_v63, %v3514_v63  ;;  %v3516_v5 = vmax.f32 %v3436_v41, 0.0  ;;  %6916 = vmatpush3.bf16.msra.mxu0 %v7904_v36  ;;  %6931 = vmatprep.mubr.msk.bf16.mxu0 %vm8176_vm0, %v8175_v49  ;;  %vm3868_vm3 = vcmp.eq.f32.partialorder %v9209_v14, inf  ;;  %vm3870_vm4 = vcmp.eq.f32.partialorder %v9209_v14, 0.0 }
 0x507   :  { %v3562_v8 = vmul.f32 %v3515_v29, %v3515_v29  ;;  %6917 = vmatprep.subr.bf16.mxu0 %v8175_v49  ;;  %v3848_v0 = vsel %vm3847_vm12, %v9171_v11, %v3846_v43  ;;  %v3853_v27 = vmul.f32 %v8099_v60, %v9181_v44 }
 0x508   :  { %v9232_v40 = vadd.f32 %v3601_v20, %v3561_v26  ;;  %v3602_v24 = vmul.f32 %v3516_v5, %v3516_v5  ;;  %v3248_v25 = vpop.f32.mrb[68].mxu1  ;;  %v9237_v10 = vsel %vm3849_vm13, %v3850_v59, %v3848_v0  ;;  %v7907_v0 = vld [vmem:[#allocation6 + $0x118] sm:$0xff]  }
 0x509   :  { %v3437_v47 = vadd.f32 %v8812_v48, %v3248_v25  ;;  %v3250_v7 = vpop.f32.mrb[69].mxu1  ;;  %v3855_v2 = vsel %vm3854_vm14, %v9181_v44, %v3853_v27 }
 0x50a   :  { %8104 = vrsqrt.f32 %v9232_v40  ;;  %v9242_v11 = vadd.f32 %v3602_v24, %v3562_v8  ;;  %v3438_v31 = vadd.f32 %v8816_v6, %v3250_v7  ;;  %6918 = vmatpush3.bf16.msra.mxu0 %v7905_v51  ;;  %v3252_v36 = vpop.f32.mrb[70].mxu1  ;;  %v9245_v1 = vsel %vm3856_vm15, %v3857_v13, %v3855_v2 }
 0x50b   :  { %v3517_v38 = vmax.f32 %v3437_v47, 0.0  ;;  %v3439_v54 = vadd.f32 %v8812_v48, %v3252_v36  ;;  %v3254_v63 = vpop.f32.mrb[71].mxu1  ;;  %6919 = vmatprep.subr.bf16.mxu0 %v8175_v49  ;;  %v3943_v44 = vpack.c.bf16 %v9245_v1, %v9237_v10  ;;  %v3864_v24 = vand.u32 2147483648, %v9199_v62  ;;  %v7997_v10 = vld [vmem:[#allocation6 + $0x3e8] sm:$0xff]  }
 0x50c   :  { %v8101_v41 = vpop.eup %8100  ;;  %8106 = vrsqrt.f32 %v9242_v11  ;;  %v3518_v26 = vmax.f32 %v3438_v31, 0.0  ;;  %v3440_v29 = vadd.f32 %v8816_v6, %v3254_v63  ;;  %v3871_v2 = vand.u32 2147483648, %v9209_v14 }
 0x50d   :  { %v3563_v43 = vmul.f32 %v3517_v38, %v3517_v38  ;;  %v3519_v60 = vmax.f32 %v3439_v54, 0.0  ;;  %v3860_v20 = vmul.f32 %v8101_v41, %v9199_v62  ;;  %v7908_v41 = vld [vmem:[#allocation6 + $0x120] sm:$0xff]   ;;  %vm3875_vm5 = vcmp.eq.f32.partialorder %v9232_v40, inf }
 0x50e   :  { %v8103_v5 = vpop.eup %8102  ;;  %v3603_v51 = vmul.f32 %v3518_v26, %v3518_v26  ;;  %v3520_v8 = vmax.f32 %v3440_v29, 0.0  ;;  %6920 = vmatpush3.bf16.msra.mxu0 %v7906_v33  ;;  %vm3877_vm6 = vcmp.eq.f32.partialorder %v9232_v40, 0.0  ;;  %vm3882_vm7 = vcmp.eq.f32.partialorder %v9242_v11, inf }
 0x50f   :  { %v3564_v59 = vmul.f32 %v3519_v60, %v3519_v60  ;;  %6921 = vmatprep.subr.bf16.mxu0 %v8175_v49  ;;  %v3862_v27 = vsel %vm3861_vm1, %v9199_v62, %v3860_v20  ;;  %v3867_v25 = vmul.f32 %v8103_v5, %v9209_v14  ;;  %vm3884_vm8 = vcmp.eq.f32.partialorder %v9242_v11, 0.0 }
 0x510   :  { %v9260_v13 = vadd.f32 %v3603_v51, %v3563_v43  ;;  %v3604_v47 = vmul.f32 %v3520_v8, %v3520_v8  ;;  %v3258_v7 = vpop.f32.mrb[72].mxu1  ;;  %v9265_v33 = vsel %vm3863_vm2, %v3864_v24, %v3862_v27 }
 0x511   :  { %v3441_v31 = vadd.f32 %v8812_v48, %v3258_v7  ;;  %v3260_v36 = vpop.f32.mrb[73].mxu1  ;;  %v3869_v38 = vsel %vm3868_vm3, %v9209_v14, %v3867_v25 }
 0x512   :  { %8108 = vrsqrt.f32 %v9260_v13  ;;  %v9270_v62 = vadd.f32 %v3604_v47, %v3564_v59  ;;  %v3442_v54 = vadd.f32 %v8816_v6, %v3260_v36  ;;  %6922 = vmatpush3.bf16.msra.mxu0 %v7907_v0  ;;  %v3262_v63 = vpop.f32.mrb[74].mxu1  ;;  %v9273_v26 = vsel %vm3870_vm4, %v3871_v2, %v3869_v38  ;;  %v7909_v47 = vld [vmem:[#allocation6 + $0x128] sm:$0xff]  }
 0x513   :  { %v3521_v29 = vmax.f32 %v3441_v31, 0.0  ;;  %v3443_v43 = vadd.f32 %v8812_v48, %v3262_v63  ;;  %v3264_v60 = vpop.f32.mrb[75].mxu1  ;;  %6923 = vmatprep.subr.bf16.mxu0 %v8175_v49  ;;  %v3944_v14 = vpack.c.bf16 %v9273_v26, %v9265_v33  ;;  %v3878_v31 = vand.u32 2147483648, %v9232_v40  ;;  %v8005_v33 = vld [vmem:[#allocation6 + $0x428] sm:$0xff]  }
 0x514   :  { %v8105_v20 = vpop.eup %8104  ;;  %8110 = vrsqrt.f32 %v9270_v62  ;;  %v3522_v5 = vmax.f32 %v3442_v54, 0.0  ;;  %v3444_v51 = vadd.f32 %v8816_v6, %v3264_v60  ;;  %vm3889_vm9 = vcmp.eq.f32.partialorder %v9260_v13, inf }
 0x515   :  { %v3565_v8 = vmul.f32 %v3521_v29, %v3521_v29  ;;  %v3523_v0 = vmax.f32 %v3443_v43, 0.0  ;;  %v3874_v59 = vmul.f32 %v8105_v20, %v9232_v40  ;;  %vm3896_vm10 = vcmp.eq.f32.partialorder %v9270_v62, inf }
 0x516   :  { %v8107_v27 = vpop.eup %8106  ;;  %v3605_v24 = vmul.f32 %v3522_v5, %v3522_v5  ;;  %v3524_v25 = vmax.f32 %v3444_v51, 0.0  ;;  %6924 = vmatpush3.bf16.msra.mxu0 %v7908_v41  ;;  %v3885_v41 = vand.u32 2147483648, %v9242_v11  ;;  %vm3891_vm11 = vcmp.eq.f32.partialorder %v9260_v13, 0.0 }
 0x517   :  { %v3566_v7 = vmul.f32 %v3523_v0, %v3523_v0  ;;  %6925 = vmatprep.subr.bf16.mxu0 %v8175_v49  ;;  %v3876_v2 = vsel %vm3875_vm5, %v9232_v40, %v3874_v59  ;;  %v3881_v36 = vmul.f32 %v8107_v27, %v9242_v11  ;;  %vm3898_vm12 = vcmp.eq.f32.partialorder %v9270_v62, 0.0 }
 0x518   :  { %v9288_v38 = vadd.f32 %v3605_v24, %v3565_v8  ;;  %v3606_v54 = vmul.f32 %v3524_v25, %v3524_v25  ;;  %v3268_v63 = vpop.f32.mrb[76].mxu1  ;;  %v9293_v60 = vsel %vm3877_vm6, %v3878_v31, %v3876_v2  ;;  %v7910_v8 = vld [vmem:[#allocation6 + $0x130] sm:$0xff]  }
 0x519   :  { %v3445_v29 = vadd.f32 %v8812_v48, %v3268_v63  ;;  %v3270_v43 = vpop.f32.mrb[77].mxu1  ;;  %v3883_v20 = vsel %vm3882_vm7, %v9242_v11, %v3881_v36 }
 0x51a   :  { %8112 = vrsqrt.f32 %v9288_v38  ;;  %v9298_v40 = vadd.f32 %v3606_v54, %v3566_v7  ;;  %v3446_v5 = vadd.f32 %v8816_v6, %v3270_v43  ;;  %6926 = vmatpush3.bf16.msra.mxu0 %v7909_v47  ;;  %v3272_v51 = vpop.f32.mrb[78].mxu1  ;;  %v9301_v0 = vsel %vm3884_vm8, %v3885_v41, %v3883_v20 }
 0x51b   :  { %v3525_v59 = vmax.f32 %v3445_v29, 0.0  ;;  %v3447_v27 = vadd.f32 %v8812_v48, %v3272_v51  ;;  %v3274_v24 = vpop.f32.mrb[79].mxu1  ;;  %6927 = vmatprep.subr.bf16.mxu0 %v8175_v49  ;;  %v3945_v11 = vpack.c.bf16 %v9301_v0, %v9293_v60  ;;  %v7911_v48 = vld [vmem:[#allocation6 + $0x138] sm:$0xff]   ;;  %v3892_v20 = vand.u32 2147483648, %v9260_v13  ;;  %v8013_v60 = vld [vmem:[#allocation6 + $0x468] sm:$0xff]  }
 0x51c   :  { %v8109_v25 = vpop.eup %8108  ;;  %8114 = vrsqrt.f32 %v9298_v40  ;;  %v3526_v7 = vmax.f32 %v3446_v5, 0.0  ;;  %v3448_v2 = vadd.f32 %v8816_v6, %v3274_v24  ;;  %v7912_v24 = vld [vmem:[#allocation6 + $0x140] sm:$0xff]   ;;  %vm3903_vm13 = vcmp.eq.f32.partialorder %v9288_v38, inf }
 0x51d   :  { %v3567_v47 = vmul.f32 %v3525_v59, %v3525_v59  ;;  %v3527_v31 = vmax.f32 %v3447_v27, 0.0  ;;  %v3888_v36 = vmul.f32 %v8109_v25, %v9260_v13  ;;  %v3899_v59 = vand.u32 2147483648, %v9270_v62 }
 0x51e   :  { %v8111_v54 = vpop.eup %8110  ;;  %v3607_v63 = vmul.f32 %v3526_v7, %v3526_v7  ;;  %v3528_v41 = vmax.f32 %v3448_v2, 0.0  ;;  %6928 = vmatpush3.bf16.msra.mxu0 %v7910_v8  ;;  %vm3910_vm14 = vcmp.eq.f32.partialorder %v9298_v40, inf  ;;  %v3913_v9 = vand.u32 2147483648, %v9298_v40 }
 0x51f   :  { %v3568_v29 = vmul.f32 %v3527_v31, %v3527_v31  ;;  %6929 = vmatprep.subr.bf16.mxu0 %v8175_v49  ;;  %v3890_v43 = vsel %vm3889_vm9, %v9260_v13, %v3888_v36  ;;  %v3895_v6 = vmul.f32 %v8111_v54, %v9270_v62  ;;  %v7913_v31 = vld [vmem:[#allocation6 + $0x148] sm:$0xff]   ;;  %vm3905_vm15 = vcmp.eq.f32.partialorder %v9288_v38, 0.0 }
 0x520   :  { %v3647_v5 = vadd.f32 %v3607_v63, %v3567_v47  ;;  %v3608_v51 = vmul.f32 %v3528_v41, %v3528_v41  ;;  %v9320_v25 = vsel %vm3891_vm11, %v3892_v20, %v3890_v43  ;;  %v3906_v63 = vand.u32 2147483648, %v9288_v38 }
 0x521   :  { %v3897_v8 = vsel %vm3896_vm10, %v9270_v62, %v3895_v6  ;;  %vm3912_vm1 = vcmp.eq.f32.partialorder %v9298_v40, 0.0 }
 0x522   :  { %8116 = vrsqrt.f32 %v3647_v5  ;;  %v3648_v27 = vadd.f32 %v3608_v51, %v3568_v29  ;;  %6930 = vmatpush3.bf16.msra.mxu0 %v7911_v48  ;;  %v9322_v7 = vsel %vm3898_vm12, %v3899_v59, %v3897_v8  ;;  %vm3917_vm2 = vcmp.eq.f32.partialorder %v3647_v5, inf }
 0x523   :  { %6935 = vmatprep.subr.bf16.mxu0 %v8175_v49  ;;  %v3946_v2 = vpack.c.bf16 %v9322_v7, %v9320_v25  ;;  %v3920_v59 = vand.u32 2147483648, %v3647_v5  ;;  %vm3919_vm4 = vcmp.eq.f32.partialorder %v3647_v5, 0.0  ;;  %v8021_v25 = vld [vmem:[#allocation6 + $0x4a8] sm:$0xff]  }
 0x524   :  { %v8113_v47 = vpop.eup %8112  ;;  %8118 = vrsqrt.f32 %v3648_v27  ;;  %vm3924_vm3 = vcmp.eq.f32.partialorder %v3648_v27, inf  ;;  %v3927_v8 = vand.u32 2147483648, %v3648_v27  ;;  %vm3926_vm5 = vcmp.eq.f32.partialorder %v3648_v27, 0.0 }
 0x525   :  { %6932 = vmatmul.mubr.bf16.vlgmr.msra.gmra.mrb[112].mxu0 %v3933_v28  ;;  %v3902_v13 = vmul.f32 %v8113_v47, %v9288_v38  ;;  %v7914_v28 = vld [vmem:[#allocation6 + $0x150] sm:$0xff]   ;;  %v7916_v47 = vld [vmem:[#allocation6 + $0x160] sm:$0xff]  }
 0x526   :  { %v8115_v62 = vpop.eup %8114  ;;  %6936 = vmatpush3.bf16.msra.mxu0 %v7912_v24  ;;  %6951 = vmatprep.mubr.msk.bf16.mxu0 %vm8176_vm0, %v8175_v49 }
 0x527   :  { %6937 = vmatprep.subr.bf16.mxu0 %v8175_v49  ;;  %v3904_v36 = vsel %vm3903_vm13, %v9288_v38, %v3902_v13  ;;  %v3909_v54 = vmul.f32 %v8115_v62, %v9298_v40  ;;  %v7915_v38 = vld [vmem:[#allocation6 + $0x158] sm:$0xff]  }
 0x528   :  { %v9343_v41 = vsel %vm3905_vm15, %v3906_v63, %v3904_v36  ;;  %v7917_v36 = vld [vmem:[#allocation6 + $0x168] sm:$0xff]  }
 0x529   :  { %v3911_v30 = vsel %vm3910_vm14, %v9298_v40, %v3909_v54  ;;  %v7918_v54 = vld [vmem:[#allocation6 + $0x170] sm:$0xff]   ;;  %v7921_v63 = vld [vmem:[#allocation6 + $0x188] sm:$0xff]  }
 0x52a   :  { %6938 = vmatpush3.bf16.msra.mxu0 %v7913_v31  ;;  %v9345_v48 = vsel %vm3912_vm1, %v3913_v9, %v3911_v30  ;;  %v7922_v9 = vld [vmem:[#allocation6 + $0x190] sm:$0xff]   ;;  %v7923_v30 = vld [vmem:[#allocation6 + $0x198] sm:$0xff]  }
 0x52b   :  { %6939 = vmatprep.subr.bf16.mxu0 %v8175_v49  ;;  %v3947_v29 = vpack.c.bf16 %v9345_v48, %v9343_v41  ;;  %v8029_v41 = vld [vmem:[#allocation6 + $0x4e8] sm:$0xff]  }
 0x52c   :  { %v8117_v43 = vpop.eup %8116 }
 0x52d   :  { %v3916_v20 = vmul.f32 %v8117_v43, %v3647_v5  ;;  %v7928_v43 = vld [vmem:[#allocation6 + $0x1c0] sm:$0xff]  }
 0x52e   :  { %v8119_v6 = vpop.eup %8118  ;;  %6940 = vmatpush3.bf16.msra.mxu0 %v7914_v28  ;;  %v7924_v28 = vld [vmem:[#allocation6 + $0x1a0] sm:$0xff]  }
 0x52f   :  { %6941 = vmatprep.subr.bf16.mxu0 %v8175_v49  ;;  %v3918_v40 = vsel %vm3917_vm2, %v3647_v5, %v3916_v20  ;;  %v3923_v51 = vmul.f32 %v8119_v6, %v3648_v27  ;;  %v7919_v5 = vld [vmem:[#allocation6 + $0x178] sm:$0xff]   ;;  %v7929_v20 = vld [vmem:[#allocation6 + $0x1c8] sm:$0xff]   ;;  %v7930_v6 = vld [vmem:[#allocation6 + $0x1d0] sm:$0xff]  }
 0x530   :  { %v9351_v13 = vsel %vm3919_vm4, %v3920_v59, %v3918_v40  ;;  %v7932_v40 = vld [vmem:[#allocation6 + $0x1e0] sm:$0xff]   ;;  %v7934_v59 = vld [vmem:[#allocation6 + $0x1f0] sm:$0xff]  }
 0x531   :  { %v3925_v24 = vsel %vm3924_vm3, %v3648_v27, %v3923_v51  ;;  %v7920_v27 = vld [vmem:[#allocation6 + $0x180] sm:$0xff]  }
 0x532   :  { %6942 = vmatpush3.bf16.msra.mxu0 %v7915_v38  ;;  %v9353_v62 = vsel %vm3926_vm5, %v3927_v8, %v3925_v24  ;;  %v7931_v38 = vld [vmem:[#allocation6 + $0x1d8] sm:$0xff]  }
 0x533   :  { %6943 = vmatprep.subr.bf16.mxu0 %v8175_v49  ;;  %v3948_v31 = vpack.c.bf16 %v9353_v62, %v9351_v13  ;;  %v7935_v24 = vld [vmem:[#allocation6 + $0x1f8] sm:$0xff]   ;;  %v8032_v13 = vld [vmem:[%s9599_s7] sm:$0xff]   ;;  %v8033_v62 = vld [vmem:[%s9599_s7 + $0x8] sm:$0xff]  }
 0x536   :  { %6944 = vmatpush3.bf16.msra.mxu0 %v7916_v47  ;;  %v7936_v47 = vld [vmem:[#allocation6 + $0x200] sm:$0xff]  }
 0x537   :  { %6945 = vmatprep.subr.bf16.mxu0 %v8175_v49 }
 0x53a   :  { %6946 = vmatpush3.bf16.msra.mxu0 %v7917_v36  ;;  %v7937_v36 = vld [vmem:[#allocation6 + $0x208] sm:$0xff]  }
 0x53b   :  { %6947 = vmatprep.subr.bf16.mxu0 %v8175_v49 }
 0x53e   :  { %6948 = vmatpush3.bf16.msra.mxu0 %v7918_v54  ;;  %v7938_v54 = vld [vmem:[#allocation6 + $0x210] sm:$0xff]  }
 0x53f   :  { %6949 = vmatprep.subr.bf16.mxu0 %v8175_v49 }
 0x542   :  { %6950 = vmatpush3.bf16.msra.mxu0 %v7919_v5  ;;  %v7939_v5 = vld [vmem:[#allocation6 + $0x218] sm:$0xff]  }
 0x543   :  { %6955 = vmatprep.subr.bf16.mxu0 %v8175_v49 }
 0x545   :  { %6952 = vmatmul.mubr.bf16.vlgmr.msra.gmra.mrb[116].mxu0 %v3934_v21  ;;  %v7927_v21 = vld [vmem:[#allocation6 + $0x1b8] sm:$0xff]  }
 0x546   :  { %6956 = vmatpush3.bf16.msra.mxu0 %v7920_v27  ;;  %6971 = vmatprep.mubr.msk.bf16.mxu0 %vm8176_vm0, %v8175_v49  ;;  %v7940_v27 = vld [vmem:[#allocation6 + $0x220] sm:$0xff]  }
 0x547   :  { %6957 = vmatprep.subr.bf16.mxu0 %v8175_v49 }
 0x54a   :  { %6958 = vmatpush3.bf16.msra.mxu0 %v7921_v63 }
 0x54b   :  { %6959 = vmatprep.subr.bf16.mxu0 %v8175_v49 }
 0x54e   :  { %6960 = vmatpush3.bf16.msra.mxu0 %v7922_v9 }
 0x54f   :  { %6961 = vmatprep.subr.bf16.mxu0 %v8175_v49 }
 0x552   :  { %6962 = vmatpush3.bf16.msra.mxu0 %v7923_v30  ;;  %v7942_v30 = vld [vmem:[#allocation6 + $0x230] sm:$0xff]  }
 0x553   :  { %6963 = vmatprep.subr.bf16.mxu0 %v8175_v49 }
 0x556   :  { %6964 = vmatpush3.bf16.msra.mxu0 %v7924_v28 }
 0x557   :  { %6965 = vmatprep.subr.bf16.mxu0 %v8175_v49 }
 0x55a   :  { %6966 = vmatpush3.bf16.msra.mxu0 %v7925_v39 }
 0x55b   :  { %6967 = vmatprep.subr.bf16.mxu0 %v8175_v49 }
 0x55e   :  { %6968 = vmatpush3.bf16.msra.mxu0 %v7926_v15  ;;  %v7943_v15 = vld [vmem:[#allocation6 + $0x238] sm:$0xff]  }
 0x55f   :  { %6969 = vmatprep.subr.bf16.mxu0 %v8175_v49 }
 0x562   :  { %6970 = vmatpush3.bf16.msra.mxu0 %v7927_v21  ;;  %v7944_v21 = vld [vmem:[#allocation6 + $0x240] sm:$0xff]  }
 0x563   :  { %6975 = vmatprep.subr.bf16.mxu0 %v8175_v49 }
 0x565   :  { %6972 = vmatmul.mubr.bf16.vlgmr.msra.gmra.mrb[120].mxu0 %v3935_v23 }
 0x566   :  { %6976 = vmatpush3.bf16.msra.mxu0 %v7928_v43  ;;  %6991 = vmatprep.mubr.msk.bf16.mxu0 %vm8176_vm0, %v8175_v49  ;;  %v7945_v43 = vld [vmem:[#allocation6 + $0x248] sm:$0xff]  }
 0x567   :  { %6977 = vmatprep.subr.bf16.mxu0 %v8175_v49 }
 0x56a   :  { %6978 = vmatpush3.bf16.msra.mxu0 %v7929_v20  ;;  %v7946_v20 = vld [vmem:[#allocation6 + $0x250] sm:$0xff]  }
 0x56b   :  { %6979 = vmatprep.subr.bf16.mxu0 %v8175_v49 }
 0x56e   :  { %6980 = vmatpush3.bf16.msra.mxu0 %v7930_v6  ;;  %v7947_v6 = vld [vmem:[#allocation6 + $0x258] sm:$0xff]  }
 0x56f   :  { %6981 = vmatprep.subr.bf16.mxu0 %v8175_v49 }
 0x572   :  { %6982 = vmatpush3.bf16.msra.mxu0 %v7931_v38  ;;  %v7948_v38 = vld [vmem:[#allocation6 + $0x260] sm:$0xff]  }
 0x573   :  { %6983 = vmatprep.subr.bf16.mxu0 %v8175_v49 }
 0x576   :  { %6984 = vmatpush3.bf16.msra.mxu0 %v7932_v40 }
 0x577   :  { %6985 = vmatprep.subr.bf16.mxu0 %v8175_v49 }
 0x578   :  { %v4086_v37 = vpop.f32.mrb[96].mxu0 }
 0x579   :  { %v6853_v23 = vpop.f32.mrb[97].mxu0 }
 0x57a   :  { %6986 = vmatpush3.bf16.msra.mxu0 %v7933_v45  ;;  %v4089_v51 = vpop.f32.mrb[98].mxu0 }
 0x57b   :  { %v6854_v8 = vpop.f32.mrb[99].mxu0  ;;  %6987 = vmatprep.subr.bf16.mxu0 %v8175_v49 }
 0x57c   :  { %v7952_v8 = vld [vmem:[#allocation6 + $0x280] sm:$0xff]  }
 0x57e   :  { %6988 = vmatpush3.bf16.msra.mxu0 %v7934_v59  ;;  %v7951_v59 = vld [vmem:[#allocation6 + $0x278] sm:$0xff]  }
 0x57f   :  { %6989 = vmatprep.subr.bf16.mxu0 %v8175_v49 }
 0x582   :  { %6990 = vmatpush3.bf16.msra.mxu0 %v7935_v24  ;;  %v7953_v24 = vld [vmem:[#allocation6 + $0x288] sm:$0xff]  }
 0x583   :  { %6995 = vmatprep.subr.bf16.mxu0 %v8175_v49 }
 0x585   :  { %6992 = vmatmul.mubr.bf16.vlgmr.msra.gmra.mrb[124].mxu0 %v3936_v46 }
 0x586   :  { %6996 = vmatpush3.bf16.msra.mxu0 %v7936_v47  ;;  %7011 = vmatprep.mubr.msk.bf16.mxu0 %vm8176_vm0, %v8175_v49  ;;  %v7954_v47 = vld [vmem:[#allocation6 + $0x290] sm:$0xff]  }
 0x587   :  { %6997 = vmatprep.subr.bf16.mxu0 %v8175_v49 }
 0x58a   :  { %6998 = vmatpush3.bf16.msra.mxu0 %v7937_v36  ;;  %v7955_v36 = vld [vmem:[#allocation6 + $0x298] sm:$0xff]  }
 0x58b   :  { %6999 = vmatprep.subr.bf16.mxu0 %v8175_v49 }
 0x58e   :  { %7000 = vmatpush3.bf16.msra.mxu0 %v7938_v54  ;;  %v7956_v54 = vld [vmem:[#allocation6 + $0x2a0] sm:$0xff]  }
 0x58f   :  { %7001 = vmatprep.subr.bf16.mxu0 %v8175_v49 }
 0x592   :  { %7002 = vmatpush3.bf16.msra.mxu0 %v7939_v5 }
 0x593   :  { %7003 = vmatprep.subr.bf16.mxu0 %v8175_v49 }
 0x596   :  { %7004 = vmatpush3.bf16.msra.mxu0 %v7940_v27 }
 0x597   :  { %7005 = vmatprep.subr.bf16.mxu0 %v8175_v49 }
 0x598   :  { %v4175_v12 = vpop.f32.mrb[100].mxu0 }
 0x599   :  { %v4176_v46 = vadd.f32 %v4175_v12, %v4086_v37  ;;  %v6873_v63 = vpop.f32.mrb[101].mxu0  ;;  %v7950_v37 = vld [vmem:[#allocation6 + $0x270] sm:$0xff]  }
 0x59a   :  { %v4178_v9 = vpop.f32.mrb[102].mxu0  ;;  %7006 = vmatpush3.bf16.msra.mxu0 %v7941_v17  ;;  %v7958_v17 = vld [vmem:[#allocation6 + $0x2b0] sm:$0xff]   ;;  %v7959_v63 = vld [vmem:[#allocation6 + $0x2b8] sm:$0xff]  }
 0x59b   :  { %v4179_v28 = vadd.f32 %v4178_v9, %v4089_v51  ;;  %v6874_v39 = vpop.f32.mrb[103].mxu0  ;;  %7007 = vmatprep.subr.bf16.mxu0 %v8175_v49  ;;  %v7960_v9 = vld [vmem:[#allocation6 + $0x2c0] sm:$0xff]  }
 0x59c   :  { %v7963_v39 = vld [vmem:[#allocation6 + $0x2d8] sm:$0xff]  }
 0x59e   :  { %7008 = vmatpush3.bf16.msra.mxu0 %v7942_v30  ;;  %v7961_v30 = vld [vmem:[#allocation6 + $0x2c8] sm:$0xff]  }
 0x59f   :  { %7009 = vmatprep.subr.bf16.mxu0 %v8175_v49 }
 0x5a2   :  { %7010 = vmatpush3.bf16.msra.mxu0 %v7943_v15  ;;  %v7964_v15 = vld [vmem:[#allocation6 + $0x2e0] sm:$0xff]  }
 0x5a3   :  { %7015 = vmatprep.subr.bf16.mxu0 %v8175_v49 }
 0x5a5   :  { %7012 = vmatmul.mubr.bf16.vlgmr.msra.gmra.mrb[128].mxu0 %v3937_v35 }
 0x5a6   :  { %7016 = vmatpush3.bf16.msra.mxu0 %v7944_v21  ;;  %7031 = vmatprep.mubr.msk.bf16.mxu0 %vm8176_vm0, %v8175_v49 }
 0x5a7   :  { %7017 = vmatprep.subr.bf16.mxu0 %v8175_v49 }
 0x5aa   :  { %7018 = vmatpush3.bf16.msra.mxu0 %v7945_v43 }
 0x5ab   :  { %7019 = vmatprep.subr.bf16.mxu0 %v8175_v49 }
 0x5ae   :  { %7020 = vmatpush3.bf16.msra.mxu0 %v7946_v20  ;;  %v7966_v20 = vld [vmem:[#allocation6 + $0x2f0] sm:$0xff]  }
 0x5af   :  { %7021 = vmatprep.subr.bf16.mxu0 %v8175_v49 }
 0x5b2   :  { %7022 = vmatpush3.bf16.msra.mxu0 %v7947_v6 }
 0x5b3   :  { %7023 = vmatprep.subr.bf16.mxu0 %v8175_v49 }
 0x5b6   :  { %7024 = vmatpush3.bf16.msra.mxu0 %v7948_v38 }
 0x5b7   :  { %7025 = vmatprep.subr.bf16.mxu0 %v8175_v49 }
 0x5b8   :  { %v4282_v61 = vpop.f32.mrb[104].mxu0 }
 0x5b9   :  { %v4289_v35 = vadd.f32 %v4282_v61, %v4176_v46  ;;  %v6893_v40 = vpop.f32.mrb[105].mxu0  ;;  %v7968_v61 = vld [vmem:[#allocation6 + $0x300] sm:$0xff]  }
 0x5ba   :  { %v4285_v45 = vpop.f32.mrb[106].mxu0  ;;  %7026 = vmatpush3.bf16.msra.mxu0 %v7949_v19  ;;  %v7967_v19 = vld [vmem:[#allocation6 + $0x2f8] sm:$0xff]   ;;  %v7970_v40 = vld [vmem:[#allocation6 + $0x310] sm:$0xff]  }
 0x5bb   :  { %v4290_v23 = vadd.f32 %v4285_v45, %v4179_v28  ;;  %v6894_v51 = vpop.f32.mrb[107].mxu0  ;;  %7027 = vmatprep.subr.bf16.mxu0 %v8175_v49  ;;  %v7962_v28 = vld [vmem:[#allocation6 + $0x2d0] sm:$0xff]   ;;  %v7971_v45 = vld [vmem:[#allocation6 + $0x318] sm:$0xff]  }
 0x5be   :  { %7028 = vmatpush3.bf16.msra.mxu0 %v7950_v37  ;;  %v7972_v37 = vld [vmem:[#allocation6 + $0x320] sm:$0xff]  }
 0x5bf   :  { %7029 = vmatprep.subr.bf16.mxu0 %v8175_v49 }
 0x5c2   :  { %7030 = vmatpush3.bf16.msra.mxu0 %v7951_v59  ;;  %v7974_v59 = vld [vmem:[#allocation6 + $0x330] sm:$0xff]  }
 0x5c3   :  { %7035 = vmatprep.subr.bf16.mxu0 %v8175_v49 }
 0x5c5   :  { %7032 = vmatmul.mubr.bf16.vlgmr.msra.gmra.mrb[132].mxu0 %v3938_v53 }
 0x5c6   :  { %7036 = vmatpush3.bf16.msra.mxu0 %v7952_v8  ;;  %7051 = vmatprep.mubr.msk.bf16.mxu0 %vm8176_vm0, %v8175_v49 }
 0x5c7   :  { %7037 = vmatprep.subr.bf16.mxu0 %v8175_v49 }
 0x5ca   :  { %7038 = vmatpush3.bf16.msra.mxu0 %v7953_v24 }
 0x5cb   :  { %7039 = vmatprep.subr.bf16.mxu0 %v8175_v49 }
 0x5ce   :  { %7040 = vmatpush3.bf16.msra.mxu0 %v7954_v47  ;;  %v7975_v47 = vld [vmem:[#allocation6 + $0x338] sm:$0xff]  }
 0x5cf   :  { %7041 = vmatprep.subr.bf16.mxu0 %v8175_v49 }
 0x5d2   :  { %7042 = vmatpush3.bf16.msra.mxu0 %v7955_v36  ;;  %v7976_v36 = vld [vmem:[#allocation6 + $0x340] sm:$0xff]  }
 0x5d3   :  { %7043 = vmatprep.subr.bf16.mxu0 %v8175_v49 }
 0x5d6   :  { %7044 = vmatpush3.bf16.msra.mxu0 %v7956_v54  ;;  %v7977_v54 = vld [vmem:[#allocation6 + $0x348] sm:$0xff]  }
 0x5d7   :  { %7045 = vmatprep.subr.bf16.mxu0 %v8175_v49 }
 0x5d8   :  { %v4391_v52 = vpop.f32.mrb[108].mxu0 }
 0x5d9   :  { %v4398_v53 = vadd.f32 %v4391_v52, %v4289_v35  ;;  %v6913_v5 = vpop.f32.mrb[109].mxu0  ;;  %v7969_v35 = vld [vmem:[#allocation6 + $0x308] sm:$0xff]   ;;  %v7979_v52 = vld [vmem:[#allocation6 + $0x358] sm:$0xff]  }
 0x5da   :  { %v4394_v27 = vpop.f32.mrb[110].mxu0  ;;  %7046 = vmatpush3.bf16.msra.mxu0 %v7957_v50  ;;  %v7978_v50 = vld [vmem:[#allocation6 + $0x350] sm:$0xff]  }
 0x5db   :  { %v4399_v12 = vadd.f32 %v4394_v27, %v4290_v23  ;;  %v6914_v46 = vpop.f32.mrb[111].mxu0  ;;  %7047 = vmatprep.subr.bf16.mxu0 %v8175_v49 }
 0x5de   :  { %7048 = vmatpush3.bf16.msra.mxu0 %v7958_v17  ;;  %v7982_v17 = vld [vmem:[#allocation6 + $0x370] sm:$0xff]  }
 0x5df   :  { %7049 = vmatprep.subr.bf16.mxu0 %v8175_v49 }
 0x5e2   :  { %7050 = vmatpush3.bf16.msra.mxu0 %v7959_v63  ;;  %v7983_v63 = vld [vmem:[#allocation6 + $0x378] sm:$0xff]  }
 0x5e3   :  { %7055 = vmatprep.subr.bf16.mxu0 %v8175_v49 }
 0x5e5   :  { %7052 = vmatmul.mubr.bf16.vlgmr.msra.gmra.mrb[136].mxu0 %v3939_v57 }
 0x5e6   :  { %7056 = vmatpush3.bf16.msra.mxu0 %v7960_v9  ;;  %7071 = vmatprep.mubr.msk.bf16.mxu0 %vm8176_vm0, %v8175_v49  ;;  %v7984_v9 = vld [vmem:[#allocation6 + $0x380] sm:$0xff]  }
 0x5e7   :  { %7057 = vmatprep.subr.bf16.mxu0 %v8175_v49 }
 0x5ea   :  { %7058 = vmatpush3.bf16.msra.mxu0 %v7961_v30  ;;  %v7985_v30 = vld [vmem:[#allocation6 + $0x388] sm:$0xff]  }
 0x5eb   :  { %7059 = vmatprep.subr.bf16.mxu0 %v8175_v49 }
 0x5ee   :  { %7060 = vmatpush3.bf16.msra.mxu0 %v7962_v28  ;;  %v7986_v28 = vld [vmem:[#allocation6 + $0x390] sm:$0xff]  }
 0x5ef   :  { %7061 = vmatprep.subr.bf16.mxu0 %v8175_v49 }
 0x5f2   :  { %7062 = vmatpush3.bf16.msra.mxu0 %v7963_v39  ;;  %v7987_v39 = vld [vmem:[#allocation6 + $0x398] sm:$0xff]  }
 0x5f3   :  { %7063 = vmatprep.subr.bf16.mxu0 %v8175_v49 }
 0x5f6   :  { %7064 = vmatpush3.bf16.msra.mxu0 %v7964_v15  ;;  %v7988_v15 = vld [vmem:[#allocation6 + $0x3a0] sm:$0xff]  }
 0x5f7   :  { %7065 = vmatprep.subr.bf16.mxu0 %v8175_v49 }
 0x5f8   :  { %v4500_v16 = vpop.f32.mrb[112].mxu0 }
 0x5f9   :  { %v4507_v57 = vadd.f32 %v4500_v16, %v4398_v53  ;;  %v6933_v21 = vpop.f32.mrb[113].mxu0  ;;  %v7980_v53 = vld [vmem:[#allocation6 + $0x360] sm:$0xff]  }
 0x5fa   :  { %v4503_v43 = vpop.f32.mrb[114].mxu0  ;;  %7066 = vmatpush3.bf16.msra.mxu0 %v7965_v3 }
 0x5fb   :  { %v4508_v6 = vadd.f32 %v4503_v43, %v4399_v12  ;;  %v6934_v38 = vpop.f32.mrb[115].mxu0  ;;  %7067 = vmatprep.subr.bf16.mxu0 %v8175_v49 }
 0x5fc   :  { %v7993_v38 = vld [vmem:[#allocation6 + $0x3c8] sm:$0xff]  }
 0x5fe   :  { %7068 = vmatpush3.bf16.msra.mxu0 %v7966_v20  ;;  %v7991_v20 = vld [vmem:[#allocation6 + $0x3b8] sm:$0xff]  }
 0x5ff   :  { %7069 = vmatprep.subr.bf16.mxu0 %v8175_v49 }
 0x602   :  { %7070 = vmatpush3.bf16.msra.mxu0 %v7967_v19  ;;  %v7994_v19 = vld [vmem:[#allocation6 + $0x3d0] sm:$0xff]  }
 0x603   :  { %7075 = vmatprep.subr.bf16.mxu0 %v8175_v49 }
 0x605   :  { %7072 = vmatmul.mubr.bf16.vlgmr.msra.gmra.mrb[140].mxu0 %v3940_v22 }
 0x606   :  { %7076 = vmatpush3.bf16.msra.mxu0 %v7968_v61  ;;  %7091 = vmatprep.mubr.msk.bf16.mxu0 %vm8176_vm0, %v8175_v49  ;;  %v7995_v61 = vld [vmem:[#allocation6 + $0x3d8] sm:$0xff]  }
 0x607   :  { %7077 = vmatprep.subr.bf16.mxu0 %v8175_v49 }
 0x60a   :  { %7078 = vmatpush3.bf16.msra.mxu0 %v7969_v35  ;;  %v7996_v35 = vld [vmem:[#allocation6 + $0x3e0] sm:$0xff]  }
 0x60b   :  { %7079 = vmatprep.subr.bf16.mxu0 %v8175_v49 }
 0x60e   :  { %7080 = vmatpush3.bf16.msra.mxu0 %v7970_v40 }
 0x60f   :  { %7081 = vmatprep.subr.bf16.mxu0 %v8175_v49 }
 0x612   :  { %7082 = vmatpush3.bf16.msra.mxu0 %v7971_v45 }
 0x613   :  { %7083 = vmatprep.subr.bf16.mxu0 %v8175_v49 }
 0x616   :  { %7084 = vmatpush3.bf16.msra.mxu0 %v7972_v37  ;;  %v7998_v37 = vld [vmem:[#allocation6 + $0x3f0] sm:$0xff]  }
 0x617   :  { %7085 = vmatprep.subr.bf16.mxu0 %v8175_v49 }
 0x618   :  { %v4609_v42 = vpop.f32.mrb[116].mxu0 }
 0x619   :  { %v4616_v22 = vadd.f32 %v4609_v42, %v4507_v57  ;;  %v6953_v23 = vpop.f32.mrb[117].mxu0  ;;  %v7990_v57 = vld [vmem:[#allocation6 + $0x3b0] sm:$0xff]  }
 0x61a   :  { %v4612_v51 = vpop.f32.mrb[118].mxu0  ;;  %7086 = vmatpush3.bf16.msra.mxu0 %v7973_v56  ;;  %v8000_v23 = vld [vmem:[#allocation6 + $0x400] sm:$0xff]  }
 0x61b   :  { %v4617_v8 = vadd.f32 %v4612_v51, %v4508_v6  ;;  %v6954_v24 = vpop.f32.mrb[119].mxu0  ;;  %7087 = vmatprep.subr.bf16.mxu0 %v8175_v49  ;;  %v7992_v6 = vld [vmem:[#allocation6 + $0x3c0] sm:$0xff]   ;;  %v8001_v51 = vld [vmem:[#allocation6 + $0x408] sm:$0xff]  }
 0x61c   :  { %v8004_v24 = vld [vmem:[#allocation6 + $0x420] sm:$0xff]  }
 0x61e   :  { %7088 = vmatpush3.bf16.msra.mxu0 %v7974_v59  ;;  %v8002_v59 = vld [vmem:[#allocation6 + $0x410] sm:$0xff]  }
 0x61f   :  { %7089 = vmatprep.subr.bf16.mxu0 %v8175_v49 }
 0x622   :  { %7090 = vmatpush3.bf16.msra.mxu0 %v7975_v47 }
 0x623   :  { %7095 = vmatprep.subr.bf16.mxu0 %v8175_v49 }
 0x625   :  { %7092 = vmatmul.mubr.bf16.vlgmr.msra.gmra.mrb[144].mxu0 %v3941_v34 }
 0x626   :  { %7096 = vmatpush3.bf16.msra.mxu0 %v7976_v36  ;;  %7111 = vmatprep.mubr.msk.bf16.mxu0 %vm8176_vm0, %v8175_v49 }
 0x627   :  { %7097 = vmatprep.subr.bf16.mxu0 %v8175_v49 }
 0x62a   :  { %7098 = vmatpush3.bf16.msra.mxu0 %v7977_v54  ;;  %v8006_v54 = vld [vmem:[#allocation6 + $0x430] sm:$0xff]  }
 0x62b   :  { %7099 = vmatprep.subr.bf16.mxu0 %v8175_v49 }
 0x62e   :  { %7100 = vmatpush3.bf16.msra.mxu0 %v7978_v50 }
 0x62f   :  { %7101 = vmatprep.subr.bf16.mxu0 %v8175_v49 }
 0x632   :  { %7102 = vmatpush3.bf16.msra.mxu0 %v7979_v52 }
 0x633   :  { %7103 = vmatprep.subr.bf16.mxu0 %v8175_v49 }
 0x636   :  { %7104 = vmatpush3.bf16.msra.mxu0 %v7980_v53  ;;  %v8007_v53 = vld [vmem:[#allocation6 + $0x438] sm:$0xff]  }
 0x637   :  { %7105 = vmatprep.subr.bf16.mxu0 %v8175_v49 }
 0x638   :  { %v4718_v32 = vpop.f32.mrb[120].mxu0 }
 0x639   :  { %v4725_v34 = vadd.f32 %v4718_v32, %v4616_v22  ;;  %v6973_v5 = vpop.f32.mrb[121].mxu0  ;;  %v7999_v22 = vld [vmem:[#allocation6 + $0x3f8] sm:$0xff]   ;;  %v8009_v32 = vld [vmem:[#allocation6 + $0x448] sm:$0xff]  }
 0x63a   :  { %v4721_v27 = vpop.f32.mrb[122].mxu0  ;;  %7106 = vmatpush3.bf16.msra.mxu0 %v7981_v18  ;;  %v8008_v18 = vld [vmem:[#allocation6 + $0x440] sm:$0xff]   ;;  %v8011_v5 = vld [vmem:[#allocation6 + $0x458] sm:$0xff]  }
 0x63b   :  { %v4726_v12 = vadd.f32 %v4721_v27, %v4617_v8  ;;  %v6974_v46 = vpop.f32.mrb[123].mxu0  ;;  %7107 = vmatprep.subr.bf16.mxu0 %v8175_v49  ;;  %v8003_v8 = vld [vmem:[#allocation6 + $0x418] sm:$0xff]   ;;  %v8012_v27 = vld [vmem:[#allocation6 + $0x460] sm:$0xff]  }
 0x63c   :  { %v8014_v46 = vld [vmem:[#allocation6 + $0x470] sm:$0xff]  }
 0x63e   :  { %7108 = vmatpush3.bf16.msra.mxu0 %v7982_v17 }
 0x63f   :  { %7109 = vmatprep.subr.bf16.mxu0 %v8175_v49 }
 0x642   :  { %7110 = vmatpush3.bf16.msra.mxu0 %v7983_v63 }
 0x643   :  { %7115 = vmatprep.subr.bf16.mxu0 %v8175_v49 }
 0x645   :  { %7112 = vmatmul.mubr.bf16.vlgmr.msra.gmra.mrb[148].mxu0 %v3942_v4 }
 0x646   :  { %7116 = vmatpush3.bf16.msra.mxu0 %v7984_v9  ;;  %7131 = vmatprep.mubr.msk.bf16.mxu0 %vm8176_vm0, %v8175_v49 }
 0x647   :  { %7117 = vmatprep.subr.bf16.mxu0 %v8175_v49 }
 0x64a   :  { %7118 = vmatpush3.bf16.msra.mxu0 %v7985_v30  ;;  %v8015_v30 = vld [vmem:[#allocation6 + $0x478] sm:$0xff]  }
 0x64b   :  { %7119 = vmatprep.subr.bf16.mxu0 %v8175_v49 }
 0x64e   :  { %7120 = vmatpush3.bf16.msra.mxu0 %v7986_v28  ;;  %v8016_v28 = vld [vmem:[#allocation6 + $0x480] sm:$0xff]  }
 0x64f   :  { %7121 = vmatprep.subr.bf16.mxu0 %v8175_v49 }
 0x652   :  { %7122 = vmatpush3.bf16.msra.mxu0 %v7987_v39  ;;  %v8017_v39 = vld [vmem:[#allocation6 + $0x488] sm:$0xff]  }
 0x653   :  { %7123 = vmatprep.subr.bf16.mxu0 %v8175_v49 }
 0x656   :  { %7124 = vmatpush3.bf16.msra.mxu0 %v7988_v15  ;;  %v8018_v15 = vld [vmem:[#allocation6 + $0x490] sm:$0xff]  }
 0x657   :  { %7125 = vmatprep.subr.bf16.mxu0 %v8175_v49 }
 0x658   :  { %v4827_v58 = vpop.f32.mrb[124].mxu0 }
 0x659   :  { %v4834_v4 = vadd.f32 %v4827_v58, %v4725_v34  ;;  %v6993_v3 = vpop.f32.mrb[125].mxu0  ;;  %v8010_v34 = vld [vmem:[#allocation6 + $0x450] sm:$0xff]   ;;  %v8020_v58 = vld [vmem:[#allocation6 + $0x4a0] sm:$0xff]  }
 0x65a   :  { %v4830_v16 = vpop.f32.mrb[126].mxu0  ;;  %7126 = vmatpush3.bf16.msra.mxu0 %v7989_v55  ;;  %v8019_v55 = vld [vmem:[#allocation6 + $0x498] sm:$0xff]  }
 0x65b   :  { %v4835_v21 = vadd.f32 %v4830_v16, %v4726_v12  ;;  %v6994_v43 = vpop.f32.mrb[127].mxu0  ;;  %7127 = vmatprep.subr.bf16.mxu0 %v8175_v49  ;;  %v8022_v16 = vld [vmem:[#allocation6 + $0x4b0] sm:$0xff]  }
 0x65c   :  { %v8023_v43 = vld [vmem:[#allocation6 + $0x4b8] sm:$0xff]  }
 0x65e   :  { %7128 = vmatpush3.bf16.msra.mxu0 %v7990_v57 }
 0x65f   :  { %7129 = vmatprep.subr.bf16.mxu0 %v8175_v49 }
 0x662   :  { %7130 = vmatpush3.bf16.msra.mxu0 %v7991_v20  ;;  %v8024_v20 = vld [vmem:[#allocation6 + $0x4c0] sm:$0xff]  }
 0x663   :  { %7135 = vmatprep.subr.bf16.mxu0 %v8175_v49 }
 0x665   :  { %7132 = vmatmul.mubr.bf16.vlgmr.msra.gmra.mrb[152].mxu0 %v3943_v44 }
 0x666   :  { %7136 = vmatpush3.bf16.msra.mxu0 %v7992_v6  ;;  %7151 = vmatprep.mubr.msk.bf16.mxu0 %vm8176_vm0, %v8175_v49  ;;  %v8025_v6 = vld [vmem:[#allocation6 + $0x4c8] sm:$0xff]  }
 0x667   :  { %7137 = vmatprep.subr.bf16.mxu0 %v8175_v49 }
 0x66a   :  { %7138 = vmatpush3.bf16.msra.mxu0 %v7993_v38  ;;  %v8026_v38 = vld [vmem:[#allocation6 + $0x4d0] sm:$0xff]  }
 0x66b   :  { %7139 = vmatprep.subr.bf16.mxu0 %v8175_v49 }
 0x66e   :  { %7140 = vmatpush3.bf16.msra.mxu0 %v7994_v19  ;;  %v8027_v19 = vld [vmem:[#allocation6 + $0x4d8] sm:$0xff]  }
 0x66f   :  { %7141 = vmatprep.subr.bf16.mxu0 %v8175_v49 }
 0x672   :  { %7142 = vmatpush3.bf16.msra.mxu0 %v7995_v61  ;;  %v8028_v61 = vld [vmem:[#allocation6 + $0x4e0] sm:$0xff]  }
 0x673   :  { %7143 = vmatprep.subr.bf16.mxu0 %v8175_v49 }
 0x676   :  { %7144 = vmatpush3.bf16.msra.mxu0 %v7996_v35 }
 0x677   :  { %7145 = vmatprep.subr.bf16.mxu0 %v8175_v49 }
 0x678   :  { %v4936_v1 = vpop.f32.mrb[128].mxu0 }
 0x679   :  { %v4943_v44 = vadd.f32 %v4936_v1, %v4834_v4  ;;  %v7013_v40 = vpop.f32.mrb[129].mxu0  ;;  %v8030_v1 = vld [vmem:[#allocation6 + $0x4f0] sm:$0xff]  }
 0x67a   :  { %v4939_v45 = vpop.f32.mrb[130].mxu0  ;;  %7146 = vmatpush3.bf16.msra.mxu0 %v7997_v10 }
 0x67b   :  { %v4944_v56 = vadd.f32 %v4939_v45, %v4835_v21  ;;  %v7014_v42 = vpop.f32.mrb[131].mxu0  ;;  %7147 = vmatprep.subr.bf16.mxu0 %v8175_v49  ;;  %v8031_v45 = vld [vmem:[#allocation6 + $0x4f8] sm:$0xff]  }
 0x67e   :  { %7148 = vmatpush3.bf16.msra.mxu0 %v7998_v37 }
 0x67f   :  { %7149 = vmatprep.subr.bf16.mxu0 %v8175_v49 }
 0x682   :  { %7150 = vmatpush3.bf16.msra.mxu0 %v7999_v22 }
 0x683   :  { %7155 = vmatprep.subr.bf16.mxu0 %v8175_v49 }
 0x685   :  { %7152 = vmatmul.mubr.bf16.vlgmr.msra.gmra.mrb[156].mxu0 %v3944_v14 }
 0x686   :  { %7156 = vmatpush3.bf16.msra.mxu0 %v8000_v23  ;;  %7171 = vmatprep.mubr.msk.bf16.mxu0 %vm8176_vm0, %v8175_v49 }
 0x687   :  { %7157 = vmatprep.subr.bf16.mxu0 %v8175_v49 }
 0x68a   :  { %7158 = vmatpush3.bf16.msra.mxu0 %v8001_v51 }
 0x68b   :  { %7159 = vmatprep.subr.bf16.mxu0 %v8175_v49 }
 0x68e   :  { %7160 = vmatpush3.bf16.msra.mxu0 %v8002_v59 }
 0x68f   :  { %7161 = vmatprep.subr.bf16.mxu0 %v8175_v49 }
 0x692   :  { %7162 = vmatpush3.bf16.msra.mxu0 %v8003_v8 }
 0x693   :  { %7163 = vmatprep.subr.bf16.mxu0 %v8175_v49 }
 0x696   :  { %7164 = vmatpush3.bf16.msra.mxu0 %v8004_v24 }
 0x697   :  { %7165 = vmatprep.subr.bf16.mxu0 %v8175_v49 }
 0x698   :  { %v5045_v26 = vpop.f32.mrb[132].mxu0 }
 0x699   :  { %v5052_v14 = vadd.f32 %v5045_v26, %v4943_v44  ;;  %v7033_v47 = vpop.f32.mrb[133].mxu0 }
 0x69a   :  { %v5048_v36 = vpop.f32.mrb[134].mxu0  ;;  %7166 = vmatpush3.bf16.msra.mxu0 %v8005_v33  ;;  %v8035_v47 = vld [vmem:[%s9599_s7 + $0x18] sm:$0xff]  }
 0x69b   :  { %v5053_v50 = vadd.f32 %v5048_v36, %v4944_v56  ;;  %v7034_v52 = vpop.f32.mrb[135].mxu0  ;;  %7167 = vmatprep.subr.bf16.mxu0 %v8175_v49  ;;  %v8036_v36 = vld [vmem:[%s9599_s7 + $0x20] sm:$0xff]  }
 0x69e   :  { %7168 = vmatpush3.bf16.msra.mxu0 %v8006_v54 }
 0x69f   :  { %7169 = vmatprep.subr.bf16.mxu0 %v8175_v49 }
 0x6a2   :  { %7170 = vmatpush3.bf16.msra.mxu0 %v8007_v53 }
 0x6a3   :  { %7175 = vmatprep.subr.bf16.mxu0 %v8175_v49 }
 0x6a5   :  { %7172 = vmatmul.mubr.bf16.vlgmr.msra.gmra.mrb[160].mxu0 %v3945_v11 }
 0x6a6   :  { %7176 = vmatpush3.bf16.msra.mxu0 %v8008_v18  ;;  %7191 = vmatprep.mubr.msk.bf16.mxu0 %vm8176_vm0, %v8175_v49 }
 0x6a7   :  { %7177 = vmatprep.subr.bf16.mxu0 %v8175_v49 }
 0x6aa   :  { %7178 = vmatpush3.bf16.msra.mxu0 %v8009_v32 }
 0x6ab   :  { %7179 = vmatprep.subr.bf16.mxu0 %v8175_v49 }
 0x6ae   :  { %7180 = vmatpush3.bf16.msra.mxu0 %v8010_v34 }
 0x6af   :  { %7181 = vmatprep.subr.bf16.mxu0 %v8175_v49 }
 0x6b2   :  { %7182 = vmatpush3.bf16.msra.mxu0 %v8011_v5  ;;  %v8038_v5 = vld [vmem:[%s9599_s7 + $0x30] sm:$0xff]  }
 0x6b3   :  { %7183 = vmatprep.subr.bf16.mxu0 %v8175_v49 }
 0x6b6   :  { %7184 = vmatpush3.bf16.msra.mxu0 %v8012_v27  ;;  %v8039_v27 = vld [vmem:[%s9599_s7 + $0x38] sm:$0xff]  }
 0x6b7   :  { %7185 = vmatprep.subr.bf16.mxu0 %v8175_v49 }
 0x6b8   :  { %v5154_v0 = vpop.f32.mrb[136].mxu0 }
 0x6b9   :  { %v5161_v11 = vadd.f32 %v5154_v0, %v5052_v14  ;;  %v7053_v17 = vpop.f32.mrb[137].mxu0 }
 0x6ba   :  { %v5157_v12 = vpop.f32.mrb[138].mxu0  ;;  %7186 = vmatpush3.bf16.msra.mxu0 %v8013_v60 }
 0x6bb   :  { %v5162_v63 = vadd.f32 %v5157_v12, %v5053_v50  ;;  %v7054_v9 = vpop.f32.mrb[139].mxu0  ;;  %7187 = vmatprep.subr.bf16.mxu0 %v8175_v49  ;;  %v8037_v50 = vld [vmem:[%s9599_s7 + $0x28] sm:$0xff]  }
 0x6be   :  { %7188 = vmatpush3.bf16.msra.mxu0 %v8014_v46 }
 0x6bf   :  { %7189 = vmatprep.subr.bf16.mxu0 %v8175_v49 }
 0x6c2   :  { %7190 = vmatpush3.bf16.msra.mxu0 %v8015_v30 }
 0x6c3   :  { %7195 = vmatprep.subr.bf16.mxu0 %v8175_v49 }
 0x6c5   :  { %7192 = vmatmul.mubr.bf16.vlgmr.msra.gmra.mrb[164].mxu0 %v3946_v2 }
 0x6c6   :  { %7196 = vmatpush3.bf16.msra.mxu0 %v8016_v28  ;;  %7211 = vmatprep.mubr.msk.bf16.mxu0 %vm8176_vm0, %v8175_v49 }
 0x6c7   :  { %7197 = vmatprep.subr.bf16.mxu0 %v8175_v49 }
 0x6ca   :  { %7198 = vmatpush3.bf16.msra.mxu0 %v8017_v39 }
 0x6cb   :  { %7199 = vmatprep.subr.bf16.mxu0 %v8175_v49 }
 0x6ce   :  { %7200 = vmatpush3.bf16.msra.mxu0 %v8018_v15 }
 0x6cf   :  { %7201 = vmatprep.subr.bf16.mxu0 %v8175_v49 }
 0x6d2   :  { %7202 = vmatpush3.bf16.msra.mxu0 %v8019_v55 }
 0x6d3   :  { %7203 = vmatprep.subr.bf16.mxu0 %v8175_v49 }
 0x6d6   :  { %7204 = vmatpush3.bf16.msra.mxu0 %v8020_v58 }
 0x6d7   :  { %7205 = vmatprep.subr.bf16.mxu0 %v8175_v49 }
 0x6d8   :  { %v5263_v7 = vpop.f32.mrb[140].mxu0 }
 0x6d9   :  { %v5270_v2 = vadd.f32 %v5263_v7, %v5161_v11  ;;  %v7073_v4 = vpop.f32.mrb[141].mxu0 }
 0x6da   :  { %v5266_v3 = vpop.f32.mrb[142].mxu0  ;;  %7206 = vmatpush3.bf16.msra.mxu0 %v8021_v25 }
 0x6db   :  { %v5271_v57 = vadd.f32 %v5266_v3, %v5162_v63  ;;  %v7074_v21 = vpop.f32.mrb[143].mxu0  ;;  %7207 = vmatprep.subr.bf16.mxu0 %v8175_v49  ;;  %v6636_v3 = vld [vmem:[%s9598_s6] ss:$0 sm:$0xff] }
 0x6de   :  { %7208 = vmatpush3.bf16.msra.mxu0 %v8022_v16 }
 0x6df   :  { %7209 = vmatprep.subr.bf16.mxu0 %v8175_v49 }
 0x6e2   :  { %7210 = vmatpush3.bf16.msra.mxu0 %v8023_v43 }
 0x6e3   :  { %7215 = vmatprep.subr.bf16.mxu0 %v8175_v49 }
 0x6e5   :  { %7212 = vmatmul.mubr.bf16.vlgmr.msra.gmra.mrb[168].mxu0 %v3947_v29 }
 0x6e6   :  { %7216 = vmatpush3.bf16.msra.mxu0 %v8024_v20  ;;  %7231 = vmatprep.mubr.msk.bf16.mxu0 %vm8176_vm0, %v8175_v49 }
 0x6e7   :  { %7217 = vmatprep.subr.bf16.mxu0 %v8175_v49 }
 0x6ea   :  { %7218 = vmatpush3.bf16.msra.mxu0 %v8025_v6 }
 0x6eb   :  { %7219 = vmatprep.subr.bf16.mxu0 %v8175_v49 }
 0x6ee   :  { %7220 = vmatpush3.bf16.msra.mxu0 %v8026_v38 }
 0x6ef   :  { %7221 = vmatprep.subr.bf16.mxu0 %v8175_v49 }
 0x6f2   :  { %7222 = vmatpush3.bf16.msra.mxu0 %v8027_v19 }
 0x6f3   :  { %7223 = vmatprep.subr.bf16.mxu0 %v8175_v49 }
 0x6f6   :  { %7224 = vmatpush3.bf16.msra.mxu0 %v8028_v61 }
 0x6f7   :  { %7225 = vmatprep.subr.bf16.mxu0 %v8175_v49 }
 0x6f8   :  { %v5372_v48 = vpop.f32.mrb[144].mxu0 }
 0x6f9   :  { %v5379_v29 = vadd.f32 %v5372_v48, %v5270_v2  ;;  %v7093_v35 = vpop.f32.mrb[145].mxu0  ;;  %v6637_v48 = vld [vmem:[%s9600_s8] ss:$0 sm:$0xff] }
 0x6fa   :  { %v5375_v10 = vpop.f32.mrb[146].mxu0  ;;  %7226 = vmatpush3.bf16.msra.mxu0 %v8029_v41 }
 0x6fb   :  { %v5380_v44 = vadd.f32 %v5375_v10, %v5271_v57  ;;  %v7094_v40 = vpop.f32.mrb[147].mxu0  ;;  %7227 = vmatprep.subr.bf16.mxu0 %v8175_v49 }
 0x6fe   :  { %7228 = vmatpush3.bf16.msra.mxu0 %v8030_v1 }
 0x6ff   :  { %7229 = vmatprep.subr.bf16.mxu0 %v8175_v49 }
 0x702   :  { %7230 = vmatpush3.bf16.msra.mxu0 %v8031_v45 }
 0x703   :  { %7235 = vmatprep.subr.bf16.mxu0 %v8175_v49 }
 0x705   :  { %7232 = vmatmul.mubr.bf16.vlgmr.msra.gmra.mrb[172].mxu0 %v3948_v31  ;;  %v8034_v31 = vld [vmem:[%s9599_s7 + $0x10] sm:$0xff]  }
 0x706   :  { %7251 = vmatprep.mubr.msk.bf16.mxu0 %vm8176_vm0, %v8175_v49  ;;  %7236 = vmatpush3.bf16.msra.mxu0 %v8032_v13 }
 0x707   :  { %7237 = vmatprep.subr.bf16.mxu0 %v8175_v49 }
 0x70a   :  { %7238 = vmatpush3.bf16.msra.mxu0 %v8033_v62 }
 0x70b   :  { %7239 = vmatprep.subr.bf16.mxu0 %v8175_v49 }
 0x70e   :  { %7240 = vmatpush3.bf16.msra.mxu0 %v8034_v31 }
 0x70f   :  { %7241 = vmatprep.subr.bf16.mxu0 %v8175_v49 }
 0x712   :  { %7242 = vmatpush3.bf16.msra.mxu0 %v8035_v47 }
 0x713   :  { %7243 = vmatprep.subr.bf16.mxu0 %v8175_v49 }
 0x716   :  { %7244 = vmatpush3.bf16.msra.mxu0 %v8036_v36 }
 0x717   :  { %7245 = vmatprep.subr.bf16.mxu0 %v8175_v49 }
 0x718   :  { %v5481_v37 = vpop.f32.mrb[148].mxu0 }
 0x719   :  { %v5488_v56 = vadd.f32 %v5481_v37, %v5379_v29  ;;  %v7113_v42 = vpop.f32.mrb[149].mxu0 }
 0x71a   :  { %v5484_v22 = vpop.f32.mrb[150].mxu0  ;;  %7246 = vmatpush3.bf16.msra.mxu0 %v8037_v50 }
 0x71b   :  { %v5489_v23 = vadd.f32 %v5484_v22, %v5380_v44  ;;  %v7114_v51 = vpop.f32.mrb[151].mxu0  ;;  %7247 = vmatprep.subr.bf16.mxu0 %v8175_v49 }
 0x71e   :  { %7248 = vmatpush3.bf16.msra.mxu0 %v8038_v5 }
 0x71f   :  { %7249 = vmatprep.subr.bf16.mxu0 %v8175_v49 }
 0x722   :  { %7250 = vmatpush3.bf16.msra.mxu0 %v8039_v27 }
 0x738   :  { %v5590_v59 = vpop.f32.mrb[152].mxu0 }
 0x739   :  { %v5597_v8 = vadd.f32 %v5590_v59, %v5488_v56  ;;  %v7133_v24 = vpop.f32.mrb[153].mxu0 }
 0x73a   :  { %v5593_v33 = vpop.f32.mrb[154].mxu0 }
 0x73b   :  { %v5598_v26 = vadd.f32 %v5593_v33, %v5489_v23  ;;  %v7134_v14 = vpop.f32.mrb[155].mxu0 }
 0x758   :  { %v5699_v54 = vpop.f32.mrb[156].mxu0 }
 0x759   :  { %v5706_v52 = vadd.f32 %v5699_v54, %v5597_v8  ;;  %v7153_v53 = vpop.f32.mrb[157].mxu0 }
 0x75a   :  { %v5702_v18 = vpop.f32.mrb[158].mxu0 }
 0x75b   :  { %v5707_v32 = vadd.f32 %v5702_v18, %v5598_v26  ;;  %v7154_v34 = vpop.f32.mrb[159].mxu0 }
 0x778   :  { %v5808_v60 = vpop.f32.mrb[160].mxu0 }
 0x779   :  { %v5815_v0 = vadd.f32 %v5808_v60, %v5706_v52  ;;  %v7173_v11 = vpop.f32.mrb[161].mxu0 }
 0x77a   :  { %v5811_v17 = vpop.f32.mrb[162].mxu0 }
 0x77b   :  { %v5816_v12 = vadd.f32 %v5811_v17, %v5707_v32  ;;  %v7174_v46 = vpop.f32.mrb[163].mxu0 }
 0x798   :  { %v5917_v63 = vpop.f32.mrb[164].mxu0 }
 0x799   :  { %v5924_v9 = vadd.f32 %v5917_v63, %v5815_v0  ;;  %v7193_v30 = vpop.f32.mrb[165].mxu0 }
 0x79a   :  { %v5920_v28 = vpop.f32.mrb[166].mxu0 }
 0x79b   :  { %v5925_v39 = vadd.f32 %v5920_v28, %v5816_v12  ;;  %v7194_v15 = vpop.f32.mrb[167].mxu0 }
 0x7b8   :  { %v6026_v55 = vpop.f32.mrb[168].mxu0 }
 0x7b9   :  { %v6033_v58 = vadd.f32 %v6026_v55, %v5924_v9  ;;  %v7213_v49 = vpop.f32.mrb[169].mxu0 }
 0x7ba   :  { %v6029_v25 = vpop.f32.mrb[170].mxu0 }
 0x7bb   :  { %v6034_v7 = vadd.f32 %v6029_v25, %v5925_v39  ;;  %v7214_v2 = vpop.f32.mrb[171].mxu0 }
 0x7d8   :  { %v6135_v4 = vpop.f32.mrb[172].mxu0 }
 0x7d9   :  { %v6142_v16 = vadd.f32 %v6135_v4, %v6033_v58  ;;  %v7233_v57 = vpop.f32.mrb[173].mxu0 }
 0x7da   :  { %v6138_v21 = vpop.f32.mrb[174].mxu0 }
 0x7db   :  { %v6151_v43 = vadd.f32 %v6636_v3, %v6142_v16  ;;  %v6143_v20 = vadd.f32 %v6138_v21, %v6034_v7  ;;  %v7234_v6 = vpop.f32.mrb[175].mxu0 }
 0x7dd   :  { %v6152_v38 = vadd.f32 %v6636_v3, %v6143_v20  ;;  %v6153_v19 = vmax.f32 %v6151_v43, 0.0 }
 0x7df   :  { %v6154_v61 = vmax.f32 %v6152_v38, 0.0 }
 0x7e1   :  { %v6155_v41 = vpack.c.bf16 %v6154_v61, %v6153_v19 }
 0x7e3   :  { %7252 = vmatmul.mubr.bf16.vlgmr.msra.gmra.mrb[176].mxu0 %v6155_v41 }
 0x8b6   :  { %v6261_v29 = vpop.f32.mrb[176].mxu0 }
 0x8b7   :  { %v6262_v35 = vadd.f32 %v6637_v48, %v6261_v29  ;;  %v7253_v10 = vpop.f32.mrb[177].mxu0 }
 0x8b8   :  { %v6264_v1 = vpop.f32.mrb[178].mxu0 }
 0x8b9   :  { %6268 = vst [vmem:[%s9601_s9] sm:$0xff] %v6262_v35  ;;  %v6265_v44 = vadd.f32 %v6637_v48, %v6264_v1  ;;  %v7254_v40 = vpop.f32.mrb[179].mxu0 }
 0x8bb   :  { %6269 = vst [vmem:[%s9601_s9 + $0x8] sm:$0xff] %v6265_v44 }
 0x8bc   :  { %6274 = vsyncpa [#allocation5], 1 }
 0x8bd   :  { %6275 = vsyncpa [#allocation7], 1 }

</bundles_post_ra>
